<compile_context>
chip_gen: v5e
topology: v5e:2x2
jax: 0.10.0
libtpu: 0.0.40
codegen_flags: <defaults>
</compile_context>

<pallas_src>
import functools

import numpy as np
import jax
import jax.numpy as jnp
from jax import lax
from jax.experimental import pallas as pl
from jax.experimental.pallas import tpu as pltpu


# ----------------------------------------------------------------------------
# Fused Pallas kernel: 2 layers x (2 RNNs x 2 directions) + linear head
# ----------------------------------------------------------------------------
def _bilstm_fused_kernel(x_ref, wih1_ref, b1_ref, whh1_ref,
                         wih2_ref, b2_ref, whh2_ref,
                         dmat_ref, wlin_ref, blin_ref,
                         out_ref,
                         gx_sc, y_sc, y2_sc,
                         *, T, BP):
    """All tensors are VMEM-resident.

    x_ref:   (T*BP, 4D) bf16  merged input rows: [x1[s] | x2[s] | x1[T-1-s] | x2[T-1-s]]
    wih1:    (4D, 4G)   bf16  layer-1 input weights (bwd gate cols read reversed features)
    wih2:    (2G, 4G)   bf16  layer-2 input weights (bwd gate cols read y_nat[T-1-s] half)
    whh1/2:  (G, 4G)    bf16  block-diagonal recurrent weights (G = 4*H fused instances)
    b1/b2:   (1, 4G)    f32   packed b_ih + b_hh
    dmat:    (G, 2H)    f32   +/-1 matrix computing out1 - out2 from the fused state
    wlin:    (2H, O), blin: (1, O)   f32
    out_ref: (BP, O)    f32
    gx_sc:   (T*BP, 4G) f32   precomputed, time-merged input gates (reused by both layers)
    y_sc:    (T*BP, G)  f32   layer-1 fused outputs, stored once at loop-step row
    y2_sc:   (T*BP, 2G) bf16  merged layer-2 projection input  [y_nat[s] | y_nat[T-1-s]]
    """
    G = whh1_ref.shape[0]          # 4 * H  (4 fused direction/RNN instances)
    HF = G // 2                    # forward-instance half width (2 * H)
    bf16 = jnp.bfloat16

    fwd_y_mask = lax.broadcasted_iota(jnp.int32, (BP, G), 1) < HF   # hoisted

    unroll = True if T <= 16 else 4

    # ---- layer-1 input projection: ONE matmul, output already time-merged ----
    gx_sc[...] = (
        jnp.dot(x_ref[...], wih1_ref[...], preferred_element_type=jnp.float32)
        + b1_ref[...]
    )

    def sigm(v):
        # sigmoid(x) == 0.5*tanh(0.5*x)+0.5 : one EUP push instead of exp + reciprocal
        return 0.5 * jnp.tanh(0.5 * v) + 0.5

    def run_layer(whh_ref, store_y):
        def step(s, carry):
            h, c = carry                                   # (BP, G) f32, held in vregs
            row = pl.multiple_of(s * BP, BP)
            gates = gx_sc[pl.ds(row, BP), :] + jnp.dot(
                h.astype(bf16), whh_ref[...], preferred_element_type=jnp.float32)
            i_g = sigm(gates[:, 0:G])                      # 128-lane-aligned slices
            f_g = sigm(gates[:, G:2 * G])
            g_g = jnp.tanh(gates[:, 2 * G:3 * G])
            o_g = sigm(gates[:, 3 * G:4 * G])
            c = f_g * c + i_g * g_g
            h = o_g * jnp.tanh(c)
            if store_y:
                y_sc[pl.ds(row, BP), :] = h                # single aligned store / step
            return h, c

        init = (jnp.zeros((BP, G), jnp.float32), jnp.zeros((BP, G), jnp.float32))
        h_fin, _ = lax.fori_loop(0, T, step, init, unroll=unroll)
        return h_fin

    # ------------------------------- layer 1 -------------------------------
    run_layer(whh1_ref, store_y=True)

    # ---- layer-2 merge prepass (non-recurrent): row s = [y_nat[s] | y_nat[T-1-s]] ----
    # y_sc row t holds the fused state after loop step t: fwd cols are natural time t,
    # bwd cols are natural time T-1-t.
    def merge(s, carry):
        rf = pl.multiple_of(s * BP, BP)
        rb = pl.multiple_of((T - 1 - s) * BP, BP)
        a = y_sc[pl.ds(rf, BP), :]
        b = y_sc[pl.ds(rb, BP), :]
        y2_sc[pl.ds(rf, BP), 0:G] = jnp.where(fwd_y_mask, a, b).astype(bf16)   # y_nat[s]
        y2_sc[pl.ds(rf, BP), G:2 * G] = jnp.where(fwd_y_mask, b, a).astype(bf16)
        return carry

    lax.fori_loop(0, T, merge, 0, unroll=unroll)

    # ---- layer-2 input projection (hoisted, output already time-merged) ----
    # TODO(synk): nn.LSTM inter-layer dropout (p=0.5) skipped -> inference mode.
    gx_sc[...] = (
        jnp.dot(y2_sc[...], wih2_ref[...], preferred_element_type=jnp.float32)
        + b2_ref[...]
    )

    # ------------------------------- layer 2 -------------------------------
    h_fin = run_layer(whh2_ref, store_y=False)

    # ---------- head epilogue: tanh(out1 - out2) @ W + b (folded in, f32) ----------
    diff = jnp.dot(h_fin, dmat_ref[...], preferred_element_type=jnp.float32)
    out_ref[...] = (
        jnp.dot(jnp.tanh(diff), wlin_ref[...], preferred_element_type=jnp.float32)
        + blin_ref[...]
    )


# ----------------------------------------------------------------------------
# Wrapper
# ----------------------------------------------------------------------------
_VMEM = pl.BlockSpec(memory_space=pltpu.MemorySpace.VMEM)


def bilstm_forward(in_1, in_2, packed):
    """Replicates BiLSTM.forward(in_1, in_2) (inference mode). Inputs: (B, T, D)."""
    B, T, D = in_1.shape
    G = packed["whh1"].shape[0]
    O = packed["wlin"].shape[1]
    BP = ((B + 7) // 8) * 8            # pad batch to a sublane multiple (aligned tiles)

    # Merged, time-major input: row block s = [x1[s] | x2[s] | x1[T-1-s] | x2[T-1-s]].
    x1 = jnp.transpose(in_1, (1, 0, 2))                       # (T, B, D)
    x2 = jnp.transpose(in_2, (1, 0, 2))
    xm = jnp.concatenate([x1, x2, jnp.flip(x1, 0), jnp.flip(x2, 0)], axis=-1)
    xm = jnp.pad(xm, ((0, 0), (0, BP - B), (0, 0)))           # (T, BP, 4D)
    xflat = xm.reshape(T * BP, 4 * D).astype(jnp.bfloat16)

    kernel = functools.partial(_bilstm_fused_kernel, T=T, BP=BP)
    out = pl.pallas_call(
        kernel,
        out_shape=jax.ShapeDtypeStruct((BP, O), jnp.float32),
        in_specs=[_VMEM] * 10,
        out_specs=_VMEM,
        scratch_shapes=[
            pltpu.VMEM((T * BP, 4 * G), jnp.float32),    # gx (time-merged input gates)
            pltpu.VMEM((T * BP, G), jnp.float32),        # layer-1 fused outputs
            pltpu.VMEM((T * BP, 2 * G), jnp.bfloat16),   # merged layer-2 input
        ],
    )(xflat,
      packed["wih1"], packed["b1"], packed["whh1"],
      packed["wih2"], packed["b2"], packed["whh2"],
      packed["dmat"], packed["wlin"], packed["blin"])
    return out[:B]


# ----------------------------------------------------------------------------
# Parameter construction (PyTorch nn.LSTM / nn.Linear shapes) and packing
# ----------------------------------------------------------------------------
def init_params(key, input_size, hidden_size, output_size):
    H = hidden_size
    kw = 1.0 / np.sqrt(H)

    def dir_params(key, d_in):
        k1, k2, k3, k4 = jax.random.split(key, 4)
        return dict(
            w_ih=jax.random.uniform(k1, (4 * H, d_in), jnp.float32, -kw, kw),
            w_hh=jax.random.uniform(k2, (4 * H, H), jnp.float32, -kw, kw),
            b_ih=jax.random.uniform(k3, (4 * H,), jnp.float32, -kw, kw),
            b_hh=jax.random.uniform(k4, (4 * H,), jnp.float32, -kw, kw),
        )

    def rnn_params(key):
        ks = jax.random.split(key, 4)
        return [
            {"fwd": dir_params(ks[0], input_size), "bwd": dir_params(ks[1], input_size)},
            {"fwd": dir_params(ks[2], 2 * H), "bwd": dir_params(ks[3], 2 * H)},
        ]

    k1, k2, k3, k4 = jax.random.split(key, 4)
    kl = 1.0 / np.sqrt(2 * H)
    return {
        "rnn_1": rnn_params(k1),
        "rnn_2": rnn_params(k2),
        "lin_w": jax.random.uniform(k3, (output_size, 2 * H), jnp.float32, -kl, kl),
        "lin_b": jax.random.uniform(k4, (output_size,), jnp.float32, -kl, kl),
    }


def pack_params(p, hidden_size):
    """Packs PyTorch-layout LSTM/Linear weights into the fused-kernel layout.

    Instance order (lane blocks of H): [rnn1-fwd, rnn2-fwd, rnn1-bwd, rnn2-bwd].
    Gate layout (columns of width G=4H): [i | f | g | o], each 128-lane aligned for H=32.
    MXU operands (W_ih / W_hh) are stored in bf16; biases / head stay f32.
    """
    H = hidden_size
    G = 4 * H
    inst = [("rnn_1", "fwd"), ("rnn_2", "fwd"), ("rnn_1", "bwd"), ("rnn_2", "bwd")]
    D = p["rnn_1"][0]["fwd"]["w_ih"].shape[1]

    wih1 = np.zeros((4 * D, 4 * G), np.float32)   # merged-x features [x1|x2|x1r|x2r]
    wih2 = np.zeros((2 * G, 4 * G), np.float32)   # merged-y features [y_nat[s]|y_nat[T-1-s]]
    whh1 = np.zeros((G, 4 * G), np.float32)
    whh2 = np.zeros((G, 4 * G), np.float32)
    b1 = np.zeros((1, 4 * G), np.float32)
    b2 = np.zeros((1, 4 * G), np.float32)

    for k, (rnn, d) in enumerate(inst):
        l0 = {n: np.asarray(v) for n, v in p[rnn][0][d].items()}
        l1 = {n: np.asarray(v) for n, v in p[rnn][1][d].items()}
        r = 0 if rnn == "rnn_1" else 1
        # layer-1 source feature rows: fwd reads natural-time x, bwd reads reversed copy
        xrows = slice(r * D, (r + 1) * D) if d == "fwd" else slice((2 + r) * D, (3 + r) * D)
        # layer-2 source feature half: fwd reads y_nat[s], bwd reads y_nat[T-1-s]
        yoff = 0 if d == "fwd" else G
        kf = r          # fused lane block of this RNN's layer-1 fwd output
        kb = 2 + r      # fused lane block of this RNN's layer-1 bwd output
        for g in range(4):                       # PyTorch gate order i, f, g, o
            cols = slice(g * G + k * H, g * G + (k + 1) * H)
            rows = slice(g * H, (g + 1) * H)
            wih1[xrows, cols] = l0["w_ih"][rows, :].T
            whh1[k * H:(k + 1) * H, cols] = l0["w_hh"][rows, :].T
            b1[0, cols] = l0["b_ih"][rows] + l0["b_hh"][rows]
            # layer 2: its 2H input is [fwd(H) | bwd(H)] of the same RNN's layer-1 output
            wih2[yoff + kf * H:yoff + (kf + 1) * H, cols] = l1["w_ih"][rows, 0:H].T
            wih2[yoff + kb * H:yoff + (kb + 1) * H, cols] = l1["w_ih"][rows, H:2 * H].T
            whh2[k * H:(k + 1) * H, cols] = l1["w_hh"][rows, :].T
            b2[0, cols] = l1["b_ih"][rows] + l1["b_hh"][rows]

    # Head: out1 - out2 = [h1_bwd - h2_bwd | h1_fwd - h2_fwd] from the fused final state.
    eye = np.eye(H, dtype=np.float32)
    dmat = np.zeros((G, 2 * H), np.float32)
    dmat[2 * H:3 * H, 0:H] = eye       # + rnn1 bwd
    dmat[3 * H:4 * H, 0:H] = -eye      # - rnn2 bwd
    dmat[0:H, H:2 * H] = eye           # + rnn1 fwd
    dmat[H:2 * H, H:2 * H] = -eye      # - rnn2 fwd

    wlin = np.asarray(p["lin_w"]).T.astype(np.float32)          # (2H, O): rows [bwd|fwd]
    blin = np.asarray(p["lin_b"]).astype(np.float32).reshape(1, -1)

    bf = jnp.bfloat16
    return dict(
        wih1=jnp.asarray(wih1, bf), b1=jnp.asarray(b1), whh1=jnp.asarray(whh1, bf),
        wih2=jnp.asarray(wih2, bf), b2=jnp.asarray(b2), whh2=jnp.asarray(whh2, bf),
        dmat=jnp.asarray(dmat), wlin=jnp.asarray(wlin), blin=jnp.asarray(blin),
    )


# ----------------------------------------------------------------------------
# Pure-JAX references (correctness check against PyTorch semantics)
# ----------------------------------------------------------------------------
def _ref_lstm_dir(x_tbd, prm, mxu_bf16):
    T, B, _ = x_tbd.shape
    H = prm["w_hh"].shape[1]
    if mxu_bf16:
        bf = jnp.bfloat16
        w_ih_t, w_hh_t = prm["w_ih"].T.astype(bf), prm["w_hh"].T.astype(bf)
        cast = lambda v: v.astype(bf)
        sig = lambda v: 0.5 * jnp.tanh(0.5 * v) + 0.5
    else:
        w_ih_t, w_hh_t = prm["w_ih"].T, prm["w_hh"].T
        cast = lambda v: v
        sig = jax.nn.sigmoid
    bias = prm["b_ih"] + prm["b_hh"]
    h = jnp.zeros((B, H), jnp.float32)
    c = jnp.zeros((B, H), jnp.float32)
    ys = []
    for t in range(T):
        gates = (jnp.dot(cast(x_tbd[t]), w_ih_t, preferred_element_type=jnp.float32)
                 + jnp.dot(cast(h), w_hh_t, preferred_element_type=jnp.float32) + bias)
        i = sig(gates[:, 0:H])
        f = sig(gates[:, H:2 * H])
        g = jnp.tanh(gates[:, 2 * H:3 * H])
        o = sig(gates[:, 3 * H:4 * H])
        c = f * c + i * g
        h = o * jnp.tanh(c)
        ys.append(h)
    return jnp.stack(ys, 0), h


def _ref_bidir_2layer(x_btd, layers, mxu_bf16):
    x = jnp.transpose(x_btd, (1, 0, 2))
    hf = hb = None
    for lp in layers:
        yf, hf = _ref_lstm_dir(x, lp["fwd"], mxu_bf16)
        yb_rev, hb = _ref_lstm_dir(jnp.flip(x, 0), lp["bwd"], mxu_bf16)
        x = jnp.concatenate([yf, jnp.flip(yb_rev, 0)], axis=-1)
    return hf, hb


def _ref_forward(in_1, in_2, p, mxu_bf16=False):
    hf1, hb1 = _ref_bidir_2layer(in_1, p["rnn_1"], mxu_bf16)
    hf2, hb2 = _ref_bidir_2layer(in_2, p["rnn_2"], mxu_bf16)
    s = jnp.tanh(jnp.concatenate([hb1, hf1], -1) - jnp.concatenate([hb2, hf2], -1))
    return s @ p["lin_w"].T + p["lin_b"]


# ----------------------------------------------------------------------------
if __name__ == "__main__":
    B, T = 2, 8
    INPUT_SIZE, HIDDEN_SIZE, OUTPUT_SIZE = 16, 32, 4

    key = jax.random.PRNGKey(0)
    kp, k1, k2 = jax.random.split(key, 3)
    params = init_params(kp, INPUT_SIZE, HIDDEN_SIZE, OUTPUT_SIZE)
    packed = pack_params(params, HIDDEN_SIZE)
    in_1 = jax.random.normal(k1, (B, T, INPUT_SIZE), jnp.float32)
    in_2 = jax.random.normal(k2, (B, T, INPUT_SIZE), jnp.float32)

    out = jax.jit(bilstm_forward)(in_1, in_2, packed)
    out = jax.block_until_ready(out)
    assert out.shape == (B, OUTPUT_SIZE), out.shape

    # Tight check against a bf16-MXU-consistent reference (validates packing / fusion).
    ref_bf16 = _ref_forward(in_1, in_2, params, mxu_bf16=True)
    assert jnp.allclose(out, ref_bf16, atol=5e-3, rtol=5e-3), (out, ref_bf16)

    # Loose sanity check against the pure-f32 PyTorch-semantics reference (tolerance
    # widened because MXU operands are bf16 in the kernel).
    ref_f32 = _ref_forward(in_1, in_2, params, mxu_bf16=False)
    assert jnp.allclose(out, ref_f32, atol=1e-1, rtol=1e-1), (out, ref_f32)

    print("KERNEL_OK")
</pallas_src>

<mosaic_0001>
module attributes {stable_mosaic.version = 11 : i64} {
  func.func @_bilstm_fused_kernel(%arg0: memref<64x64xbf16, #tpu.memory_space<vmem>>, %arg1: memref<64x512xbf16, #tpu.memory_space<vmem>>, %arg2: memref<1x512xf32, #tpu.memory_space<vmem>>, %arg3: memref<128x512xbf16, #tpu.memory_space<vmem>>, %arg4: memref<256x512xbf16, #tpu.memory_space<vmem>>, %arg5: memref<1x512xf32, #tpu.memory_space<vmem>>, %arg6: memref<128x512xbf16, #tpu.memory_space<vmem>>, %arg7: memref<128x64xf32, #tpu.memory_space<vmem>>, %arg8: memref<64x4xf32, #tpu.memory_space<vmem>>, %arg9: memref<1x4xf32, #tpu.memory_space<vmem>>, %arg10: memref<8x4xf32, #tpu.memory_space<vmem>>, %arg11: memref<64x512xf32, #tpu.memory_space<vmem>>, %arg12: memref<64x128xf32, #tpu.memory_space<vmem>>, %arg13: memref<64x256xbf16, #tpu.memory_space<vmem>>) attributes {dimension_semantics = [], scalar_prefetch = 0 : i64, scratch_operands = 3 : i64, tpu.core_type = #tpu.core_type<tc>} {
    %0 = tpu.iota {dimensions = array<i32: 1>} : vector<8x128xi32>
    %c64_i32 = arith.constant 64 : i32
    %1 = vector.broadcast %c64_i32 : i32 to vector<8x128xi32>
    %2 = arith.cmpi slt, %0, %1 : vector<8x128xi32>
    %c0 = arith.constant 0 : index
    %c0_0 = arith.constant 0 : index
    %3 = vector.load %arg0[%c0, %c0_0] : memref<64x64xbf16, #tpu.memory_space<vmem>>, vector<64x64xbf16>
    %c0_1 = arith.constant 0 : index
    %c0_2 = arith.constant 0 : index
    %4 = vector.load %arg1[%c0_1, %c0_2] : memref<64x512xbf16, #tpu.memory_space<vmem>>, vector<64x512xbf16>
    %cst = arith.constant dense<0.000000e+00> : vector<64x512xf32>
    %5 = tpu.matmul %3, %4, %cst {dimension_numbers = #tpu.dot_dimension_numbers<[1], [0], [0], [1], [0, 0, 1, 1], [], []>} : vector<64x64xbf16>, vector<64x512xbf16>, vector<64x512xf32> -> vector<64x512xf32>
    %c0_3 = arith.constant 0 : index
    %c0_4 = arith.constant 0 : index
    %6 = vector.load %arg2[%c0_3, %c0_4] : memref<1x512xf32, #tpu.memory_space<vmem>>, vector<1x512xf32>
    %7 = vector.broadcast %6 : vector<1x512xf32> to vector<64x512xf32>
    %8 = arith.addf %5, %7 : vector<64x512xf32>
    %c0_5 = arith.constant 0 : index
    %c0_6 = arith.constant 0 : index
    %9 = vector.load %arg11[%c0_5, %c0_6] : memref<64x512xf32, #tpu.memory_space<vmem>>, vector<64x512xf32>
    tpu.vector_store %arg11[%c0_5, %c0_6], %8 {strides = array<i32>} : memref<64x512xf32, #tpu.memory_space<vmem>>, vector<64x512xf32>,
    %cst_7 = arith.constant 0.000000e+00 : f32
    %10 = vector.broadcast %cst_7 : f32 to vector<8x128xf32>
    %cst_8 = arith.constant 0.000000e+00 : f32
    %11 = vector.broadcast %cst_8 : f32 to vector<8x128xf32>
    %c0_i32 = arith.constant 0 : i32
    %c8_i32 = arith.constant 8 : i32
    %12 = arith.muli %c0_i32, %c8_i32 : i32
    %13 = tpu.assume_multiple %12, 8 : i32
    %14 = arith.index_cast %13 : i32 to index
    %c0_9 = arith.constant 0 : index
    %15 = vector.load %arg11[%14, %c0_9] : memref<64x512xf32, #tpu.memory_space<vmem>>, vector<8x512xf32>
    %16 = arith.truncf %10 : vector<8x128xf32> to vector<8x128xbf16>
    %c0_10 = arith.constant 0 : index
    %c0_11 = arith.constant 0 : index
    %17 = vector.load %arg3[%c0_10, %c0_11] : memref<128x512xbf16, #tpu.memory_space<vmem>>, vector<128x512xbf16>
    %cst_12 = arith.constant dense<0.000000e+00> : vector<8x512xf32>
    %18 = tpu.matmul %16, %17, %cst_12 {dimension_numbers = #tpu.dot_dimension_numbers<[1], [0], [0], [1], [0, 0, 1, 1], [], []>} : vector<8x128xbf16>, vector<128x512xbf16>, vector<8x512xf32> -> vector<8x512xf32>
    %19 = arith.addf %15, %18 : vector<8x512xf32>
    %20 = vector.extract_strided_slice %19 {offsets = [0, 0], sizes = [8, 128], strides = [1, 1]} : vector<8x512xf32> to vector<8x128xf32>
    %cst_13 = arith.constant 5.000000e-01 : f32
    %21 = vector.broadcast %cst_13 : f32 to vector<8x128xf32>
    %22 = arith.mulf %21, %20 : vector<8x128xf32>
    %23 = math.tanh %22 : vector<8x128xf32>
    %cst_14 = arith.constant 5.000000e-01 : f32
    %24 = vector.broadcast %cst_14 : f32 to vector<8x128xf32>
    %25 = arith.mulf %24, %23 : vector<8x128xf32>
    %cst_15 = arith.constant 5.000000e-01 : f32
    %26 = vector.broadcast %cst_15 : f32 to vector<8x128xf32>
    %27 = arith.addf %25, %26 : vector<8x128xf32>
    %28 = vector.extract_strided_slice %19 {offsets = [0, 128], sizes = [8, 128], strides = [1, 1]} : vector<8x512xf32> to vector<8x128xf32>
    %cst_16 = arith.constant 5.000000e-01 : f32
    %29 = vector.broadcast %cst_16 : f32 to vector<8x128xf32>
    %30 = arith.mulf %29, %28 : vector<8x128xf32>
    %31 = math.tanh %30 : vector<8x128xf32>
    %cst_17 = arith.constant 5.000000e-01 : f32
    %32 = vector.broadcast %cst_17 : f32 to vector<8x128xf32>
    %33 = arith.mulf %32, %31 : vector<8x128xf32>
    %cst_18 = arith.constant 5.000000e-01 : f32
    %34 = vector.broadcast %cst_18 : f32 to vector<8x128xf32>
    %35 = arith.addf %33, %34 : vector<8x128xf32>
    %36 = vector.extract_strided_slice %19 {offsets = [0, 256], sizes = [8, 128], strides = [1, 1]} : vector<8x512xf32> to vector<8x128xf32>
    %37 = math.tanh %36 : vector<8x128xf32>
    %38 = vector.extract_strided_slice %19 {offsets = [0, 384], sizes = [8, 128], strides = [1, 1]} : vector<8x512xf32> to vector<8x128xf32>
    %cst_19 = arith.constant 5.000000e-01 : f32
    %39 = vector.broadcast %cst_19 : f32 to vector<8x128xf32>
    %40 = arith.mulf %39, %38 : vector<8x128xf32>
    %41 = math.tanh %40 : vector<8x128xf32>
    %cst_20 = arith.constant 5.000000e-01 : f32
    %42 = vector.broadcast %cst_20 : f32 to vector<8x128xf32>
    %43 = arith.mulf %42, %41 : vector<8x128xf32>
    %cst_21 = arith.constant 5.000000e-01 : f32
    %44 = vector.broadcast %cst_21 : f32 to vector<8x128xf32>
    %45 = arith.addf %43, %44 : vector<8x128xf32>
    %46 = arith.mulf %35, %11 : vector<8x128xf32>
    %47 = arith.mulf %27, %37 : vector<8x128xf32>
    %48 = arith.addf %46, %47 : vector<8x128xf32>
    %49 = math.tanh %48 : vector<8x128xf32>
    %50 = arith.mulf %45, %49 : vector<8x128xf32>
    %51 = arith.index_cast %13 : i32 to index
    %c0_22 = arith.constant 0 : index
    %52 = vector.load %arg12[%51, %c0_22] : memref<64x128xf32, #tpu.memory_space<vmem>>, vector<8x128xf32>
    tpu.vector_store %arg12[%51, %c0_22], %50 {strides = array<i32>} : memref<64x128xf32, #tpu.memory_space<vmem>>, vector<8x128xf32>,
    %c1_i32 = arith.constant 1 : i32
    %c8_i32_23 = arith.constant 8 : i32
    %53 = arith.muli %c1_i32, %c8_i32_23 : i32
    %54 = tpu.assume_multiple %53, 8 : i32
    %55 = arith.index_cast %54 : i32 to index
    %c0_24 = arith.constant 0 : index
    %56 = vector.load %arg11[%55, %c0_24] : memref<64x512xf32, #tpu.memory_space<vmem>>, vector<8x512xf32>
    %57 = arith.truncf %50 : vector<8x128xf32> to vector<8x128xbf16>
    %c0_25 = arith.constant 0 : index
    %c0_26 = arith.constant 0 : index
    %58 = vector.load %arg3[%c0_25, %c0_26] : memref<128x512xbf16, #tpu.memory_space<vmem>>, vector<128x512xbf16>
    %cst_27 = arith.constant dense<0.000000e+00> : vector<8x512xf32>
    %59 = tpu.matmul %57, %58, %cst_27 {dimension_numbers = #tpu.dot_dimension_numbers<[1], [0], [0], [1], [0, 0, 1, 1], [], []>} : vector<8x128xbf16>, vector<128x512xbf16>, vector<8x512xf32> -> vector<8x512xf32>
    %60 = arith.addf %56, %59 : vector<8x512xf32>
    %61 = vector.extract_strided_slice %60 {offsets = [0, 0], sizes = [8, 128], strides = [1, 1]} : vector<8x512xf32> to vector<8x128xf32>
    %cst_28 = arith.constant 5.000000e-01 : f32
    %62 = vector.broadcast %cst_28 : f32 to vector<8x128xf32>
    %63 = arith.mulf %62, %61 : vector<8x128xf32>
    %64 = math.tanh %63 : vector<8x128xf32>
    %cst_29 = arith.constant 5.000000e-01 : f32
    %65 = vector.broadcast %cst_29 : f32 to vector<8x128xf32>
    %66 = arith.mulf %65, %64 : vector<8x128xf32>
    %cst_30 = arith.constant 5.000000e-01 : f32
    %67 = vector.broadcast %cst_30 : f32 to vector<8x128xf32>
    %68 = arith.addf %66, %67 : vector<8x128xf32>
    %69 = vector.extract_strided_slice %60 {offsets = [0, 128], sizes = [8, 128], strides = [1, 1]} : vector<8x512xf32> to vector<8x128xf32>
    %cst_31 = arith.constant 5.000000e-01 : f32
    %70 = vector.broadcast %cst_31 : f32 to vector<8x128xf32>
    %71 = arith.mulf %70, %69 : vector<8x128xf32>
    %72 = math.tanh %71 : vector<8x128xf32>
    %cst_32 = arith.constant 5.000000e-01 : f32
    %73 = vector.broadcast %cst_32 : f32 to vector<8x128xf32>
    %74 = arith.mulf %73, %72 : vector<8x128xf32>
    %cst_33 = arith.constant 5.000000e-01 : f32
    %75 = vector.broadcast %cst_33 : f32 to vector<8x128xf32>
    %76 = arith.addf %74, %75 : vector<8x128xf32>
    %77 = vector.extract_strided_slice %60 {offsets = [0, 256], sizes = [8, 128], strides = [1, 1]} : vector<8x512xf32> to vector<8x128xf32>
    %78 = math.tanh %77 : vector<8x128xf32>
    %79 = vector.extract_strided_slice %60 {offsets = [0, 384], sizes = [8, 128], strides = [1, 1]} : vector<8x512xf32> to vector<8x128xf32>
    %cst_34 = arith.constant 5.000000e-01 : f32
    %80 = vector.broadcast %cst_34 : f32 to vector<8x128xf32>
    %81 = arith.mulf %80, %79 : vector<8x128xf32>
    %82 = math.tanh %81 : vector<8x128xf32>
    %cst_35 = arith.constant 5.000000e-01 : f32
    %83 = vector.broadcast %cst_35 : f32 to vector<8x128xf32>
    %84 = arith.mulf %83, %82 : vector<8x128xf32>
    %cst_36 = arith.constant 5.000000e-01 : f32
    %85 = vector.broadcast %cst_36 : f32 to vector<8x128xf32>
    %86 = arith.addf %84, %85 : vector<8x128xf32>
    %87 = arith.mulf %76, %48 : vector<8x128xf32>
    %88 = arith.mulf %68, %78 : vector<8x128xf32>
    %89 = arith.addf %87, %88 : vector<8x128xf32>
    %90 = math.tanh %89 : vector<8x128xf32>
    %91 = arith.mulf %86, %90 : vector<8x128xf32>
    %92 = arith.index_cast %54 : i32 to index
    %c0_37 = arith.constant 0 : index
    %93 = vector.load %arg12[%92, %c0_37] : memref<64x128xf32, #tpu.memory_space<vmem>>, vector<8x128xf32>
    tpu.vector_store %arg12[%92, %c0_37], %91 {strides = array<i32>} : memref<64x128xf32, #tpu.memory_space<vmem>>, vector<8x128xf32>,
    %c2_i32 = arith.constant 2 : i32
    %c8_i32_38 = arith.constant 8 : i32
    %94 = arith.muli %c2_i32, %c8_i32_38 : i32
    %95 = tpu.assume_multiple %94, 8 : i32
    %96 = arith.index_cast %95 : i32 to index
    %c0_39 = arith.constant 0 : index
    %97 = vector.load %arg11[%96, %c0_39] : memref<64x512xf32, #tpu.memory_space<vmem>>, vector<8x512xf32>
    %98 = arith.truncf %91 : vector<8x128xf32> to vector<8x128xbf16>
    %c0_40 = arith.constant 0 : index
    %c0_41 = arith.constant 0 : index
    %99 = vector.load %arg3[%c0_40, %c0_41] : memref<128x512xbf16, #tpu.memory_space<vmem>>, vector<128x512xbf16>
    %cst_42 = arith.constant dense<0.000000e+00> : vector<8x512xf32>
    %100 = tpu.matmul %98, %99, %cst_42 {dimension_numbers = #tpu.dot_dimension_numbers<[1], [0], [0], [1], [0, 0, 1, 1], [], []>} : vector<8x128xbf16>, vector<128x512xbf16>, vector<8x512xf32> -> vector<8x512xf32>
    %101 = arith.addf %97, %100 : vector<8x512xf32>
    %102 = vector.extract_strided_slice %101 {offsets = [0, 0], sizes = [8, 128], strides = [1, 1]} : vector<8x512xf32> to vector<8x128xf32>
    %cst_43 = arith.constant 5.000000e-01 : f32
    %103 = vector.broadcast %cst_43 : f32 to vector<8x128xf32>
    %104 = arith.mulf %103, %102 : vector<8x128xf32>
    %105 = math.tanh %104 : vector<8x128xf32>
    %cst_44 = arith.constant 5.000000e-01 : f32
    %106 = vector.broadcast %cst_44 : f32 to vector<8x128xf32>
    %107 = arith.mulf %106, %105 : vector<8x128xf32>
    %cst_45 = arith.constant 5.000000e-01 : f32
    %108 = vector.broadcast %cst_45 : f32 to vector<8x128xf32>
    %109 = arith.addf %107, %108 : vector<8x128xf32>
    %110 = vector.extract_strided_slice %101 {offsets = [0, 128], sizes = [8, 128], strides = [1, 1]} : vector<8x512xf32> to vector<8x128xf32>
    %cst_46 = arith.constant 5.000000e-01 : f32
    %111 = vector.broadcast %cst_46 : f32 to vector<8x128xf32>
    %112 = arith.mulf %111, %110 : vector<8x128xf32>
    %113 = math.tanh %112 : vector<8x128xf32>
    %cst_47 = arith.constant 5.000000e-01 : f32
    %114 = vector.broadcast %cst_47 : f32 to vector<8x128xf32>
    %115 = arith.mulf %114, %113 : vector<8x128xf32>
    %cst_48 = arith.constant 5.000000e-01 : f32
    %116 = vector.broadcast %cst_48 : f32 to vector<8x128xf32>
    %117 = arith.addf %115, %116 : vector<8x128xf32>
    %118 = vector.extract_strided_slice %101 {offsets = [0, 256], sizes = [8, 128], strides = [1, 1]} : vector<8x512xf32> to vector<8x128xf32>
    %119 = math.tanh %118 : vector<8x128xf32>
    %120 = vector.extract_strided_slice %101 {offsets = [0, 384], sizes = [8, 128], strides = [1, 1]} : vector<8x512xf32> to vector<8x128xf32>
    %cst_49 = arith.constant 5.000000e-01 : f32
    %121 = vector.broadcast %cst_49 : f32 to vector<8x128xf32>
    %122 = arith.mulf %121, %120 : vector<8x128xf32>
    %123 = math.tanh %122 : vector<8x128xf32>
    %cst_50 = arith.constant 5.000000e-01 : f32
    %124 = vector.broadcast %cst_50 : f32 to vector<8x128xf32>
    %125 = arith.mulf %124, %123 : vector<8x128xf32>
    %cst_51 = arith.constant 5.000000e-01 : f32
    %126 = vector.broadcast %cst_51 : f32 to vector<8x128xf32>
    %127 = arith.addf %125, %126 : vector<8x128xf32>
    %128 = arith.mulf %117, %89 : vector<8x128xf32>
    %129 = arith.mulf %109, %119 : vector<8x128xf32>
    %130 = arith.addf %128, %129 : vector<8x128xf32>
    %131 = math.tanh %130 : vector<8x128xf32>
    %132 = arith.mulf %127, %131 : vector<8x128xf32>
    %133 = arith.index_cast %95 : i32 to index
    %c0_52 = arith.constant 0 : index
    %134 = vector.load %arg12[%133, %c0_52] : memref<64x128xf32, #tpu.memory_space<vmem>>, vector<8x128xf32>
    tpu.vector_store %arg12[%133, %c0_52], %132 {strides = array<i32>} : memref<64x128xf32, #tpu.memory_space<vmem>>, vector<8x128xf32>,
    %c3_i32 = arith.constant 3 : i32
    %c8_i32_53 = arith.constant 8 : i32
    %135 = arith.muli %c3_i32, %c8_i32_53 : i32
    %136 = tpu.assume_multiple %135, 8 : i32
    %137 = arith.index_cast %136 : i32 to index
    %c0_54 = arith.constant 0 : index
    %138 = vector.load %arg11[%137, %c0_54] : memref<64x512xf32, #tpu.memory_space<vmem>>, vector<8x512xf32>
    %139 = arith.truncf %132 : vector<8x128xf32> to vector<8x128xbf16>
    %c0_55 = arith.constant 0 : index
    %c0_56 = arith.constant 0 : index
    %140 = vector.load %arg3[%c0_55, %c0_56] : memref<128x512xbf16, #tpu.memory_space<vmem>>, vector<128x512xbf16>
    %cst_57 = arith.constant dense<0.000000e+00> : vector<8x512xf32>
    %141 = tpu.matmul %139, %140, %cst_57 {dimension_numbers = #tpu.dot_dimension_numbers<[1], [0], [0], [1], [0, 0, 1, 1], [], []>} : vector<8x128xbf16>, vector<128x512xbf16>, vector<8x512xf32> -> vector<8x512xf32>
    %142 = arith.addf %138, %141 : vector<8x512xf32>
    %143 = vector.extract_strided_slice %142 {offsets = [0, 0], sizes = [8, 128], strides = [1, 1]} : vector<8x512xf32> to vector<8x128xf32>
    %cst_58 = arith.constant 5.000000e-01 : f32
    %144 = vector.broadcast %cst_58 : f32 to vector<8x128xf32>
    %145 = arith.mulf %144, %143 : vector<8x128xf32>
    %146 = math.tanh %145 : vector<8x128xf32>
    %cst_59 = arith.constant 5.000000e-01 : f32
    %147 = vector.broadcast %cst_59 : f32 to vector<8x128xf32>
    %148 = arith.mulf %147, %146 : vector<8x128xf32>
    %cst_60 = arith.constant 5.000000e-01 : f32
    %149 = vector.broadcast %cst_60 : f32 to vector<8x128xf32>
    %150 = arith.addf %148, %149 : vector<8x128xf32>
    %151 = vector.extract_strided_slice %142 {offsets = [0, 128], sizes = [8, 128], strides = [1, 1]} : vector<8x512xf32> to vector<8x128xf32>
    %cst_61 = arith.constant 5.000000e-01 : f32
    %152 = vector.broadcast %cst_61 : f32 to vector<8x128xf32>
    %153 = arith.mulf %152, %151 : vector<8x128xf32>
    %154 = math.tanh %153 : vector<8x128xf32>
    %cst_62 = arith.constant 5.000000e-01 : f32
    %155 = vector.broadcast %cst_62 : f32 to vector<8x128xf32>
    %156 = arith.mulf %155, %154 : vector<8x128xf32>
    %cst_63 = arith.constant 5.000000e-01 : f32
    %157 = vector.broadcast %cst_63 : f32 to vector<8x128xf32>
    %158 = arith.addf %156, %157 : vector<8x128xf32>
    %159 = vector.extract_strided_slice %142 {offsets = [0, 256], sizes = [8, 128], strides = [1, 1]} : vector<8x512xf32> to vector<8x128xf32>
    %160 = math.tanh %159 : vector<8x128xf32>
    %161 = vector.extract_strided_slice %142 {offsets = [0, 384], sizes = [8, 128], strides = [1, 1]} : vector<8x512xf32> to vector<8x128xf32>
    %cst_64 = arith.constant 5.000000e-01 : f32
    %162 = vector.broadcast %cst_64 : f32 to vector<8x128xf32>
    %163 = arith.mulf %162, %161 : vector<8x128xf32>
    %164 = math.tanh %163 : vector<8x128xf32>
    %cst_65 = arith.constant 5.000000e-01 : f32
    %165 = vector.broadcast %cst_65 : f32 to vector<8x128xf32>
    %166 = arith.mulf %165, %164 : vector<8x128xf32>
    %cst_66 = arith.constant 5.000000e-01 : f32
    %167 = vector.broadcast %cst_66 : f32 to vector<8x128xf32>
    %168 = arith.addf %166, %167 : vector<8x128xf32>
    %169 = arith.mulf %158, %130 : vector<8x128xf32>
    %170 = arith.mulf %150, %160 : vector<8x128xf32>
    %171 = arith.addf %169, %170 : vector<8x128xf32>
    %172 = math.tanh %171 : vector<8x128xf32>
    %173 = arith.mulf %168, %172 : vector<8x128xf32>
    %174 = arith.index_cast %136 : i32 to index
    %c0_67 = arith.constant 0 : index
    %175 = vector.load %arg12[%174, %c0_67] : memref<64x128xf32, #tpu.memory_space<vmem>>, vector<8x128xf32>
    tpu.vector_store %arg12[%174, %c0_67], %173 {strides = array<i32>} : memref<64x128xf32, #tpu.memory_space<vmem>>, vector<8x128xf32>,
    %c4_i32 = arith.constant 4 : i32
    %c8_i32_68 = arith.constant 8 : i32
    %176 = arith.muli %c4_i32, %c8_i32_68 : i32
    %177 = tpu.assume_multiple %176, 8 : i32
    %178 = arith.index_cast %177 : i32 to index
    %c0_69 = arith.constant 0 : index
    %179 = vector.load %arg11[%178, %c0_69] : memref<64x512xf32, #tpu.memory_space<vmem>>, vector<8x512xf32>
    %180 = arith.truncf %173 : vector<8x128xf32> to vector<8x128xbf16>
    %c0_70 = arith.constant 0 : index
    %c0_71 = arith.constant 0 : index
    %181 = vector.load %arg3[%c0_70, %c0_71] : memref<128x512xbf16, #tpu.memory_space<vmem>>, vector<128x512xbf16>
    %cst_72 = arith.constant dense<0.000000e+00> : vector<8x512xf32>
    %182 = tpu.matmul %180, %181, %cst_72 {dimension_numbers = #tpu.dot_dimension_numbers<[1], [0], [0], [1], [0, 0, 1, 1], [], []>} : vector<8x128xbf16>, vector<128x512xbf16>, vector<8x512xf32> -> vector<8x512xf32>
    %183 = arith.addf %179, %182 : vector<8x512xf32>
    %184 = vector.extract_strided_slice %183 {offsets = [0, 0], sizes = [8, 128], strides = [1, 1]} : vector<8x512xf32> to vector<8x128xf32>
    %cst_73 = arith.constant 5.000000e-01 : f32
    %185 = vector.broadcast %cst_73 : f32 to vector<8x128xf32>
    %186 = arith.mulf %185, %184 : vector<8x128xf32>
    %187 = math.tanh %186 : vector<8x128xf32>
    %cst_74 = arith.constant 5.000000e-01 : f32
    %188 = vector.broadcast %cst_74 : f32 to vector<8x128xf32>
    %189 = arith.mulf %188, %187 : vector<8x128xf32>
    %cst_75 = arith.constant 5.000000e-01 : f32
    %190 = vector.broadcast %cst_75 : f32 to vector<8x128xf32>
    %191 = arith.addf %189, %190 : vector<8x128xf32>
    %192 = vector.extract_strided_slice %183 {offsets = [0, 128], sizes = [8, 128], strides = [1, 1]} : vector<8x512xf32> to vector<8x128xf32>
    %cst_76 = arith.constant 5.000000e-01 : f32
    %193 = vector.broadcast %cst_76 : f32 to vector<8x128xf32>
    %194 = arith.mulf %193, %192 : vector<8x128xf32>
    %195 = math.tanh %194 : vector<8x128xf32>
    %cst_77 = arith.constant 5.000000e-01 : f32
    %196 = vector.broadcast %cst_77 : f32 to vector<8x128xf32>
    %197 = arith.mulf %196, %195 : vector<8x128xf32>
    %cst_78 = arith.constant 5.000000e-01 : f32
    %198 = vector.broadcast %cst_78 : f32 to vector<8x128xf32>
    %199 = arith.addf %197, %198 : vector<8x128xf32>
    %200 = vector.extract_strided_slice %183 {offsets = [0, 256], sizes = [8, 128], strides = [1, 1]} : vector<8x512xf32> to vector<8x128xf32>
    %201 = math.tanh %200 : vector<8x128xf32>
    %202 = vector.extract_strided_slice %183 {offsets = [0, 384], sizes = [8, 128], strides = [1, 1]} : vector<8x512xf32> to vector<8x128xf32>
    %cst_79 = arith.constant 5.000000e-01 : f32
    %203 = vector.broadcast %cst_79 : f32 to vector<8x128xf32>
    %204 = arith.mulf %203, %202 : vector<8x128xf32>
    %205 = math.tanh %204 : vector<8x128xf32>
    %cst_80 = arith.constant 5.000000e-01 : f32
    %206 = vector.broadcast %cst_80 : f32 to vector<8x128xf32>
    %207 = arith.mulf %206, %205 : vector<8x128xf32>
    %cst_81 = arith.constant 5.000000e-01 : f32
    %208 = vector.broadcast %cst_81 : f32 to vector<8x128xf32>
    %209 = arith.addf %207, %208 : vector<8x128xf32>
    %210 = arith.mulf %199, %171 : vector<8x128xf32>
    %211 = arith.mulf %191, %201 : vector<8x128xf32>
    %212 = arith.addf %210, %211 : vector<8x128xf32>
    %213 = math.tanh %212 : vector<8x128xf32>
    %214 = arith.mulf %209, %213 : vector<8x128xf32>
    %215 = arith.index_cast %177 : i32 to index
    %c0_82 = arith.constant 0 : index
    %216 = vector.load %arg12[%215, %c0_82] : memref<64x128xf32, #tpu.memory_space<vmem>>, vector<8x128xf32>
    tpu.vector_store %arg12[%215, %c0_82], %214 {strides = array<i32>} : memref<64x128xf32, #tpu.memory_space<vmem>>, vector<8x128xf32>,
    %c5_i32 = arith.constant 5 : i32
    %c8_i32_83 = arith.constant 8 : i32
    %217 = arith.muli %c5_i32, %c8_i32_83 : i32
    %218 = tpu.assume_multiple %217, 8 : i32
    %219 = arith.index_cast %218 : i32 to index
    %c0_84 = arith.constant 0 : index
    %220 = vector.load %arg11[%219, %c0_84] : memref<64x512xf32, #tpu.memory_space<vmem>>, vector<8x512xf32>
    %221 = arith.truncf %214 : vector<8x128xf32> to vector<8x128xbf16>
    %c0_85 = arith.constant 0 : index
    %c0_86 = arith.constant 0 : index
    %222 = vector.load %arg3[%c0_85, %c0_86] : memref<128x512xbf16, #tpu.memory_space<vmem>>, vector<128x512xbf16>
    %cst_87 = arith.constant dense<0.000000e+00> : vector<8x512xf32>
    %223 = tpu.matmul %221, %222, %cst_87 {dimension_numbers = #tpu.dot_dimension_numbers<[1], [0], [0], [1], [0, 0, 1, 1], [], []>} : vector<8x128xbf16>, vector<128x512xbf16>, vector<8x512xf32> -> vector<8x512xf32>
    %224 = arith.addf %220, %223 : vector<8x512xf32>
    %225 = vector.extract_strided_slice %224 {offsets = [0, 0], sizes = [8, 128], strides = [1, 1]} : vector<8x512xf32> to vector<8x128xf32>
    %cst_88 = arith.constant 5.000000e-01 : f32
    %226 = vector.broadcast %cst_88 : f32 to vector<8x128xf32>
    %227 = arith.mulf %226, %225 : vector<8x128xf32>
    %228 = math.tanh %227 : vector<8x128xf32>
    %cst_89 = arith.constant 5.000000e-01 : f32
    %229 = vector.broadcast %cst_89 : f32 to vector<8x128xf32>
    %230 = arith.mulf %229, %228 : vector<8x128xf32>
    %cst_90 = arith.constant 5.000000e-01 : f32
    %231 = vector.broadcast %cst_90 : f32 to vector<8x128xf32>
    %232 = arith.addf %230, %231 : vector<8x128xf32>
    %233 = vector.extract_strided_slice %224 {offsets = [0, 128], sizes = [8, 128], strides = [1, 1]} : vector<8x512xf32> to vector<8x128xf32>
    %cst_91 = arith.constant 5.000000e-01 : f32
    %234 = vector.broadcast %cst_91 : f32 to vector<8x128xf32>
    %235 = arith.mulf %234, %233 : vector<8x128xf32>
    %236 = math.tanh %235 : vector<8x128xf32>
    %cst_92 = arith.constant 5.000000e-01 : f32
    %237 = vector.broadcast %cst_92 : f32 to vector<8x128xf32>
    %238 = arith.mulf %237, %236 : vector<8x128xf32>
    %cst_93 = arith.constant 5.000000e-01 : f32
    %239 = vector.broadcast %cst_93 : f32 to vector<8x128xf32>
    %240 = arith.addf %238, %239 : vector<8x128xf32>
    %241 = vector.extract_strided_slice %224 {offsets = [0, 256], sizes = [8, 128], strides = [1, 1]} : vector<8x512xf32> to vector<8x128xf32>
    %242 = math.tanh %241 : vector<8x128xf32>
    %243 = vector.extract_strided_slice %224 {offsets = [0, 384], sizes = [8, 128], strides = [1, 1]} : vector<8x512xf32> to vector<8x128xf32>
    %cst_94 = arith.constant 5.000000e-01 : f32
    %244 = vector.broadcast %cst_94 : f32 to vector<8x128xf32>
    %245 = arith.mulf %244, %243 : vector<8x128xf32>
    %246 = math.tanh %245 : vector<8x128xf32>
    %cst_95 = arith.constant 5.000000e-01 : f32
    %247 = vector.broadcast %cst_95 : f32 to vector<8x128xf32>
    %248 = arith.mulf %247, %246 : vector<8x128xf32>
    %cst_96 = arith.constant 5.000000e-01 : f32
    %249 = vector.broadcast %cst_96 : f32 to vector<8x128xf32>
    %250 = arith.addf %248, %249 : vector<8x128xf32>
    %251 = arith.mulf %240, %212 : vector<8x128xf32>
    %252 = arith.mulf %232, %242 : vector<8x128xf32>
    %253 = arith.addf %251, %252 : vector<8x128xf32>
    %254 = math.tanh %253 : vector<8x128xf32>
    %255 = arith.mulf %250, %254 : vector<8x128xf32>
    %256 = arith.index_cast %218 : i32 to index
    %c0_97 = arith.constant 0 : index
    %257 = vector.load %arg12[%256, %c0_97] : memref<64x128xf32, #tpu.memory_space<vmem>>, vector<8x128xf32>
    tpu.vector_store %arg12[%256, %c0_97], %255 {strides = array<i32>} : memref<64x128xf32, #tpu.memory_space<vmem>>, vector<8x128xf32>,
    %c6_i32 = arith.constant 6 : i32
    %c8_i32_98 = arith.constant 8 : i32
    %258 = arith.muli %c6_i32, %c8_i32_98 : i32
    %259 = tpu.assume_multiple %258, 8 : i32
    %260 = arith.index_cast %259 : i32 to index
    %c0_99 = arith.constant 0 : index
    %261 = vector.load %arg11[%260, %c0_99] : memref<64x512xf32, #tpu.memory_space<vmem>>, vector<8x512xf32>
    %262 = arith.truncf %255 : vector<8x128xf32> to vector<8x128xbf16>
    %c0_100 = arith.constant 0 : index
    %c0_101 = arith.constant 0 : index
    %263 = vector.load %arg3[%c0_100, %c0_101] : memref<128x512xbf16, #tpu.memory_space<vmem>>, vector<128x512xbf16>
    %cst_102 = arith.constant dense<0.000000e+00> : vector<8x512xf32>
    %264 = tpu.matmul %262, %263, %cst_102 {dimension_numbers = #tpu.dot_dimension_numbers<[1], [0], [0], [1], [0, 0, 1, 1], [], []>} : vector<8x128xbf16>, vector<128x512xbf16>, vector<8x512xf32> -> vector<8x512xf32>
    %265 = arith.addf %261, %264 : vector<8x512xf32>
    %266 = vector.extract_strided_slice %265 {offsets = [0, 0], sizes = [8, 128], strides = [1, 1]} : vector<8x512xf32> to vector<8x128xf32>
    %cst_103 = arith.constant 5.000000e-01 : f32
    %267 = vector.broadcast %cst_103 : f32 to vector<8x128xf32>
    %268 = arith.mulf %267, %266 : vector<8x128xf32>
    %269 = math.tanh %268 : vector<8x128xf32>
    %cst_104 = arith.constant 5.000000e-01 : f32
    %270 = vector.broadcast %cst_104 : f32 to vector<8x128xf32>
    %271 = arith.mulf %270, %269 : vector<8x128xf32>
    %cst_105 = arith.constant 5.000000e-01 : f32
    %272 = vector.broadcast %cst_105 : f32 to vector<8x128xf32>
    %273 = arith.addf %271, %272 : vector<8x128xf32>
    %274 = vector.extract_strided_slice %265 {offsets = [0, 128], sizes = [8, 128], strides = [1, 1]} : vector<8x512xf32> to vector<8x128xf32>
    %cst_106 = arith.constant 5.000000e-01 : f32
    %275 = vector.broadcast %cst_106 : f32 to vector<8x128xf32>
    %276 = arith.mulf %275, %274 : vector<8x128xf32>
    %277 = math.tanh %276 : vector<8x128xf32>
    %cst_107 = arith.constant 5.000000e-01 : f32
    %278 = vector.broadcast %cst_107 : f32 to vector<8x128xf32>
    %279 = arith.mulf %278, %277 : vector<8x128xf32>
    %cst_108 = arith.constant 5.000000e-01 : f32
    %280 = vector.broadcast %cst_108 : f32 to vector<8x128xf32>
    %281 = arith.addf %279, %280 : vector<8x128xf32>
    %282 = vector.extract_strided_slice %265 {offsets = [0, 256], sizes = [8, 128], strides = [1, 1]} : vector<8x512xf32> to vector<8x128xf32>
    %283 = math.tanh %282 : vector<8x128xf32>
    %284 = vector.extract_strided_slice %265 {offsets = [0, 384], sizes = [8, 128], strides = [1, 1]} : vector<8x512xf32> to vector<8x128xf32>
    %cst_109 = arith.constant 5.000000e-01 : f32
    %285 = vector.broadcast %cst_109 : f32 to vector<8x128xf32>
    %286 = arith.mulf %285, %284 : vector<8x128xf32>
    %287 = math.tanh %286 : vector<8x128xf32>
    %cst_110 = arith.constant 5.000000e-01 : f32
    %288 = vector.broadcast %cst_110 : f32 to vector<8x128xf32>
    %289 = arith.mulf %288, %287 : vector<8x128xf32>
    %cst_111 = arith.constant 5.000000e-01 : f32
    %290 = vector.broadcast %cst_111 : f32 to vector<8x128xf32>
    %291 = arith.addf %289, %290 : vector<8x128xf32>
    %292 = arith.mulf %281, %253 : vector<8x128xf32>
    %293 = arith.mulf %273, %283 : vector<8x128xf32>
    %294 = arith.addf %292, %293 : vector<8x128xf32>
    %295 = math.tanh %294 : vector<8x128xf32>
    %296 = arith.mulf %291, %295 : vector<8x128xf32>
    %297 = arith.index_cast %259 : i32 to index
    %c0_112 = arith.constant 0 : index
    %298 = vector.load %arg12[%297, %c0_112] : memref<64x128xf32, #tpu.memory_space<vmem>>, vector<8x128xf32>
    tpu.vector_store %arg12[%297, %c0_112], %296 {strides = array<i32>} : memref<64x128xf32, #tpu.memory_space<vmem>>, vector<8x128xf32>,
    %c7_i32 = arith.constant 7 : i32
    %c8_i32_113 = arith.constant 8 : i32
    %299 = arith.muli %c7_i32, %c8_i32_113 : i32
    %300 = tpu.assume_multiple %299, 8 : i32
    %301 = arith.index_cast %300 : i32 to index
    %c0_114 = arith.constant 0 : index
    %302 = vector.load %arg11[%301, %c0_114] : memref<64x512xf32, #tpu.memory_space<vmem>>, vector<8x512xf32>
    %303 = arith.truncf %296 : vector<8x128xf32> to vector<8x128xbf16>
    %c0_115 = arith.constant 0 : index
    %c0_116 = arith.constant 0 : index
    %304 = vector.load %arg3[%c0_115, %c0_116] : memref<128x512xbf16, #tpu.memory_space<vmem>>, vector<128x512xbf16>
    %cst_117 = arith.constant dense<0.000000e+00> : vector<8x512xf32>
    %305 = tpu.matmul %303, %304, %cst_117 {dimension_numbers = #tpu.dot_dimension_numbers<[1], [0], [0], [1], [0, 0, 1, 1], [], []>} : vector<8x128xbf16>, vector<128x512xbf16>, vector<8x512xf32> -> vector<8x512xf32>
    %306 = arith.addf %302, %305 : vector<8x512xf32>
    %307 = vector.extract_strided_slice %306 {offsets = [0, 0], sizes = [8, 128], strides = [1, 1]} : vector<8x512xf32> to vector<8x128xf32>
    %cst_118 = arith.constant 5.000000e-01 : f32
    %308 = vector.broadcast %cst_118 : f32 to vector<8x128xf32>
    %309 = arith.mulf %308, %307 : vector<8x128xf32>
    %310 = math.tanh %309 : vector<8x128xf32>
    %cst_119 = arith.constant 5.000000e-01 : f32
    %311 = vector.broadcast %cst_119 : f32 to vector<8x128xf32>
    %312 = arith.mulf %311, %310 : vector<8x128xf32>
    %cst_120 = arith.constant 5.000000e-01 : f32
    %313 = vector.broadcast %cst_120 : f32 to vector<8x128xf32>
    %314 = arith.addf %312, %313 : vector<8x128xf32>
    %315 = vector.extract_strided_slice %306 {offsets = [0, 128], sizes = [8, 128], strides = [1, 1]} : vector<8x512xf32> to vector<8x128xf32>
    %cst_121 = arith.constant 5.000000e-01 : f32
    %316 = vector.broadcast %cst_121 : f32 to vector<8x128xf32>
    %317 = arith.mulf %316, %315 : vector<8x128xf32>
    %318 = math.tanh %317 : vector<8x128xf32>
    %cst_122 = arith.constant 5.000000e-01 : f32
    %319 = vector.broadcast %cst_122 : f32 to vector<8x128xf32>
    %320 = arith.mulf %319, %318 : vector<8x128xf32>
    %cst_123 = arith.constant 5.000000e-01 : f32
    %321 = vector.broadcast %cst_123 : f32 to vector<8x128xf32>
    %322 = arith.addf %320, %321 : vector<8x128xf32>
    %323 = vector.extract_strided_slice %306 {offsets = [0, 256], sizes = [8, 128], strides = [1, 1]} : vector<8x512xf32> to vector<8x128xf32>
    %324 = math.tanh %323 : vector<8x128xf32>
    %325 = vector.extract_strided_slice %306 {offsets = [0, 384], sizes = [8, 128], strides = [1, 1]} : vector<8x512xf32> to vector<8x128xf32>
    %cst_124 = arith.constant 5.000000e-01 : f32
    %326 = vector.broadcast %cst_124 : f32 to vector<8x128xf32>
    %327 = arith.mulf %326, %325 : vector<8x128xf32>
    %328 = math.tanh %327 : vector<8x128xf32>
    %cst_125 = arith.constant 5.000000e-01 : f32
    %329 = vector.broadcast %cst_125 : f32 to vector<8x128xf32>
    %330 = arith.mulf %329, %328 : vector<8x128xf32>
    %cst_126 = arith.constant 5.000000e-01 : f32
    %331 = vector.broadcast %cst_126 : f32 to vector<8x128xf32>
    %332 = arith.addf %330, %331 : vector<8x128xf32>
    %333 = arith.mulf %322, %294 : vector<8x128xf32>
    %334 = arith.mulf %314, %324 : vector<8x128xf32>
    %335 = arith.addf %333, %334 : vector<8x128xf32>
    %336 = math.tanh %335 : vector<8x128xf32>
    %337 = arith.mulf %332, %336 : vector<8x128xf32>
    %338 = arith.index_cast %300 : i32 to index
    %c0_127 = arith.constant 0 : index
    %339 = vector.load %arg12[%338, %c0_127] : memref<64x128xf32, #tpu.memory_space<vmem>>, vector<8x128xf32>
    tpu.vector_store %arg12[%338, %c0_127], %337 {strides = array<i32>} : memref<64x128xf32, #tpu.memory_space<vmem>>, vector<8x128xf32>,
    %c8_i32_128 = arith.constant 8 : i32
    %c0_i32_129 = arith.constant 0 : i32
    %c8_i32_130 = arith.constant 8 : i32
    %340 = arith.muli %c0_i32_129, %c8_i32_130 : i32
    %341 = tpu.assume_multiple %340, 8 : i32
    %c7_i32_131 = arith.constant 7 : i32
    %342 = arith.subi %c7_i32_131, %c0_i32_129 : i32
    %c8_i32_132 = arith.constant 8 : i32
    %343 = arith.muli %342, %c8_i32_132 : i32
    %344 = tpu.assume_multiple %343, 8 : i32
    %345 = arith.index_cast %341 : i32 to index
    %c0_133 = arith.constant 0 : index
    %346 = vector.load %arg12[%345, %c0_133] : memref<64x128xf32, #tpu.memory_space<vmem>>, vector<8x128xf32>
    %347 = arith.index_cast %344 : i32 to index
    %c0_134 = arith.constant 0 : index
    %348 = vector.load %arg12[%347, %c0_134] : memref<64x128xf32, #tpu.memory_space<vmem>>, vector<8x128xf32>
    %349 = arith.select %2, %346, %348 : vector<8x128xi1>, vector<8x128xf32>
    %350 = arith.truncf %349 : vector<8x128xf32> to vector<8x128xbf16>
    %351 = arith.index_cast %341 : i32 to index
    %c0_135 = arith.constant 0 : index
    %352 = vector.load %arg13[%351, %c0_135] : memref<64x256xbf16, #tpu.memory_space<vmem>>, vector<8x128xbf16>
    tpu.vector_store %arg13[%351, %c0_135], %350 {strides = array<i32>} : memref<64x256xbf16, #tpu.memory_space<vmem>>, vector<8x128xbf16>,
    %353 = arith.select %2, %348, %346 : vector<8x128xi1>, vector<8x128xf32>
    %354 = arith.truncf %353 : vector<8x128xf32> to vector<8x128xbf16>
    %355 = arith.index_cast %341 : i32 to index
    %c128 = arith.constant 128 : index
    %356 = vector.load %arg13[%355, %c128] : memref<64x256xbf16, #tpu.memory_space<vmem>>, vector<8x128xbf16>
    tpu.vector_store %arg13[%355, %c128], %354 {strides = array<i32>} : memref<64x256xbf16, #tpu.memory_space<vmem>>, vector<8x128xbf16>,
    %c1_i32_136 = arith.constant 1 : i32
    %c8_i32_137 = arith.constant 8 : i32
    %357 = arith.muli %c1_i32_136, %c8_i32_137 : i32
    %358 = tpu.assume_multiple %357, 8 : i32
    %c7_i32_138 = arith.constant 7 : i32
    %359 = arith.subi %c7_i32_138, %c1_i32_136 : i32
    %c8_i32_139 = arith.constant 8 : i32
    %360 = arith.muli %359, %c8_i32_139 : i32
    %361 = tpu.assume_multiple %360, 8 : i32
    %362 = arith.index_cast %358 : i32 to index
    %c0_140 = arith.constant 0 : index
    %363 = vector.load %arg12[%362, %c0_140] : memref<64x128xf32, #tpu.memory_space<vmem>>, vector<8x128xf32>
    %364 = arith.index_cast %361 : i32 to index
    %c0_141 = arith.constant 0 : index
    %365 = vector.load %arg12[%364, %c0_141] : memref<64x128xf32, #tpu.memory_space<vmem>>, vector<8x128xf32>
    %366 = arith.select %2, %363, %365 : vector<8x128xi1>, vector<8x128xf32>
    %367 = arith.truncf %366 : vector<8x128xf32> to vector<8x128xbf16>
    %368 = arith.index_cast %358 : i32 to index
    %c0_142 = arith.constant 0 : index
    %369 = vector.load %arg13[%368, %c0_142] : memref<64x256xbf16, #tpu.memory_space<vmem>>, vector<8x128xbf16>
    tpu.vector_store %arg13[%368, %c0_142], %367 {strides = array<i32>} : memref<64x256xbf16, #tpu.memory_space<vmem>>, vector<8x128xbf16>,
    %370 = arith.select %2, %365, %363 : vector<8x128xi1>, vector<8x128xf32>
    %371 = arith.truncf %370 : vector<8x128xf32> to vector<8x128xbf16>
    %372 = arith.index_cast %358 : i32 to index
    %c128_143 = arith.constant 128 : index
    %373 = vector.load %arg13[%372, %c128_143] : memref<64x256xbf16, #tpu.memory_space<vmem>>, vector<8x128xbf16>
    tpu.vector_store %arg13[%372, %c128_143], %371 {strides = array<i32>} : memref<64x256xbf16, #tpu.memory_space<vmem>>, vector<8x128xbf16>,
    %c2_i32_144 = arith.constant 2 : i32
    %c8_i32_145 = arith.constant 8 : i32
    %374 = arith.muli %c2_i32_144, %c8_i32_145 : i32
    %375 = tpu.assume_multiple %374, 8 : i32
    %c7_i32_146 = arith.constant 7 : i32
    %376 = arith.subi %c7_i32_146, %c2_i32_144 : i32
    %c8_i32_147 = arith.constant 8 : i32
    %377 = arith.muli %376, %c8_i32_147 : i32
    %378 = tpu.assume_multiple %377, 8 : i32
    %379 = arith.index_cast %375 : i32 to index
    %c0_148 = arith.constant 0 : index
    %380 = vector.load %arg12[%379, %c0_148] : memref<64x128xf32, #tpu.memory_space<vmem>>, vector<8x128xf32>
    %381 = arith.index_cast %378 : i32 to index
    %c0_149 = arith.constant 0 : index
    %382 = vector.load %arg12[%381, %c0_149] : memref<64x128xf32, #tpu.memory_space<vmem>>, vector<8x128xf32>
    %383 = arith.select %2, %380, %382 : vector<8x128xi1>, vector<8x128xf32>
    %384 = arith.truncf %383 : vector<8x128xf32> to vector<8x128xbf16>
    %385 = arith.index_cast %375 : i32 to index
    %c0_150 = arith.constant 0 : index
    %386 = vector.load %arg13[%385, %c0_150] : memref<64x256xbf16, #tpu.memory_space<vmem>>, vector<8x128xbf16>
    tpu.vector_store %arg13[%385, %c0_150], %384 {strides = array<i32>} : memref<64x256xbf16, #tpu.memory_space<vmem>>, vector<8x128xbf16>,
    %387 = arith.select %2, %382, %380 : vector<8x128xi1>, vector<8x128xf32>
    %388 = arith.truncf %387 : vector<8x128xf32> to vector<8x128xbf16>
    %389 = arith.index_cast %375 : i32 to index
    %c128_151 = arith.constant 128 : index
    %390 = vector.load %arg13[%389, %c128_151] : memref<64x256xbf16, #tpu.memory_space<vmem>>, vector<8x128xbf16>
    tpu.vector_store %arg13[%389, %c128_151], %388 {strides = array<i32>} : memref<64x256xbf16, #tpu.memory_space<vmem>>, vector<8x128xbf16>,
    %c3_i32_152 = arith.constant 3 : i32
    %c8_i32_153 = arith.constant 8 : i32
    %391 = arith.muli %c3_i32_152, %c8_i32_153 : i32
    %392 = tpu.assume_multiple %391, 8 : i32
    %c7_i32_154 = arith.constant 7 : i32
    %393 = arith.subi %c7_i32_154, %c3_i32_152 : i32
    %c8_i32_155 = arith.constant 8 : i32
    %394 = arith.muli %393, %c8_i32_155 : i32
    %395 = tpu.assume_multiple %394, 8 : i32
    %396 = arith.index_cast %392 : i32 to index
    %c0_156 = arith.constant 0 : index
    %397 = vector.load %arg12[%396, %c0_156] : memref<64x128xf32, #tpu.memory_space<vmem>>, vector<8x128xf32>
    %398 = arith.index_cast %395 : i32 to index
    %c0_157 = arith.constant 0 : index
    %399 = vector.load %arg12[%398, %c0_157] : memref<64x128xf32, #tpu.memory_space<vmem>>, vector<8x128xf32>
    %400 = arith.select %2, %397, %399 : vector<8x128xi1>, vector<8x128xf32>
    %401 = arith.truncf %400 : vector<8x128xf32> to vector<8x128xbf16>
    %402 = arith.index_cast %392 : i32 to index
    %c0_158 = arith.constant 0 : index
    %403 = vector.load %arg13[%402, %c0_158] : memref<64x256xbf16, #tpu.memory_space<vmem>>, vector<8x128xbf16>
    tpu.vector_store %arg13[%402, %c0_158], %401 {strides = array<i32>} : memref<64x256xbf16, #tpu.memory_space<vmem>>, vector<8x128xbf16>,
    %404 = arith.select %2, %399, %397 : vector<8x128xi1>, vector<8x128xf32>
    %405 = arith.truncf %404 : vector<8x128xf32> to vector<8x128xbf16>
    %406 = arith.index_cast %392 : i32 to index
    %c128_159 = arith.constant 128 : index
    %407 = vector.load %arg13[%406, %c128_159] : memref<64x256xbf16, #tpu.memory_space<vmem>>, vector<8x128xbf16>
    tpu.vector_store %arg13[%406, %c128_159], %405 {strides = array<i32>} : memref<64x256xbf16, #tpu.memory_space<vmem>>, vector<8x128xbf16>,
    %c4_i32_160 = arith.constant 4 : i32
    %c8_i32_161 = arith.constant 8 : i32
    %408 = arith.muli %c4_i32_160, %c8_i32_161 : i32
    %409 = tpu.assume_multiple %408, 8 : i32
    %c7_i32_162 = arith.constant 7 : i32
    %410 = arith.subi %c7_i32_162, %c4_i32_160 : i32
    %c8_i32_163 = arith.constant 8 : i32
    %411 = arith.muli %410, %c8_i32_163 : i32
    %412 = tpu.assume_multiple %411, 8 : i32
    %413 = arith.index_cast %409 : i32 to index
    %c0_164 = arith.constant 0 : index
    %414 = vector.load %arg12[%413, %c0_164] : memref<64x128xf32, #tpu.memory_space<vmem>>, vector<8x128xf32>
    %415 = arith.index_cast %412 : i32 to index
    %c0_165 = arith.constant 0 : index
    %416 = vector.load %arg12[%415, %c0_165] : memref<64x128xf32, #tpu.memory_space<vmem>>, vector<8x128xf32>
    %417 = arith.select %2, %414, %416 : vector<8x128xi1>, vector<8x128xf32>
    %418 = arith.truncf %417 : vector<8x128xf32> to vector<8x128xbf16>
    %419 = arith.index_cast %409 : i32 to index
    %c0_166 = arith.constant 0 : index
    %420 = vector.load %arg13[%419, %c0_166] : memref<64x256xbf16, #tpu.memory_space<vmem>>, vector<8x128xbf16>
    tpu.vector_store %arg13[%419, %c0_166], %418 {strides = array<i32>} : memref<64x256xbf16, #tpu.memory_space<vmem>>, vector<8x128xbf16>,
    %421 = arith.select %2, %416, %414 : vector<8x128xi1>, vector<8x128xf32>
    %422 = arith.truncf %421 : vector<8x128xf32> to vector<8x128xbf16>
    %423 = arith.index_cast %409 : i32 to index
    %c128_167 = arith.constant 128 : index
    %424 = vector.load %arg13[%423, %c128_167] : memref<64x256xbf16, #tpu.memory_space<vmem>>, vector<8x128xbf16>
    tpu.vector_store %arg13[%423, %c128_167], %422 {strides = array<i32>} : memref<64x256xbf16, #tpu.memory_space<vmem>>, vector<8x128xbf16>,
    %c5_i32_168 = arith.constant 5 : i32
    %c8_i32_169 = arith.constant 8 : i32
    %425 = arith.muli %c5_i32_168, %c8_i32_169 : i32
    %426 = tpu.assume_multiple %425, 8 : i32
    %c7_i32_170 = arith.constant 7 : i32
    %427 = arith.subi %c7_i32_170, %c5_i32_168 : i32
    %c8_i32_171 = arith.constant 8 : i32
    %428 = arith.muli %427, %c8_i32_171 : i32
    %429 = tpu.assume_multiple %428, 8 : i32
    %430 = arith.index_cast %426 : i32 to index
    %c0_172 = arith.constant 0 : index
    %431 = vector.load %arg12[%430, %c0_172] : memref<64x128xf32, #tpu.memory_space<vmem>>, vector<8x128xf32>
    %432 = arith.index_cast %429 : i32 to index
    %c0_173 = arith.constant 0 : index
    %433 = vector.load %arg12[%432, %c0_173] : memref<64x128xf32, #tpu.memory_space<vmem>>, vector<8x128xf32>
    %434 = arith.select %2, %431, %433 : vector<8x128xi1>, vector<8x128xf32>
    %435 = arith.truncf %434 : vector<8x128xf32> to vector<8x128xbf16>
    %436 = arith.index_cast %426 : i32 to index
    %c0_174 = arith.constant 0 : index
    %437 = vector.load %arg13[%436, %c0_174] : memref<64x256xbf16, #tpu.memory_space<vmem>>, vector<8x128xbf16>
    tpu.vector_store %arg13[%436, %c0_174], %435 {strides = array<i32>} : memref<64x256xbf16, #tpu.memory_space<vmem>>, vector<8x128xbf16>,
    %438 = arith.select %2, %433, %431 : vector<8x128xi1>, vector<8x128xf32>
    %439 = arith.truncf %438 : vector<8x128xf32> to vector<8x128xbf16>
    %440 = arith.index_cast %426 : i32 to index
    %c128_175 = arith.constant 128 : index
    %441 = vector.load %arg13[%440, %c128_175] : memref<64x256xbf16, #tpu.memory_space<vmem>>, vector<8x128xbf16>
    tpu.vector_store %arg13[%440, %c128_175], %439 {strides = array<i32>} : memref<64x256xbf16, #tpu.memory_space<vmem>>, vector<8x128xbf16>,
    %c6_i32_176 = arith.constant 6 : i32
    %c8_i32_177 = arith.constant 8 : i32
    %442 = arith.muli %c6_i32_176, %c8_i32_177 : i32
    %443 = tpu.assume_multiple %442, 8 : i32
    %c7_i32_178 = arith.constant 7 : i32
    %444 = arith.subi %c7_i32_178, %c6_i32_176 : i32
    %c8_i32_179 = arith.constant 8 : i32
    %445 = arith.muli %444, %c8_i32_179 : i32
    %446 = tpu.assume_multiple %445, 8 : i32
    %447 = arith.index_cast %443 : i32 to index
    %c0_180 = arith.constant 0 : index
    %448 = vector.load %arg12[%447, %c0_180] : memref<64x128xf32, #tpu.memory_space<vmem>>, vector<8x128xf32>
    %449 = arith.index_cast %446 : i32 to index
    %c0_181 = arith.constant 0 : index
    %450 = vector.load %arg12[%449, %c0_181] : memref<64x128xf32, #tpu.memory_space<vmem>>, vector<8x128xf32>
    %451 = arith.select %2, %448, %450 : vector<8x128xi1>, vector<8x128xf32>
    %452 = arith.truncf %451 : vector<8x128xf32> to vector<8x128xbf16>
    %453 = arith.index_cast %443 : i32 to index
    %c0_182 = arith.constant 0 : index
    %454 = vector.load %arg13[%453, %c0_182] : memref<64x256xbf16, #tpu.memory_space<vmem>>, vector<8x128xbf16>
    tpu.vector_store %arg13[%453, %c0_182], %452 {strides = array<i32>} : memref<64x256xbf16, #tpu.memory_space<vmem>>, vector<8x128xbf16>,
    %455 = arith.select %2, %450, %448 : vector<8x128xi1>, vector<8x128xf32>
    %456 = arith.truncf %455 : vector<8x128xf32> to vector<8x128xbf16>
    %457 = arith.index_cast %443 : i32 to index
    %c128_183 = arith.constant 128 : index
    %458 = vector.load %arg13[%457, %c128_183] : memref<64x256xbf16, #tpu.memory_space<vmem>>, vector<8x128xbf16>
    tpu.vector_store %arg13[%457, %c128_183], %456 {strides = array<i32>} : memref<64x256xbf16, #tpu.memory_space<vmem>>, vector<8x128xbf16>,
    %c7_i32_184 = arith.constant 7 : i32
    %c8_i32_185 = arith.constant 8 : i32
    %459 = arith.muli %c7_i32_184, %c8_i32_185 : i32
    %460 = tpu.assume_multiple %459, 8 : i32
    %c7_i32_186 = arith.constant 7 : i32
    %461 = arith.subi %c7_i32_186, %c7_i32_184 : i32
    %c8_i32_187 = arith.constant 8 : i32
    %462 = arith.muli %461, %c8_i32_187 : i32
    %463 = tpu.assume_multiple %462, 8 : i32
    %464 = arith.index_cast %460 : i32 to index
    %c0_188 = arith.constant 0 : index
    %465 = vector.load %arg12[%464, %c0_188] : memref<64x128xf32, #tpu.memory_space<vmem>>, vector<8x128xf32>
    %466 = arith.index_cast %463 : i32 to index
    %c0_189 = arith.constant 0 : index
    %467 = vector.load %arg12[%466, %c0_189] : memref<64x128xf32, #tpu.memory_space<vmem>>, vector<8x128xf32>
    %468 = arith.select %2, %465, %467 : vector<8x128xi1>, vector<8x128xf32>
    %469 = arith.truncf %468 : vector<8x128xf32> to vector<8x128xbf16>
    %470 = arith.index_cast %460 : i32 to index
    %c0_190 = arith.constant 0 : index
    %471 = vector.load %arg13[%470, %c0_190] : memref<64x256xbf16, #tpu.memory_space<vmem>>, vector<8x128xbf16>
    tpu.vector_store %arg13[%470, %c0_190], %469 {strides = array<i32>} : memref<64x256xbf16, #tpu.memory_space<vmem>>, vector<8x128xbf16>,
    %472 = arith.select %2, %467, %465 : vector<8x128xi1>, vector<8x128xf32>
    %473 = arith.truncf %472 : vector<8x128xf32> to vector<8x128xbf16>
    %474 = arith.index_cast %460 : i32 to index
    %c128_191 = arith.constant 128 : index
    %475 = vector.load %arg13[%474, %c128_191] : memref<64x256xbf16, #tpu.memory_space<vmem>>, vector<8x128xbf16>
    tpu.vector_store %arg13[%474, %c128_191], %473 {strides = array<i32>} : memref<64x256xbf16, #tpu.memory_space<vmem>>, vector<8x128xbf16>,
    %c8_i32_192 = arith.constant 8 : i32
    %c0_193 = arith.constant 0 : index
    %c0_194 = arith.constant 0 : index
    %476 = vector.load %arg13[%c0_193, %c0_194] : memref<64x256xbf16, #tpu.memory_space<vmem>>, vector<64x256xbf16>
    %c0_195 = arith.constant 0 : index
    %c0_196 = arith.constant 0 : index
    %477 = vector.load %arg4[%c0_195, %c0_196] : memref<256x512xbf16, #tpu.memory_space<vmem>>, vector<256x512xbf16>
    %cst_197 = arith.constant dense<0.000000e+00> : vector<64x512xf32>
    %478 = tpu.matmul %476, %477, %cst_197 {dimension_numbers = #tpu.dot_dimension_numbers<[1], [0], [0], [1], [0, 0, 1, 1], [], []>} : vector<64x256xbf16>, vector<256x512xbf16>, vector<64x512xf32> -> vector<64x512xf32>
    %c0_198 = arith.constant 0 : index
    %c0_199 = arith.constant 0 : index
    %479 = vector.load %arg5[%c0_198, %c0_199] : memref<1x512xf32, #tpu.memory_space<vmem>>, vector<1x512xf32>
    %480 = vector.broadcast %479 : vector<1x512xf32> to vector<64x512xf32>
    %481 = arith.addf %478, %480 : vector<64x512xf32>
    %c0_200 = arith.constant 0 : index
    %c0_201 = arith.constant 0 : index
    %482 = vector.load %arg11[%c0_200, %c0_201] : memref<64x512xf32, #tpu.memory_space<vmem>>, vector<64x512xf32>
    tpu.vector_store %arg11[%c0_200, %c0_201], %481 {strides = array<i32>} : memref<64x512xf32, #tpu.memory_space<vmem>>, vector<64x512xf32>,
    %cst_202 = arith.constant 0.000000e+00 : f32
    %483 = vector.broadcast %cst_202 : f32 to vector<8x128xf32>
    %cst_203 = arith.constant 0.000000e+00 : f32
    %484 = vector.broadcast %cst_203 : f32 to vector<8x128xf32>
    %c0_i32_204 = arith.constant 0 : i32
    %c8_i32_205 = arith.constant 8 : i32
    %485 = arith.muli %c0_i32_204, %c8_i32_205 : i32
    %486 = tpu.assume_multiple %485, 8 : i32
    %487 = arith.index_cast %486 : i32 to index
    %c0_206 = arith.constant 0 : index
    %488 = vector.load %arg11[%487, %c0_206] : memref<64x512xf32, #tpu.memory_space<vmem>>, vector<8x512xf32>
    %489 = arith.truncf %483 : vector<8x128xf32> to vector<8x128xbf16>
    %c0_207 = arith.constant 0 : index
    %c0_208 = arith.constant 0 : index
    %490 = vector.load %arg6[%c0_207, %c0_208] : memref<128x512xbf16, #tpu.memory_space<vmem>>, vector<128x512xbf16>
    %cst_209 = arith.constant dense<0.000000e+00> : vector<8x512xf32>
    %491 = tpu.matmul %489, %490, %cst_209 {dimension_numbers = #tpu.dot_dimension_numbers<[1], [0], [0], [1], [0, 0, 1, 1], [], []>} : vector<8x128xbf16>, vector<128x512xbf16>, vector<8x512xf32> -> vector<8x512xf32>
    %492 = arith.addf %488, %491 : vector<8x512xf32>
    %493 = vector.extract_strided_slice %492 {offsets = [0, 0], sizes = [8, 128], strides = [1, 1]} : vector<8x512xf32> to vector<8x128xf32>
    %cst_210 = arith.constant 5.000000e-01 : f32
    %494 = vector.broadcast %cst_210 : f32 to vector<8x128xf32>
    %495 = arith.mulf %494, %493 : vector<8x128xf32>
    %496 = math.tanh %495 : vector<8x128xf32>
    %cst_211 = arith.constant 5.000000e-01 : f32
    %497 = vector.broadcast %cst_211 : f32 to vector<8x128xf32>
    %498 = arith.mulf %497, %496 : vector<8x128xf32>
    %cst_212 = arith.constant 5.000000e-01 : f32
    %499 = vector.broadcast %cst_212 : f32 to vector<8x128xf32>
    %500 = arith.addf %498, %499 : vector<8x128xf32>
    %501 = vector.extract_strided_slice %492 {offsets = [0, 128], sizes = [8, 128], strides = [1, 1]} : vector<8x512xf32> to vector<8x128xf32>
    %cst_213 = arith.constant 5.000000e-01 : f32
    %502 = vector.broadcast %cst_213 : f32 to vector<8x128xf32>
    %503 = arith.mulf %502, %501 : vector<8x128xf32>
    %504 = math.tanh %503 : vector<8x128xf32>
    %cst_214 = arith.constant 5.000000e-01 : f32
    %505 = vector.broadcast %cst_214 : f32 to vector<8x128xf32>
    %506 = arith.mulf %505, %504 : vector<8x128xf32>
    %cst_215 = arith.constant 5.000000e-01 : f32
    %507 = vector.broadcast %cst_215 : f32 to vector<8x128xf32>
    %508 = arith.addf %506, %507 : vector<8x128xf32>
    %509 = vector.extract_strided_slice %492 {offsets = [0, 256], sizes = [8, 128], strides = [1, 1]} : vector<8x512xf32> to vector<8x128xf32>
    %510 = math.tanh %509 : vector<8x128xf32>
    %511 = vector.extract_strided_slice %492 {offsets = [0, 384], sizes = [8, 128], strides = [1, 1]} : vector<8x512xf32> to vector<8x128xf32>
    %cst_216 = arith.constant 5.000000e-01 : f32
    %512 = vector.broadcast %cst_216 : f32 to vector<8x128xf32>
    %513 = arith.mulf %512, %511 : vector<8x128xf32>
    %514 = math.tanh %513 : vector<8x128xf32>
    %cst_217 = arith.constant 5.000000e-01 : f32
    %515 = vector.broadcast %cst_217 : f32 to vector<8x128xf32>
    %516 = arith.mulf %515, %514 : vector<8x128xf32>
    %cst_218 = arith.constant 5.000000e-01 : f32
    %517 = vector.broadcast %cst_218 : f32 to vector<8x128xf32>
    %518 = arith.addf %516, %517 : vector<8x128xf32>
    %519 = arith.mulf %508, %484 : vector<8x128xf32>
    %520 = arith.mulf %500, %510 : vector<8x128xf32>
    %521 = arith.addf %519, %520 : vector<8x128xf32>
    %522 = math.tanh %521 : vector<8x128xf32>
    %523 = arith.mulf %518, %522 : vector<8x128xf32>
    %c1_i32_219 = arith.constant 1 : i32
    %c8_i32_220 = arith.constant 8 : i32
    %524 = arith.muli %c1_i32_219, %c8_i32_220 : i32
    %525 = tpu.assume_multiple %524, 8 : i32
    %526 = arith.index_cast %525 : i32 to index
    %c0_221 = arith.constant 0 : index
    %527 = vector.load %arg11[%526, %c0_221] : memref<64x512xf32, #tpu.memory_space<vmem>>, vector<8x512xf32>
    %528 = arith.truncf %523 : vector<8x128xf32> to vector<8x128xbf16>
    %c0_222 = arith.constant 0 : index
    %c0_223 = arith.constant 0 : index
    %529 = vector.load %arg6[%c0_222, %c0_223] : memref<128x512xbf16, #tpu.memory_space<vmem>>, vector<128x512xbf16>
    %cst_224 = arith.constant dense<0.000000e+00> : vector<8x512xf32>
    %530 = tpu.matmul %528, %529, %cst_224 {dimension_numbers = #tpu.dot_dimension_numbers<[1], [0], [0], [1], [0, 0, 1, 1], [], []>} : vector<8x128xbf16>, vector<128x512xbf16>, vector<8x512xf32> -> vector<8x512xf32>
    %531 = arith.addf %527, %530 : vector<8x512xf32>
    %532 = vector.extract_strided_slice %531 {offsets = [0, 0], sizes = [8, 128], strides = [1, 1]} : vector<8x512xf32> to vector<8x128xf32>
    %cst_225 = arith.constant 5.000000e-01 : f32
    %533 = vector.broadcast %cst_225 : f32 to vector<8x128xf32>
    %534 = arith.mulf %533, %532 : vector<8x128xf32>
    %535 = math.tanh %534 : vector<8x128xf32>
    %cst_226 = arith.constant 5.000000e-01 : f32
    %536 = vector.broadcast %cst_226 : f32 to vector<8x128xf32>
    %537 = arith.mulf %536, %535 : vector<8x128xf32>
    %cst_227 = arith.constant 5.000000e-01 : f32
    %538 = vector.broadcast %cst_227 : f32 to vector<8x128xf32>
    %539 = arith.addf %537, %538 : vector<8x128xf32>
    %540 = vector.extract_strided_slice %531 {offsets = [0, 128], sizes = [8, 128], strides = [1, 1]} : vector<8x512xf32> to vector<8x128xf32>
    %cst_228 = arith.constant 5.000000e-01 : f32
    %541 = vector.broadcast %cst_228 : f32 to vector<8x128xf32>
    %542 = arith.mulf %541, %540 : vector<8x128xf32>
    %543 = math.tanh %542 : vector<8x128xf32>
    %cst_229 = arith.constant 5.000000e-01 : f32
    %544 = vector.broadcast %cst_229 : f32 to vector<8x128xf32>
    %545 = arith.mulf %544, %543 : vector<8x128xf32>
    %cst_230 = arith.constant 5.000000e-01 : f32
    %546 = vector.broadcast %cst_230 : f32 to vector<8x128xf32>
    %547 = arith.addf %545, %546 : vector<8x128xf32>
    %548 = vector.extract_strided_slice %531 {offsets = [0, 256], sizes = [8, 128], strides = [1, 1]} : vector<8x512xf32> to vector<8x128xf32>
    %549 = math.tanh %548 : vector<8x128xf32>
    %550 = vector.extract_strided_slice %531 {offsets = [0, 384], sizes = [8, 128], strides = [1, 1]} : vector<8x512xf32> to vector<8x128xf32>
    %cst_231 = arith.constant 5.000000e-01 : f32
    %551 = vector.broadcast %cst_231 : f32 to vector<8x128xf32>
    %552 = arith.mulf %551, %550 : vector<8x128xf32>
    %553 = math.tanh %552 : vector<8x128xf32>
    %cst_232 = arith.constant 5.000000e-01 : f32
    %554 = vector.broadcast %cst_232 : f32 to vector<8x128xf32>
    %555 = arith.mulf %554, %553 : vector<8x128xf32>
    %cst_233 = arith.constant 5.000000e-01 : f32
    %556 = vector.broadcast %cst_233 : f32 to vector<8x128xf32>
    %557 = arith.addf %555, %556 : vector<8x128xf32>
    %558 = arith.mulf %547, %521 : vector<8x128xf32>
    %559 = arith.mulf %539, %549 : vector<8x128xf32>
    %560 = arith.addf %558, %559 : vector<8x128xf32>
    %561 = math.tanh %560 : vector<8x128xf32>
    %562 = arith.mulf %557, %561 : vector<8x128xf32>
    %c2_i32_234 = arith.constant 2 : i32
    %c8_i32_235 = arith.constant 8 : i32
    %563 = arith.muli %c2_i32_234, %c8_i32_235 : i32
    %564 = tpu.assume_multiple %563, 8 : i32
    %565 = arith.index_cast %564 : i32 to index
    %c0_236 = arith.constant 0 : index
    %566 = vector.load %arg11[%565, %c0_236] : memref<64x512xf32, #tpu.memory_space<vmem>>, vector<8x512xf32>
    %567 = arith.truncf %562 : vector<8x128xf32> to vector<8x128xbf16>
    %c0_237 = arith.constant 0 : index
    %c0_238 = arith.constant 0 : index
    %568 = vector.load %arg6[%c0_237, %c0_238] : memref<128x512xbf16, #tpu.memory_space<vmem>>, vector<128x512xbf16>
    %cst_239 = arith.constant dense<0.000000e+00> : vector<8x512xf32>
    %569 = tpu.matmul %567, %568, %cst_239 {dimension_numbers = #tpu.dot_dimension_numbers<[1], [0], [0], [1], [0, 0, 1, 1], [], []>} : vector<8x128xbf16>, vector<128x512xbf16>, vector<8x512xf32> -> vector<8x512xf32>
    %570 = arith.addf %566, %569 : vector<8x512xf32>
    %571 = vector.extract_strided_slice %570 {offsets = [0, 0], sizes = [8, 128], strides = [1, 1]} : vector<8x512xf32> to vector<8x128xf32>
    %cst_240 = arith.constant 5.000000e-01 : f32
    %572 = vector.broadcast %cst_240 : f32 to vector<8x128xf32>
    %573 = arith.mulf %572, %571 : vector<8x128xf32>
    %574 = math.tanh %573 : vector<8x128xf32>
    %cst_241 = arith.constant 5.000000e-01 : f32
    %575 = vector.broadcast %cst_241 : f32 to vector<8x128xf32>
    %576 = arith.mulf %575, %574 : vector<8x128xf32>
    %cst_242 = arith.constant 5.000000e-01 : f32
    %577 = vector.broadcast %cst_242 : f32 to vector<8x128xf32>
    %578 = arith.addf %576, %577 : vector<8x128xf32>
    %579 = vector.extract_strided_slice %570 {offsets = [0, 128], sizes = [8, 128], strides = [1, 1]} : vector<8x512xf32> to vector<8x128xf32>
    %cst_243 = arith.constant 5.000000e-01 : f32
    %580 = vector.broadcast %cst_243 : f32 to vector<8x128xf32>
    %581 = arith.mulf %580, %579 : vector<8x128xf32>
    %582 = math.tanh %581 : vector<8x128xf32>
    %cst_244 = arith.constant 5.000000e-01 : f32
    %583 = vector.broadcast %cst_244 : f32 to vector<8x128xf32>
    %584 = arith.mulf %583, %582 : vector<8x128xf32>
    %cst_245 = arith.constant 5.000000e-01 : f32
    %585 = vector.broadcast %cst_245 : f32 to vector<8x128xf32>
    %586 = arith.addf %584, %585 : vector<8x128xf32>
    %587 = vector.extract_strided_slice %570 {offsets = [0, 256], sizes = [8, 128], strides = [1, 1]} : vector<8x512xf32> to vector<8x128xf32>
    %588 = math.tanh %587 : vector<8x128xf32>
    %589 = vector.extract_strided_slice %570 {offsets = [0, 384], sizes = [8, 128], strides = [1, 1]} : vector<8x512xf32> to vector<8x128xf32>
    %cst_246 = arith.constant 5.000000e-01 : f32
    %590 = vector.broadcast %cst_246 : f32 to vector<8x128xf32>
    %591 = arith.mulf %590, %589 : vector<8x128xf32>
    %592 = math.tanh %591 : vector<8x128xf32>
    %cst_247 = arith.constant 5.000000e-01 : f32
    %593 = vector.broadcast %cst_247 : f32 to vector<8x128xf32>
    %594 = arith.mulf %593, %592 : vector<8x128xf32>
    %cst_248 = arith.constant 5.000000e-01 : f32
    %595 = vector.broadcast %cst_248 : f32 to vector<8x128xf32>
    %596 = arith.addf %594, %595 : vector<8x128xf32>
    %597 = arith.mulf %586, %560 : vector<8x128xf32>
    %598 = arith.mulf %578, %588 : vector<8x128xf32>
    %599 = arith.addf %597, %598 : vector<8x128xf32>
    %600 = math.tanh %599 : vector<8x128xf32>
    %601 = arith.mulf %596, %600 : vector<8x128xf32>
    %c3_i32_249 = arith.constant 3 : i32
    %c8_i32_250 = arith.constant 8 : i32
    %602 = arith.muli %c3_i32_249, %c8_i32_250 : i32
    %603 = tpu.assume_multiple %602, 8 : i32
    %604 = arith.index_cast %603 : i32 to index
    %c0_251 = arith.constant 0 : index
    %605 = vector.load %arg11[%604, %c0_251] : memref<64x512xf32, #tpu.memory_space<vmem>>, vector<8x512xf32>
    %606 = arith.truncf %601 : vector<8x128xf32> to vector<8x128xbf16>
    %c0_252 = arith.constant 0 : index
    %c0_253 = arith.constant 0 : index
    %607 = vector.load %arg6[%c0_252, %c0_253] : memref<128x512xbf16, #tpu.memory_space<vmem>>, vector<128x512xbf16>
    %cst_254 = arith.constant dense<0.000000e+00> : vector<8x512xf32>
    %608 = tpu.matmul %606, %607, %cst_254 {dimension_numbers = #tpu.dot_dimension_numbers<[1], [0], [0], [1], [0, 0, 1, 1], [], []>} : vector<8x128xbf16>, vector<128x512xbf16>, vector<8x512xf32> -> vector<8x512xf32>
    %609 = arith.addf %605, %608 : vector<8x512xf32>
    %610 = vector.extract_strided_slice %609 {offsets = [0, 0], sizes = [8, 128], strides = [1, 1]} : vector<8x512xf32> to vector<8x128xf32>
    %cst_255 = arith.constant 5.000000e-01 : f32
    %611 = vector.broadcast %cst_255 : f32 to vector<8x128xf32>
    %612 = arith.mulf %611, %610 : vector<8x128xf32>
    %613 = math.tanh %612 : vector<8x128xf32>
    %cst_256 = arith.constant 5.000000e-01 : f32
    %614 = vector.broadcast %cst_256 : f32 to vector<8x128xf32>
    %615 = arith.mulf %614, %613 : vector<8x128xf32>
    %cst_257 = arith.constant 5.000000e-01 : f32
    %616 = vector.broadcast %cst_257 : f32 to vector<8x128xf32>
    %617 = arith.addf %615, %616 : vector<8x128xf32>
    %618 = vector.extract_strided_slice %609 {offsets = [0, 128], sizes = [8, 128], strides = [1, 1]} : vector<8x512xf32> to vector<8x128xf32>
    %cst_258 = arith.constant 5.000000e-01 : f32
    %619 = vector.broadcast %cst_258 : f32 to vector<8x128xf32>
    %620 = arith.mulf %619, %618 : vector<8x128xf32>
    %621 = math.tanh %620 : vector<8x128xf32>
    %cst_259 = arith.constant 5.000000e-01 : f32
    %622 = vector.broadcast %cst_259 : f32 to vector<8x128xf32>
    %623 = arith.mulf %622, %621 : vector<8x128xf32>
    %cst_260 = arith.constant 5.000000e-01 : f32
    %624 = vector.broadcast %cst_260 : f32 to vector<8x128xf32>
    %625 = arith.addf %623, %624 : vector<8x128xf32>
    %626 = vector.extract_strided_slice %609 {offsets = [0, 256], sizes = [8, 128], strides = [1, 1]} : vector<8x512xf32> to vector<8x128xf32>
    %627 = math.tanh %626 : vector<8x128xf32>
    %628 = vector.extract_strided_slice %609 {offsets = [0, 384], sizes = [8, 128], strides = [1, 1]} : vector<8x512xf32> to vector<8x128xf32>
    %cst_261 = arith.constant 5.000000e-01 : f32
    %629 = vector.broadcast %cst_261 : f32 to vector<8x128xf32>
    %630 = arith.mulf %629, %628 : vector<8x128xf32>
    %631 = math.tanh %630 : vector<8x128xf32>
    %cst_262 = arith.constant 5.000000e-01 : f32
    %632 = vector.broadcast %cst_262 : f32 to vector<8x128xf32>
    %633 = arith.mulf %632, %631 : vector<8x128xf32>
    %cst_263 = arith.constant 5.000000e-01 : f32
    %634 = vector.broadcast %cst_263 : f32 to vector<8x128xf32>
    %635 = arith.addf %633, %634 : vector<8x128xf32>
    %636 = arith.mulf %625, %599 : vector<8x128xf32>
    %637 = arith.mulf %617, %627 : vector<8x128xf32>
    %638 = arith.addf %636, %637 : vector<8x128xf32>
    %639 = math.tanh %638 : vector<8x128xf32>
    %640 = arith.mulf %635, %639 : vector<8x128xf32>
    %c4_i32_264 = arith.constant 4 : i32
    %c8_i32_265 = arith.constant 8 : i32
    %641 = arith.muli %c4_i32_264, %c8_i32_265 : i32
    %642 = tpu.assume_multiple %641, 8 : i32
    %643 = arith.index_cast %642 : i32 to index
    %c0_266 = arith.constant 0 : index
    %644 = vector.load %arg11[%643, %c0_266] : memref<64x512xf32, #tpu.memory_space<vmem>>, vector<8x512xf32>
    %645 = arith.truncf %640 : vector<8x128xf32> to vector<8x128xbf16>
    %c0_267 = arith.constant 0 : index
    %c0_268 = arith.constant 0 : index
    %646 = vector.load %arg6[%c0_267, %c0_268] : memref<128x512xbf16, #tpu.memory_space<vmem>>, vector<128x512xbf16>
    %cst_269 = arith.constant dense<0.000000e+00> : vector<8x512xf32>
    %647 = tpu.matmul %645, %646, %cst_269 {dimension_numbers = #tpu.dot_dimension_numbers<[1], [0], [0], [1], [0, 0, 1, 1], [], []>} : vector<8x128xbf16>, vector<128x512xbf16>, vector<8x512xf32> -> vector<8x512xf32>
    %648 = arith.addf %644, %647 : vector<8x512xf32>
    %649 = vector.extract_strided_slice %648 {offsets = [0, 0], sizes = [8, 128], strides = [1, 1]} : vector<8x512xf32> to vector<8x128xf32>
    %cst_270 = arith.constant 5.000000e-01 : f32
    %650 = vector.broadcast %cst_270 : f32 to vector<8x128xf32>
    %651 = arith.mulf %650, %649 : vector<8x128xf32>
    %652 = math.tanh %651 : vector<8x128xf32>
    %cst_271 = arith.constant 5.000000e-01 : f32
    %653 = vector.broadcast %cst_271 : f32 to vector<8x128xf32>
    %654 = arith.mulf %653, %652 : vector<8x128xf32>
    %cst_272 = arith.constant 5.000000e-01 : f32
    %655 = vector.broadcast %cst_272 : f32 to vector<8x128xf32>
    %656 = arith.addf %654, %655 : vector<8x128xf32>
    %657 = vector.extract_strided_slice %648 {offsets = [0, 128], sizes = [8, 128], strides = [1, 1]} : vector<8x512xf32> to vector<8x128xf32>
    %cst_273 = arith.constant 5.000000e-01 : f32
    %658 = vector.broadcast %cst_273 : f32 to vector<8x128xf32>
    %659 = arith.mulf %658, %657 : vector<8x128xf32>
    %660 = math.tanh %659 : vector<8x128xf32>
    %cst_274 = arith.constant 5.000000e-01 : f32
    %661 = vector.broadcast %cst_274 : f32 to vector<8x128xf32>
    %662 = arith.mulf %661, %660 : vector<8x128xf32>
    %cst_275 = arith.constant 5.000000e-01 : f32
    %663 = vector.broadcast %cst_275 : f32 to vector<8x128xf32>
    %664 = arith.addf %662, %663 : vector<8x128xf32>
    %665 = vector.extract_strided_slice %648 {offsets = [0, 256], sizes = [8, 128], strides = [1, 1]} : vector<8x512xf32> to vector<8x128xf32>
    %666 = math.tanh %665 : vector<8x128xf32>
    %667 = vector.extract_strided_slice %648 {offsets = [0, 384], sizes = [8, 128], strides = [1, 1]} : vector<8x512xf32> to vector<8x128xf32>
    %cst_276 = arith.constant 5.000000e-01 : f32
    %668 = vector.broadcast %cst_276 : f32 to vector<8x128xf32>
    %669 = arith.mulf %668, %667 : vector<8x128xf32>
    %670 = math.tanh %669 : vector<8x128xf32>
    %cst_277 = arith.constant 5.000000e-01 : f32
    %671 = vector.broadcast %cst_277 : f32 to vector<8x128xf32>
    %672 = arith.mulf %671, %670 : vector<8x128xf32>
    %cst_278 = arith.constant 5.000000e-01 : f32
    %673 = vector.broadcast %cst_278 : f32 to vector<8x128xf32>
    %674 = arith.addf %672, %673 : vector<8x128xf32>
    %675 = arith.mulf %664, %638 : vector<8x128xf32>
    %676 = arith.mulf %656, %666 : vector<8x128xf32>
    %677 = arith.addf %675, %676 : vector<8x128xf32>
    %678 = math.tanh %677 : vector<8x128xf32>
    %679 = arith.mulf %674, %678 : vector<8x128xf32>
    %c5_i32_279 = arith.constant 5 : i32
    %c8_i32_280 = arith.constant 8 : i32
    %680 = arith.muli %c5_i32_279, %c8_i32_280 : i32
    %681 = tpu.assume_multiple %680, 8 : i32
    %682 = arith.index_cast %681 : i32 to index
    %c0_281 = arith.constant 0 : index
    %683 = vector.load %arg11[%682, %c0_281] : memref<64x512xf32, #tpu.memory_space<vmem>>, vector<8x512xf32>
    %684 = arith.truncf %679 : vector<8x128xf32> to vector<8x128xbf16>
    %c0_282 = arith.constant 0 : index
    %c0_283 = arith.constant 0 : index
    %685 = vector.load %arg6[%c0_282, %c0_283] : memref<128x512xbf16, #tpu.memory_space<vmem>>, vector<128x512xbf16>
    %cst_284 = arith.constant dense<0.000000e+00> : vector<8x512xf32>
    %686 = tpu.matmul %684, %685, %cst_284 {dimension_numbers = #tpu.dot_dimension_numbers<[1], [0], [0], [1], [0, 0, 1, 1], [], []>} : vector<8x128xbf16>, vector<128x512xbf16>, vector<8x512xf32> -> vector<8x512xf32>
    %687 = arith.addf %683, %686 : vector<8x512xf32>
    %688 = vector.extract_strided_slice %687 {offsets = [0, 0], sizes = [8, 128], strides = [1, 1]} : vector<8x512xf32> to vector<8x128xf32>
    %cst_285 = arith.constant 5.000000e-01 : f32
    %689 = vector.broadcast %cst_285 : f32 to vector<8x128xf32>
    %690 = arith.mulf %689, %688 : vector<8x128xf32>
    %691 = math.tanh %690 : vector<8x128xf32>
    %cst_286 = arith.constant 5.000000e-01 : f32
    %692 = vector.broadcast %cst_286 : f32 to vector<8x128xf32>
    %693 = arith.mulf %692, %691 : vector<8x128xf32>
    %cst_287 = arith.constant 5.000000e-01 : f32
    %694 = vector.broadcast %cst_287 : f32 to vector<8x128xf32>
    %695 = arith.addf %693, %694 : vector<8x128xf32>
    %696 = vector.extract_strided_slice %687 {offsets = [0, 128], sizes = [8, 128], strides = [1, 1]} : vector<8x512xf32> to vector<8x128xf32>
    %cst_288 = arith.constant 5.000000e-01 : f32
    %697 = vector.broadcast %cst_288 : f32 to vector<8x128xf32>
    %698 = arith.mulf %697, %696 : vector<8x128xf32>
    %699 = math.tanh %698 : vector<8x128xf32>
    %cst_289 = arith.constant 5.000000e-01 : f32
    %700 = vector.broadcast %cst_289 : f32 to vector<8x128xf32>
    %701 = arith.mulf %700, %699 : vector<8x128xf32>
    %cst_290 = arith.constant 5.000000e-01 : f32
    %702 = vector.broadcast %cst_290 : f32 to vector<8x128xf32>
    %703 = arith.addf %701, %702 : vector<8x128xf32>
    %704 = vector.extract_strided_slice %687 {offsets = [0, 256], sizes = [8, 128], strides = [1, 1]} : vector<8x512xf32> to vector<8x128xf32>
    %705 = math.tanh %704 : vector<8x128xf32>
    %706 = vector.extract_strided_slice %687 {offsets = [0, 384], sizes = [8, 128], strides = [1, 1]} : vector<8x512xf32> to vector<8x128xf32>
    %cst_291 = arith.constant 5.000000e-01 : f32
    %707 = vector.broadcast %cst_291 : f32 to vector<8x128xf32>
    %708 = arith.mulf %707, %706 : vector<8x128xf32>
    %709 = math.tanh %708 : vector<8x128xf32>
    %cst_292 = arith.constant 5.000000e-01 : f32
    %710 = vector.broadcast %cst_292 : f32 to vector<8x128xf32>
    %711 = arith.mulf %710, %709 : vector<8x128xf32>
    %cst_293 = arith.constant 5.000000e-01 : f32
    %712 = vector.broadcast %cst_293 : f32 to vector<8x128xf32>
    %713 = arith.addf %711, %712 : vector<8x128xf32>
    %714 = arith.mulf %703, %677 : vector<8x128xf32>
    %715 = arith.mulf %695, %705 : vector<8x128xf32>
    %716 = arith.addf %714, %715 : vector<8x128xf32>
    %717 = math.tanh %716 : vector<8x128xf32>
    %718 = arith.mulf %713, %717 : vector<8x128xf32>
    %c6_i32_294 = arith.constant 6 : i32
    %c8_i32_295 = arith.constant 8 : i32
    %719 = arith.muli %c6_i32_294, %c8_i32_295 : i32
    %720 = tpu.assume_multiple %719, 8 : i32
    %721 = arith.index_cast %720 : i32 to index
    %c0_296 = arith.constant 0 : index
    %722 = vector.load %arg11[%721, %c0_296] : memref<64x512xf32, #tpu.memory_space<vmem>>, vector<8x512xf32>
    %723 = arith.truncf %718 : vector<8x128xf32> to vector<8x128xbf16>
    %c0_297 = arith.constant 0 : index
    %c0_298 = arith.constant 0 : index
    %724 = vector.load %arg6[%c0_297, %c0_298] : memref<128x512xbf16, #tpu.memory_space<vmem>>, vector<128x512xbf16>
    %cst_299 = arith.constant dense<0.000000e+00> : vector<8x512xf32>
    %725 = tpu.matmul %723, %724, %cst_299 {dimension_numbers = #tpu.dot_dimension_numbers<[1], [0], [0], [1], [0, 0, 1, 1], [], []>} : vector<8x128xbf16>, vector<128x512xbf16>, vector<8x512xf32> -> vector<8x512xf32>
    %726 = arith.addf %722, %725 : vector<8x512xf32>
    %727 = vector.extract_strided_slice %726 {offsets = [0, 0], sizes = [8, 128], strides = [1, 1]} : vector<8x512xf32> to vector<8x128xf32>
    %cst_300 = arith.constant 5.000000e-01 : f32
    %728 = vector.broadcast %cst_300 : f32 to vector<8x128xf32>
    %729 = arith.mulf %728, %727 : vector<8x128xf32>
    %730 = math.tanh %729 : vector<8x128xf32>
    %cst_301 = arith.constant 5.000000e-01 : f32
    %731 = vector.broadcast %cst_301 : f32 to vector<8x128xf32>
    %732 = arith.mulf %731, %730 : vector<8x128xf32>
    %cst_302 = arith.constant 5.000000e-01 : f32
    %733 = vector.broadcast %cst_302 : f32 to vector<8x128xf32>
    %734 = arith.addf %732, %733 : vector<8x128xf32>
    %735 = vector.extract_strided_slice %726 {offsets = [0, 128], sizes = [8, 128], strides = [1, 1]} : vector<8x512xf32> to vector<8x128xf32>
    %cst_303 = arith.constant 5.000000e-01 : f32
    %736 = vector.broadcast %cst_303 : f32 to vector<8x128xf32>
    %737 = arith.mulf %736, %735 : vector<8x128xf32>
    %738 = math.tanh %737 : vector<8x128xf32>
    %cst_304 = arith.constant 5.000000e-01 : f32
    %739 = vector.broadcast %cst_304 : f32 to vector<8x128xf32>
    %740 = arith.mulf %739, %738 : vector<8x128xf32>
    %cst_305 = arith.constant 5.000000e-01 : f32
    %741 = vector.broadcast %cst_305 : f32 to vector<8x128xf32>
    %742 = arith.addf %740, %741 : vector<8x128xf32>
    %743 = vector.extract_strided_slice %726 {offsets = [0, 256], sizes = [8, 128], strides = [1, 1]} : vector<8x512xf32> to vector<8x128xf32>
    %744 = math.tanh %743 : vector<8x128xf32>
    %745 = vector.extract_strided_slice %726 {offsets = [0, 384], sizes = [8, 128], strides = [1, 1]} : vector<8x512xf32> to vector<8x128xf32>
    %cst_306 = arith.constant 5.000000e-01 : f32
    %746 = vector.broadcast %cst_306 : f32 to vector<8x128xf32>
    %747 = arith.mulf %746, %745 : vector<8x128xf32>
    %748 = math.tanh %747 : vector<8x128xf32>
    %cst_307 = arith.constant 5.000000e-01 : f32
    %749 = vector.broadcast %cst_307 : f32 to vector<8x128xf32>
    %750 = arith.mulf %749, %748 : vector<8x128xf32>
    %cst_308 = arith.constant 5.000000e-01 : f32
    %751 = vector.broadcast %cst_308 : f32 to vector<8x128xf32>
    %752 = arith.addf %750, %751 : vector<8x128xf32>
    %753 = arith.mulf %742, %716 : vector<8x128xf32>
    %754 = arith.mulf %734, %744 : vector<8x128xf32>
    %755 = arith.addf %753, %754 : vector<8x128xf32>
    %756 = math.tanh %755 : vector<8x128xf32>
    %757 = arith.mulf %752, %756 : vector<8x128xf32>
    %c7_i32_309 = arith.constant 7 : i32
    %c8_i32_310 = arith.constant 8 : i32
    %758 = arith.muli %c7_i32_309, %c8_i32_310 : i32
    %759 = tpu.assume_multiple %758, 8 : i32
    %760 = arith.index_cast %759 : i32 to index
    %c0_311 = arith.constant 0 : index
    %761 = vector.load %arg11[%760, %c0_311] : memref<64x512xf32, #tpu.memory_space<vmem>>, vector<8x512xf32>
    %762 = arith.truncf %757 : vector<8x128xf32> to vector<8x128xbf16>
    %c0_312 = arith.constant 0 : index
    %c0_313 = arith.constant 0 : index
    %763 = vector.load %arg6[%c0_312, %c0_313] : memref<128x512xbf16, #tpu.memory_space<vmem>>, vector<128x512xbf16>
    %cst_314 = arith.constant dense<0.000000e+00> : vector<8x512xf32>
    %764 = tpu.matmul %762, %763, %cst_314 {dimension_numbers = #tpu.dot_dimension_numbers<[1], [0], [0], [1], [0, 0, 1, 1], [], []>} : vector<8x128xbf16>, vector<128x512xbf16>, vector<8x512xf32> -> vector<8x512xf32>
    %765 = arith.addf %761, %764 : vector<8x512xf32>
    %766 = vector.extract_strided_slice %765 {offsets = [0, 0], sizes = [8, 128], strides = [1, 1]} : vector<8x512xf32> to vector<8x128xf32>
    %cst_315 = arith.constant 5.000000e-01 : f32
    %767 = vector.broadcast %cst_315 : f32 to vector<8x128xf32>
    %768 = arith.mulf %767, %766 : vector<8x128xf32>
    %769 = math.tanh %768 : vector<8x128xf32>
    %cst_316 = arith.constant 5.000000e-01 : f32
    %770 = vector.broadcast %cst_316 : f32 to vector<8x128xf32>
    %771 = arith.mulf %770, %769 : vector<8x128xf32>
    %cst_317 = arith.constant 5.000000e-01 : f32
    %772 = vector.broadcast %cst_317 : f32 to vector<8x128xf32>
    %773 = arith.addf %771, %772 : vector<8x128xf32>
    %774 = vector.extract_strided_slice %765 {offsets = [0, 128], sizes = [8, 128], strides = [1, 1]} : vector<8x512xf32> to vector<8x128xf32>
    %cst_318 = arith.constant 5.000000e-01 : f32
    %775 = vector.broadcast %cst_318 : f32 to vector<8x128xf32>
    %776 = arith.mulf %775, %774 : vector<8x128xf32>
    %777 = math.tanh %776 : vector<8x128xf32>
    %cst_319 = arith.constant 5.000000e-01 : f32
    %778 = vector.broadcast %cst_319 : f32 to vector<8x128xf32>
    %779 = arith.mulf %778, %777 : vector<8x128xf32>
    %cst_320 = arith.constant 5.000000e-01 : f32
    %780 = vector.broadcast %cst_320 : f32 to vector<8x128xf32>
    %781 = arith.addf %779, %780 : vector<8x128xf32>
    %782 = vector.extract_strided_slice %765 {offsets = [0, 256], sizes = [8, 128], strides = [1, 1]} : vector<8x512xf32> to vector<8x128xf32>
    %783 = math.tanh %782 : vector<8x128xf32>
    %784 = vector.extract_strided_slice %765 {offsets = [0, 384], sizes = [8, 128], strides = [1, 1]} : vector<8x512xf32> to vector<8x128xf32>
    %cst_321 = arith.constant 5.000000e-01 : f32
    %785 = vector.broadcast %cst_321 : f32 to vector<8x128xf32>
    %786 = arith.mulf %785, %784 : vector<8x128xf32>
    %787 = math.tanh %786 : vector<8x128xf32>
    %cst_322 = arith.constant 5.000000e-01 : f32
    %788 = vector.broadcast %cst_322 : f32 to vector<8x128xf32>
    %789 = arith.mulf %788, %787 : vector<8x128xf32>
    %cst_323 = arith.constant 5.000000e-01 : f32
    %790 = vector.broadcast %cst_323 : f32 to vector<8x128xf32>
    %791 = arith.addf %789, %790 : vector<8x128xf32>
    %792 = arith.mulf %781, %755 : vector<8x128xf32>
    %793 = arith.mulf %773, %783 : vector<8x128xf32>
    %794 = arith.addf %792, %793 : vector<8x128xf32>
    %795 = math.tanh %794 : vector<8x128xf32>
    %796 = arith.mulf %791, %795 : vector<8x128xf32>
    %c8_i32_324 = arith.constant 8 : i32
    %c0_325 = arith.constant 0 : index
    %c0_326 = arith.constant 0 : index
    %797 = vector.load %arg7[%c0_325, %c0_326] : memref<128x64xf32, #tpu.memory_space<vmem>>, vector<128x64xf32>
    %cst_327 = arith.constant dense<0.000000e+00> : vector<8x64xf32>
    %798 = tpu.matmul %796, %797, %cst_327 {dimension_numbers = #tpu.dot_dimension_numbers<[1], [0], [0], [1], [0, 0, 1, 1], [], []>} : vector<8x128xf32>, vector<128x64xf32>, vector<8x64xf32> -> vector<8x64xf32>
    %799 = math.tanh %798 : vector<8x64xf32>
    %c0_328 = arith.constant 0 : index
    %c0_329 = arith.constant 0 : index
    %800 = vector.load %arg8[%c0_328, %c0_329] : memref<64x4xf32, #tpu.memory_space<vmem>>, vector<64x4xf32>
    %cst_330 = arith.constant dense<0.000000e+00> : vector<8x4xf32>
    %801 = tpu.matmul %799, %800, %cst_330 {dimension_numbers = #tpu.dot_dimension_numbers<[1], [0], [0], [1], [0, 0, 1, 1], [], []>} : vector<8x64xf32>, vector<64x4xf32>, vector<8x4xf32> -> vector<8x4xf32>
    %c0_331 = arith.constant 0 : index
    %c0_332 = arith.constant 0 : index
    %802 = vector.load %arg9[%c0_331, %c0_332] : memref<1x4xf32, #tpu.memory_space<vmem>>, vector<1x4xf32>
    %803 = vector.broadcast %802 : vector<1x4xf32> to vector<8x4xf32>
    %804 = arith.addf %801, %803 : vector<8x4xf32>
    %c0_333 = arith.constant 0 : index
    %c0_334 = arith.constant 0 : index
    %805 = vector.load %arg10[%c0_333, %c0_334] : memref<8x4xf32, #tpu.memory_space<vmem>>, vector<8x4xf32>
    tpu.vector_store %arg10[%c0_333, %c0_334], %804 {strides = array<i32>} : memref<8x4xf32, #tpu.memory_space<vmem>>, vector<8x4xf32>,
    return
  }
}

</mosaic_0001>

<bundles_post_ra>
// kernel: bilstm_forward.1
= control target key start
LH: loop header
LB: loop body
LE: loop exit
PB: predicated region body
PF: predicated region fallthrough
CT: control target
= control target key end

     0   :  { %15 = vsyncpa [#allocation6], 0  ;;  %s7570_s0 = inlined_call_operand.vmem [shape: bf16[64,64], index: 0, kind: input, shape index: {}]   ;;  %s7571_s1 = inlined_call_operand.vmem [shape: bf16[64,512], index: 1, kind: input, shape index: {}]   ;;  %s7572_s2 = inlined_call_operand.vmem [shape: f32[1,512], index: 2, kind: input, shape index: {}]   ;;  %s7573_s3 = inlined_call_operand.hbm [shape: bf16[128,512], index: 3, kind: input, shape index: {}]   ;;  %s7574_s4 = inlined_call_operand.hbm [shape: bf16[256,512], index: 4, kind: input, shape index: {}]   ;;  %s7575_s5 = inlined_call_operand.vmem [shape: f32[1,512], index: 5, kind: input, shape index: {}]   ;;  %s7576_s6 = inlined_call_operand.hbm [shape: bf16[128,512], index: 6, kind: input, shape index: {}]   ;;  %s7577_s7 = inlined_call_operand.vmem [shape: f32[128,64], index: 7, kind: input, shape index: {}]   ;;  %s7578_s8 = inlined_call_operand.vmem [shape: f32[64,4], index: 8, kind: input, shape index: {}]   ;;  %s7579_s9 = inlined_call_operand.vmem [shape: f32[1,4], index: 9, kind: input, shape index: {}]   ;;  %s7580_s10 = inlined_call_operand.vmem [shape: f32[8,4], index: 10, kind: output, shape index: {}]  }
   0x1   :  { %16 = vsyncpa [#allocation8], 0  ;;  %s40_s15 = sshll.u32 %s7574_s4, 4  ;;  %s6504_s16 = smov [#allocation7]   ;;  %s41_s15 = int_to_ptr.hbm [resolvable:$true] %s40_s15 }
   0x2   :  { %s42_s17 = sshll.u32 %s6504_s16, 4  ;;  %s27_s20 = sshll.u32 %s7573_s3, 4  ;;  %s43_s17 = int_to_ptr.vmem [resolvable:$true] %s42_s17  ;;  %s28_s20 = int_to_ptr.hbm [resolvable:$true] %s27_s20 }
   0x3   :  { %s6505_s21 = smov 256   ;;  %s6506_s22 = smov 16  }
   0x4   :  { %48 = dma.hbm_to_vmem [thread:$0]  %s41_s15, 8192, %s43_s17, [#allocation8], %s6505_s21, %s6505_s21, %s6506_s22  }
   0x5   :  { %s6507_s23 = smov [#allocation5]   ;;  %s55_s27 = sshll.u32 %s7576_s6, 4  ;;  %s56_s27 = int_to_ptr.hbm [resolvable:$true] %s55_s27 }
   0x6   :  { %s29_s24 = sshll.u32 %s6507_s23, 4  ;;  %s6508_s4 = smov [#allocation9]   ;;  %s30_s24 = int_to_ptr.vmem [resolvable:$true] %s29_s24 }
   0x7   :  { %35 = dma.hbm_to_vmem [thread:$0]  %s28_s20, 4096, %s30_s24, [#allocation6], %s6505_s21, %s6505_s21, %s6506_s22  }
   0x8   :  { %s57_s28 = sshll.u32 %s6508_s4, 4  ;;  %s58_s28 = int_to_ptr.vmem [resolvable:$true] %s57_s28 }
   0x9   :  { %63 = dma.hbm_to_vmem [thread:$0]  %s56_s27, 4096, %s58_s28, [#allocation8], %s6505_s21, %s6505_s21, %s6506_s22  }
   0xa   :  { %6500 = dma.done.wait [#allocation6], 4096  }
   0xb   :  { %6501 = vsyncadd [#allocation6], 4294963200 }
   0xc   :  { %6502 = dma.done.wait [#allocation8], 12288  }
   0xd   :  { %6503 = vsyncadd [#allocation8], 4294955008  ;;  %v4364_v0 = vld [vmem:[%s7571_s1 + $0x60] sm:$0xf]  ;;  %v5853_v1 = vld [vmem:[%s7571_s1 + $0x6c] sm:$0xf0] }
   0xe   :  { %v5851_v2 = vld [vmem:[%s7571_s1 + $0x64] sm:$0xf]  ;;  %v4365_v3 = vor.u32 %v5853_v1, %v4364_v0  ;;  %v4366_v4 = vld [vmem:[%s7571_s1 + $0x70] sm:$0xf0]  ;;  %v5852_v5 = vld [vmem:[%s7571_s1 + $0x6c] sm:$0xf] }
   0xf   :  { %v4374_v6 = vld [vmem:[%s7571_s1 + $0x78] sm:$0xf0]  ;;  %v4369_v7 = vor.u32 %v5851_v2, %v4366_v4  ;;  %v4348_v9 = vld [vmem:[%s7571_s1 + $0x40] sm:$0xf]  ;;  %v5849_v10 = vld [vmem:[%s7571_s1 + $0x4c] sm:$0xf0] }
  0x10   :  { %v4377_v8 = vor.u32 %v5852_v5, %v4374_v6  ;;  %v5847_v11 = vld [vmem:[%s7571_s1 + $0x44] sm:$0xf]  ;;  %237 = vmatpush.bf16.msra.mxu0 %v4365_v3  ;;  %6255 = vmatpush.bf16.msra.mxu2 %v4365_v3  ;;  %v4349_v12 = vor.u32 %v5849_v10, %v4348_v9  ;;  %v4350_v13 = vld [vmem:[%s7571_s1 + $0x50] sm:$0xf0]  ;;  %v5848_v14 = vld [vmem:[%s7571_s1 + $0x4c] sm:$0xf] }
  0x11   :  { %v4358_v15 = vld [vmem:[%s7571_s1 + $0x58] sm:$0xf0]  ;;  %266 = vmatpush.bf16.msra.mxu1 %v4369_v7  ;;  %v4353_v16 = vor.u32 %v5847_v11, %v4350_v13  ;;  %v4332_v18 = vld [vmem:[%s7571_s1 + $0x20] sm:$0xf]  ;;  %v5845_v19 = vld [vmem:[%s7571_s1 + $0x2c] sm:$0xf0] }
  0x12   :  { %324 = vmatpush.bf16.msra.mxu3 %v4377_v8  ;;  %v4361_v17 = vor.u32 %v5848_v14, %v4358_v15  ;;  %v5843_v20 = vld [vmem:[%s7571_s1 + $0x24] sm:$0xf]  ;;  %v4334_v21 = vld [vmem:[%s7571_s1 + $0x30] sm:$0xf0]  ;;  %v5844_v22 = vld [vmem:[%s7571_s1 + $0x2c] sm:$0xf]  ;;  %v4333_v24 = vor.u32 %v5845_v19, %v4332_v18 }
  0x13   :  { %v4342_v23 = vld [vmem:[%s7571_s1 + $0x38] sm:$0xf0]  ;;  %v4337_v25 = vor.u32 %v5843_v20, %v4334_v21  ;;  %v4316_v27 = vld [vmem:[%s7571_s1] sm:$0xf]  ;;  %v5841_v28 = vld [vmem:[%s7571_s1 + $0xc] sm:$0xf0] }
  0x14   :  { %238 = vmatpush.bf16.msra.mxu0 %v4349_v12  ;;  %6256 = vmatpush.bf16.msra.mxu2 %v4349_v12  ;;  %v4345_v26 = vor.u32 %v5844_v22, %v4342_v23  ;;  %v5839_v29 = vld [vmem:[%s7571_s1 + $0x4] sm:$0xf]  ;;  %v4318_v30 = vld [vmem:[%s7571_s1 + $0x10] sm:$0xf0]  ;;  %v5840_v31 = vld [vmem:[%s7571_s1 + $0xc] sm:$0xf]  ;;  %v4317_v35 = vor.u32 %v5841_v28, %v4316_v27 }
  0x15   :  { %267 = vmatpush.bf16.msra.mxu1 %v4353_v16  ;;  %v4326_v32 = vld [vmem:[%s7571_s1 + $0x18] sm:$0xf0]  ;;  %v4372_v33 = vld [vmem:[%s7571_s1 + $0x68] sm:$0xf]  ;;  %v5854_v34 = vld [vmem:[%s7571_s1 + $0x74] sm:$0xf0]  ;;  %v4321_v37 = vor.u32 %v5839_v29, %v4318_v30 }
  0x16   :  { %325 = vmatpush.bf16.msra.mxu3 %v4361_v17  ;;  %v5883_v36 = vld [vmem:[#allocation5 + $0xe4] sm:$0xf]  ;;  %v4329_v38 = vor.u32 %v5840_v31, %v4326_v32  ;;  %v6660_v40 = vld [vmem:[%s7570_s0 + $0x18] sm:$0xff]  ;;  %v4510_v41 = vld [vmem:[#allocation5 + $0xf0] sm:$0xf0]  ;;  %v4373_v42 = vor.u32 %v5854_v34, %v4372_v33  ;;  %vm220_vm0 = vcmask 523264  }
  0x17   :  { %v6655_v39 = vld [vmem:[%s7570_s0] sm:$0xff]  ;;  %v4356_v43 = vld [vmem:[%s7571_s1 + $0x48] sm:$0xf]  ;;  %v4513_v44 = vor.u32 %v5883_v36, %v4510_v41  ;;  %v5885_v46 = vld [vmem:[#allocation5 + $0xec] sm:$0xf0]  ;;  %vm4276_vm2 = vcmask 31744  }
  0x18   :  { %239 = vmatpush.bf16.msra.mxu0 %v4333_v24  ;;  %6257 = vmatpush.bf16.msra.mxu2 %v4333_v24  ;;  %v4508_v45 = vld [vmem:[#allocation5 + $0xe0] sm:$0xf]  ;;  %v5850_v47 = vld [vmem:[%s7571_s1 + $0x54] sm:$0xf0]  ;;  %v5884_v48 = vld [vmem:[#allocation5 + $0xec] sm:$0xf] }
  0x19   :  { %268 = vmatpush.bf16.msra.mxu1 %v4337_v25  ;;  %v4518_v49 = vld [vmem:[#allocation5 + $0xf8] sm:$0xf0]  ;;  %v5879_v50 = vld [vmem:[#allocation5 + $0xc4] sm:$0xf]  ;;  %v4494_v51 = vld [vmem:[#allocation5 + $0xd0] sm:$0xf0]  ;;  %v4509_v52 = vor.u32 %v5885_v46, %v4508_v45  ;;  %v4357_v54 = vor.u32 %v5850_v47, %v4356_v43 }
  0x1a   :  { %326 = vmatpush.bf16.msra.mxu3 %v4345_v26  ;;  %v4521_v53 = vor.u32 %v5884_v48, %v4518_v49  ;;  %v4492_v55 = vld [vmem:[#allocation5 + $0xc0] sm:$0xf]  ;;  %v5881_v56 = vld [vmem:[#allocation5 + $0xcc] sm:$0xf0]  ;;  %v4497_v57 = vor.u32 %v5879_v50, %v4494_v51  ;;  %v5880_v58 = vld [vmem:[#allocation5 + $0xcc] sm:$0xf] }
  0x1b   :  { %v4340_v59 = vld [vmem:[%s7571_s1 + $0x28] sm:$0xf]  ;;  %v5846_v60 = vld [vmem:[%s7571_s1 + $0x34] sm:$0xf0]  ;;  %v4502_v61 = vld [vmem:[#allocation5 + $0xd8] sm:$0xf0]  ;;  %v4493_v1 = vor.u32 %v5881_v56, %v4492_v55 }
  0x1c   :  { %240 = vmatpush.bf16.msra.mxu0 %v4317_v35  ;;  %6258 = vmatpush.bf16.msra.mxu2 %v4317_v35  ;;  %v5875_v62 = vld [vmem:[#allocation5 + $0xa4] sm:$0xf]  ;;  %v4478_v63 = vld [vmem:[#allocation5 + $0xb0] sm:$0xf0]  ;;  %v4324_v0 = vld [vmem:[%s7571_s1 + $0x8] sm:$0xf]  ;;  %v4505_v3 = vor.u32 %v5880_v58, %v4502_v61  ;;  %v4341_v4 = vor.u32 %v5846_v60, %v4340_v59 }
  0x1d   :  { %269 = vmatpush.bf16.msra.mxu1 %v4321_v37  ;;  %v4476_v2 = vld [vmem:[#allocation5 + $0xa0] sm:$0xf]  ;;  %v5877_v5 = vld [vmem:[#allocation5 + $0xac] sm:$0xf0]  ;;  %v4481_v6 = vor.u32 %v5875_v62, %v4478_v63  ;;  %v5876_v7 = vld [vmem:[#allocation5 + $0xac] sm:$0xf] }
  0x1e   :  { %327 = vmatpush.bf16.msra.mxu3 %v4329_v38  ;;  %v4486_v8 = vld [vmem:[#allocation5 + $0xb8] sm:$0xf0]  ;;  %v5842_v9 = vld [vmem:[%s7571_s1 + $0x14] sm:$0xf0]  ;;  %v5871_v10 = vld [vmem:[#allocation5 + $0x84] sm:$0xf]  ;;  %v4477_v14 = vor.u32 %v5877_v5, %v4476_v2 }
  0x1f   :  { %4378 = vmatmul.msk.bf16.vlgmr.msra.gmra.mxu0 %vm220_vm0, %v6655_v39  ;;  %4381 = vmatmul.msk.bf16.vlgmr.msra.gmra.mxu2 %vm220_vm0, %v6660_v40  ;;  %v4462_v11 = vld [vmem:[#allocation5 + $0x90] sm:$0xf0]  ;;  %v4516_v12 = vld [vmem:[#allocation5 + $0xe8] sm:$0xf]  ;;  %v5886_v13 = vld [vmem:[#allocation5 + $0xf4] sm:$0xf0]  ;;  %v4489_v17 = vor.u32 %v5876_v7, %v4486_v8  ;;  %v4325_v18 = vor.u32 %v5842_v9, %v4324_v0 }
  0x20   :  { %295 = vmatpush.bf16.msrb.mxu2 %v4373_v42  ;;  %4382 = vmatmul.msk.bf16.vlgmr.msra.gmra.mxu1 %vm220_vm0, %v6655_v39  ;;  %v4460_v15 = vld [vmem:[#allocation5 + $0x80] sm:$0xf]  ;;  %v5873_v16 = vld [vmem:[#allocation5 + $0x8c] sm:$0xf0]  ;;  %v4465_v19 = vor.u32 %v5871_v10, %v4462_v11  ;;  %v5872_v20 = vld [vmem:[#allocation5 + $0x8c] sm:$0xf]  ;;  %v4517_v22 = vor.u32 %v5886_v13, %v4516_v12 }
  0x21   :  { %593 = vmatpush.bf16.msrb.mxu1 %v4513_v44  ;;  %4390 = vmatmul.msk.bf16.vlgmr.msra.gmra.mxu3 %vm220_vm0, %v6655_v39  ;;  %v4470_v21 = vld [vmem:[#allocation5 + $0x98] sm:$0xf0]  ;;  %v4500_v23 = vld [vmem:[#allocation5 + $0xc8] sm:$0xf]  ;;  %v4461_v24 = vor.u32 %v5873_v16, %v4460_v15  ;;  %v5882_v26 = vld [vmem:[#allocation5 + $0xd4] sm:$0xf0] }
  0x22   :  { %580 = vmatpush.bf16.msrb.mxu0 %v4509_v52  ;;  %619 = vmatpush.bf16.msrb.mxu3 %v4521_v53  ;;  %v4473_v25 = vor.u32 %v5872_v20, %v4470_v21  ;;  %v4444_v27 = vld [vmem:[#allocation5 + $0x60] sm:$0xf]  ;;  %v5869_v28 = vld [vmem:[#allocation5 + $0x6c] sm:$0xf0]  ;;  %v6691_v29 = vld [vmem:[%s7570_s0 + $0x8] sm:$0xff]  ;;  %v4501_v31 = vor.u32 %v5882_v26, %v4500_v23  ;;  %v6509_v21 = vmov 0  }
  0x23   :  { %v4484_v30 = vld [vmem:[#allocation5 + $0xa8] sm:$0xf]  ;;  %v5878_v32 = vld [vmem:[#allocation5 + $0xb4] sm:$0xf0]  ;;  %v4445_v33 = vor.u32 %v5869_v28, %v4444_v27  ;;  %v4428_v34 = vld [vmem:[#allocation5 + $0x40] sm:$0xf] }
  0x24   :  { %296 = vmatpush.bf16.msrb.mxu2 %v4357_v54  ;;  %v5865_v35 = vld [vmem:[#allocation5 + $0x4c] sm:$0xf0]  ;;  %v5867_v36 = vld [vmem:[#allocation5 + $0x64] sm:$0xf]  ;;  %v4446_v37 = vld [vmem:[#allocation5 + $0x70] sm:$0xf0]  ;;  %v4485_v47 = vor.u32 %v5878_v32, %v4484_v30 }
  0x25   :  { %594 = vmatpush.bf16.msrb.mxu1 %v4497_v57  ;;  %v5868_v38 = vld [vmem:[#allocation5 + $0x6c] sm:$0xf]  ;;  %v4449_v41 = vor.u32 %v5867_v36, %v4446_v37  ;;  %v4454_v42 = vld [vmem:[#allocation5 + $0x78] sm:$0xf0]  ;;  %v4468_v43 = vld [vmem:[#allocation5 + $0x88] sm:$0xf]  ;;  %v4429_v48 = vor.u32 %v5865_v35, %v4428_v34 }
  0x26   :  { %581 = vmatpush.bf16.msrb.mxu0 %v4493_v1  ;;  %620 = vmatpush.bf16.msrb.mxu3 %v4505_v3  ;;  %v5874_v44 = vld [vmem:[#allocation5 + $0x94] sm:$0xf0]  ;;  %v4457_v45 = vor.u32 %v5868_v38, %v4454_v42  ;;  %v5863_v46 = vld [vmem:[#allocation5 + $0x44] sm:$0xf]  ;;  %v4430_v49 = vld [vmem:[#allocation5 + $0x50] sm:$0xf0] }
  0x27   :  { %v5864_v50 = vld [vmem:[#allocation5 + $0x4c] sm:$0xf]  ;;  %v4438_v51 = vld [vmem:[#allocation5 + $0x58] sm:$0xf0]  ;;  %v5861_v52 = vld [vmem:[#allocation5 + $0x2c] sm:$0xf0]  ;;  %v4433_v53 = vor.u32 %v5863_v46, %v4430_v49  ;;  %v4469_v59 = vor.u32 %v5874_v44, %v4468_v43 }
  0x28   :  { %297 = vmatpush.bf16.msrb.mxu2 %v4341_v4  ;;  %v4441_v54 = vor.u32 %v5864_v50, %v4438_v51  ;;  %v5859_v55 = vld [vmem:[#allocation5 + $0x24] sm:$0xf]  ;;  %v4414_v56 = vld [vmem:[#allocation5 + $0x30] sm:$0xf0]  ;;  %v5860_v57 = vld [vmem:[#allocation5 + $0x2c] sm:$0xf] }
  0x29   :  { %595 = vmatpush.bf16.msrb.mxu1 %v4481_v6  ;;  %v4422_v58 = vld [vmem:[#allocation5 + $0x38] sm:$0xf0]  ;;  %v4396_v61 = vld [vmem:[#allocation5] sm:$0xf]  ;;  %v5857_v62 = vld [vmem:[#allocation5 + $0xc] sm:$0xf0]  ;;  %v4417_v1 = vor.u32 %v5859_v55, %v4414_v56 }
  0x2a   :  { %582 = vmatpush.bf16.msrb.mxu0 %v4477_v14  ;;  %621 = vmatpush.bf16.msrb.mxu3 %v4489_v17  ;;  %v4452_v63 = vld [vmem:[#allocation5 + $0x68] sm:$0xf]  ;;  %v5870_v0 = vld [vmem:[#allocation5 + $0x74] sm:$0xf0]  ;;  %v4425_v2 = vor.u32 %v5860_v57, %v4422_v58  ;;  %v5855_v3 = vld [vmem:[#allocation5 + $0x4] sm:$0xf]  ;;  %v4397_v7 = vor.u32 %v5857_v62, %v4396_v61 }
  0x2b   :  { %v4398_v4 = vld [vmem:[#allocation5 + $0x10] sm:$0xf0]  ;;  %v5856_v5 = vld [vmem:[#allocation5 + $0xc] sm:$0xf]  ;;  %v4406_v6 = vld [vmem:[#allocation5 + $0x18] sm:$0xf0]  ;;  %v4453_v8 = vor.u32 %v5870_v0, %v4452_v63 }
  0x2c   :  { %298 = vmatpush.bf16.msrb.mxu2 %v4325_v18  ;;  %v4436_v9 = vld [vmem:[#allocation5 + $0x48] sm:$0xf]  ;;  %v5866_v10 = vld [vmem:[#allocation5 + $0x54] sm:$0xf0]  ;;  %v4401_v11 = vor.u32 %v5855_v3, %v4398_v4  ;;  %v4409_v12 = vor.u32 %v5856_v5, %v4406_v6  ;;  %v5837_v13 = vld [vmem:[%s7570_s0 + $0x10] sm:$0xff] }
  0x2d   :  { %596 = vmatpush.bf16.msrb.mxu1 %v4465_v19  ;;  %v4437_v14 = vor.u32 %v5866_v10, %v4436_v9  ;;  %v4420_v15 = vld [vmem:[#allocation5 + $0x28] sm:$0xf]  ;;  %v5862_v16 = vld [vmem:[#allocation5 + $0x34] sm:$0xf0]  ;;  %v4636_v58 = vld [vmem:[#allocation5 + $0xe0] sm:$0xf] }
  0x2e   :  { %583 = vmatpush.bf16.msrb.mxu0 %v4461_v24  ;;  %622 = vmatpush.bf16.msrb.mxu3 %v4473_v25  ;;  %v4421_v17 = vor.u32 %v5862_v16, %v4420_v15  ;;  %v4404_v18 = vld [vmem:[#allocation5 + $0x8] sm:$0xf]  ;;  %v5858_v19 = vld [vmem:[#allocation5 + $0x14] sm:$0xf0]  ;;  %v4638_v63 = vld [vmem:[#allocation5 + $0xf0] sm:$0xf0] }
  0x2f   :  { %4379 = vmatmul.msk.bf16.gmra.mxu0 %vm220_vm0, %v6691_v29  ;;  %4386 = vmatmul.msk.bf16.vlgmr.msrb.gmra.mxu2 %vm220_vm0, %v6655_v39  ;;  %v4412_v39 = vld [vmem:[#allocation5 + $0x20] sm:$0xf]  ;;  %v4405_v20 = vor.u32 %v5858_v19, %v4404_v18  ;;  %v4644_v0 = vld [vmem:[#allocation5 + $0xe8] sm:$0xf]  ;;  %v5916_v5 = vld [vmem:[#allocation5 + $0xec] sm:$0xf] }
  0x30   :  { %606 = vmatpush.bf16.msra.mxu2 %v4517_v22  ;;  %4383 = vmatmul.msk.bf16.gmra.mxu1 %vm220_vm0, %v6691_v29  ;;  %v4413_v60 = vor.u32 %v5861_v52, %v4412_v39  ;;  %v110_v22 = vld [vmem:[%s7572_s2] sm:$0xf]  ;;  %v4646_v6 = vld [vmem:[#allocation5 + $0xf8] sm:$0xf0]  ;;  %v4628_v15 = vld [vmem:[#allocation5 + $0xc8] sm:$0xf] }
  0x31   :  { %4391 = vmatmul.msk.bf16.gmra.mxu3 %vm220_vm0, %v6691_v29  ;;  %597 = vmatpush.bf16.msrb.mxu1 %v4449_v41  ;;  %v6727_v25 = vperm.slane %v110_v22, 0  ;;  %v6742_v32 = vperm.slane %v110_v22, 1  ;;  %v6750_v37 = vperm.slane %v110_v22, 3  ;;  %v6771_v51 = vperm.slane %v110_v22, 2  ;;  %v4620_v10 = vld [vmem:[#allocation5 + $0xc0] sm:$0xf] }
  0x32   :  { %584 = vmatpush.bf16.msrb.mxu0 %v4445_v33  ;;  %623 = vmatpush.bf16.msrb.mxu3 %v4457_v45  ;;  %v5912_v18 = vld [vmem:[#allocation5 + $0xcc] sm:$0xf]  ;;  %v4630_v19 = vld [vmem:[#allocation5 + $0xd8] sm:$0xf0] }
  0x33   :  { %v4633_v22 = vor.u32 %v5912_v18, %v4630_v19 }
  0x34   :  { %607 = vmatpush.bf16.msra.mxu2 %v4501_v31 }
  0x35   :  { %598 = vmatpush.bf16.msrb.mxu1 %v4433_v53 }
  0x36   :  { %585 = vmatpush.bf16.msrb.mxu0 %v4429_v48  ;;  %624 = vmatpush.bf16.msrb.mxu3 %v4441_v54 }
  0x38   :  { %608 = vmatpush.bf16.msra.mxu2 %v4485_v47 }
  0x39   :  { %599 = vmatpush.bf16.msrb.mxu1 %v4417_v1  ;;  %v5918_v1 = vld [vmem:[#allocation5 + $0xf4] sm:$0xf0] }
  0x3a   :  { %586 = vmatpush.bf16.msrb.mxu0 %v4413_v60  ;;  %625 = vmatpush.bf16.msrb.mxu3 %v4425_v2  ;;  %v5915_v60 = vld [vmem:[#allocation5 + $0xe4] sm:$0xf]  ;;  %v4645_v4 = vor.u32 %v5918_v1, %v4644_v0  ;;  %v5908_v1 = vld [vmem:[#allocation5 + $0xac] sm:$0xf] }
  0x3b   :  { %v4641_v3 = vor.u32 %v5915_v60, %v4638_v63 }
  0x3c   :  { %609 = vmatpush.bf16.msra.mxu2 %v4469_v59  ;;  %v5917_v59 = vld [vmem:[#allocation5 + $0xec] sm:$0xf0] }
  0x3d   :  { %600 = vmatpush.bf16.msrb.mxu1 %v4401_v11  ;;  %v4637_v62 = vor.u32 %v5917_v59, %v4636_v58  ;;  %v5913_v11 = vld [vmem:[#allocation5 + $0xcc] sm:$0xf0]  ;;  %v4612_v58 = vld [vmem:[#allocation5 + $0xa8] sm:$0xf]  ;;  %v5910_v59 = vld [vmem:[#allocation5 + $0xb4] sm:$0xf0] }
  0x3e   :  { %587 = vmatpush.bf16.msrb.mxu0 %v4397_v7  ;;  %626 = vmatpush.bf16.msrb.mxu3 %v4409_v12  ;;  %v5911_v12 = vld [vmem:[#allocation5 + $0xc4] sm:$0xf]  ;;  %v4613_v0 = vor.u32 %v5910_v59, %v4612_v58  ;;  %v5900_v58 = vld [vmem:[#allocation5 + $0x6c] sm:$0xf]  ;;  %v4582_v59 = vld [vmem:[#allocation5 + $0x78] sm:$0xf0] }
  0x3f   :  { %4380 = vmatmul.msk.bf16.gmra.mxu0 %vm220_vm0, %v5837_v13  ;;  %4387 = vmatmul.msk.bf16.gmra.mxu2 %vm220_vm0, %v6691_v29 }
  0x40   :  { %610 = vmatpush.bf16.msra.mxu2 %v4453_v8  ;;  %4384 = vmatmul.msk.bf16.gmra.mxu1 %vm220_vm0, %v5837_v13  ;;  %v4649_v8 = vor.u32 %v5916_v5, %v4646_v6  ;;  %v4588_v6 = vld [vmem:[#allocation5 + $0x80] sm:$0xf] }
  0x41   :  { %4392 = vmatmul.msk.bf16.gmra.mxu3 %vm220_vm0, %v5837_v13  ;;  %868 = vmatpush.bf16.msra.mxu1 %v4641_v3  ;;  %v4614_v3 = vld [vmem:[#allocation5 + $0xb8] sm:$0xf0] }
  0x42   :  { %855 = vmatpush.bf16.msra.mxu0 %v4637_v62  ;;  %894 = vmatpush.bf16.msra.mxu3 %v4649_v8  ;;  %v4617_v5 = vor.u32 %v5908_v1, %v4614_v3  ;;  %v5903_v8 = vld [vmem:[#allocation5 + $0x84] sm:$0xf]  ;;  %v4556_v1 = vld [vmem:[#allocation5 + $0x40] sm:$0xf]  ;;  %v5897_v3 = vld [vmem:[#allocation5 + $0x4c] sm:$0xf0] }
  0x44   :  { %611 = vmatpush.bf16.msra.mxu2 %v4437_v14  ;;  %v4622_v14 = vld [vmem:[#allocation5 + $0xd0] sm:$0xf0] }
  0x45   :  { %v4625_v16 = vor.u32 %v5911_v12, %v4622_v14  ;;  %v4596_v12 = vld [vmem:[#allocation5 + $0x88] sm:$0xf] }
  0x46   :  { %895 = vmatpush.bf16.msra.mxu3 %v4633_v22  ;;  %v5901_v22 = vld [vmem:[#allocation5 + $0x6c] sm:$0xf0] }
  0x47   :  { %869 = vmatpush.bf16.msra.mxu1 %v4625_v16  ;;  %v5904_v16 = vld [vmem:[#allocation5 + $0x8c] sm:$0xf] }
  0x48   :  { %612 = vmatpush.bf16.msra.mxu2 %v4421_v17  ;;  %v5914_v17 = vld [vmem:[#allocation5 + $0xd4] sm:$0xf0] }
  0x4a   :  { %896 = vmatpush.bf16.msra.mxu3 %v4617_v5  ;;  %v5895_v5 = vld [vmem:[#allocation5 + $0x44] sm:$0xf] }
  0x4c   :  { %613 = vmatpush.bf16.msra.mxu2 %v4405_v20  ;;  %v4629_v20 = vor.u32 %v5914_v17, %v4628_v15  ;;  %v4598_v17 = vld [vmem:[#allocation5 + $0x98] sm:$0xf0] }
  0x4d   :  { %v4601_v18 = vor.u32 %v5904_v16, %v4598_v17  ;;  %v4540_v17 = vld [vmem:[#allocation5 + $0x20] sm:$0xf] }
  0x4f   :  { %4388 = vmatmul.msk.bf16.gmra.mxu2 %vm220_vm0, %v5837_v13  ;;  %588 = vmatmul.bf16.vlgmr.msrb.gmra.mxu0 %v6509_v21  ;;  %v4621_v13 = vor.u32 %v5913_v11, %v4620_v10  ;;  %v4590_v11 = vld [vmem:[#allocation5 + $0x90] sm:$0xf0] }
  0x50   :  { %4385 = vmatmul.msk.bf16.gmra.mxu1 %vm220_vm0, %v6660_v40  ;;  %881 = vmatpush.bf16.msrb.mxu2 %v4645_v4  ;;  %v4593_v14 = vor.u32 %v5903_v8, %v4590_v11  ;;  %v4564_v8 = vld [vmem:[#allocation5 + $0x48] sm:$0xf] }
  0x51   :  { %4393 = vmatmul.msk.bf16.gmra.mxu3 %vm220_vm0, %v6660_v40  ;;  %856 = vmatpush.bf16.msra.mxu0 %v4621_v13  ;;  %v5906_v13 = vld [vmem:[#allocation5 + $0x94] sm:$0xf0] }
  0x52   :  { %v4597_v15 = vor.u32 %v5906_v13, %v4596_v12  ;;  %897 = vmatpush.bf16.msra.mxu3 %v4601_v18  ;;  %v5893_v18 = vld [vmem:[#allocation5 + $0x2c] sm:$0xf0] }
  0x54   :  { %882 = vmatpush.bf16.msrb.mxu2 %v4629_v20  ;;  %v4572_v20 = vld [vmem:[#allocation5 + $0x60] sm:$0xf] }
  0x58   :  { %883 = vmatpush.bf16.msrb.mxu2 %v4613_v0  ;;  %v4585_v0 = vor.u32 %v5900_v58, %v4582_v59 }
  0x5a   :  { %898 = vmatpush.bf16.msra.mxu3 %v4585_v0  ;;  %v5892_v0 = vld [vmem:[#allocation5 + $0x2c] sm:$0xf] }
  0x5c   :  { %884 = vmatpush.bf16.msrb.mxu2 %v4597_v15  ;;  %v4566_v15 = vld [vmem:[#allocation5 + $0x58] sm:$0xf0] }
  0x5f   :  { %4389 = vmatmul.msk.bf16.gmra.mxu2 %vm220_vm0, %v6660_v40 }
  0x60   :  { %601 = vmatmul.bf16.vlgmr.msrb.gmra.mxu1 %v6509_v21 }
  0x61   :  { %627 = vmatmul.bf16.vlgmr.msrb.gmra.mxu3 %v6509_v21 }
  0x6f   :  { %614 = vmatmul.bf16.vlgmr.msra.gmra.mxu2 %v6509_v21 }
  0x9c   :  { %v6723_v23 = vpop.f32.mrf.mxu0 }
  0x9d   :  { %v6725_v24 = vpop.f32.mrf.mxu1 }
  0x9e   :  { %v272_v11 = vadd.f32 %v6725_v24, %v6742_v32 }
  0xa2   :  { %v257_v26 = vpop.f32.mrf.mxu2 }
  0xa3   :  { %v6730_v27 = vadd.f32 %v257_v26, %v6727_v25 }
  0xa4   :  { %v6732_v40 = vpop.f32.mrf.mxu3  ;;  %v6734_v28 = vpop.f32.mrf.mxu0 }
  0xa5   :  { %v6736_v29 = vpop.f32.mrf.mxu1 }
  0xaa   :  { %v6738_v30 = vpop.f32.mrf.mxu2 }
  0xac   :  { %v6740_v31 = vpop.f32.mrf.mxu3  ;;  %v247_v33 = vpop.f32.mrf.mxu0 }
  0xad   :  { %v6745_v34 = vadd.f32 %v247_v33, %v6727_v25  ;;  %v276_v35 = vpop.f32.mrf.mxu1  ;;  %v4604_v33 = vld [vmem:[#allocation5 + $0xa0] sm:$0xf] }
  0xae   :  { %v6748_v36 = vadd.f32 %v276_v35, %v6742_v32  ;;  %v5909_v35 = vld [vmem:[#allocation5 + $0xac] sm:$0xf0] }
  0xb2   :  { %v6752_v38 = vpop.f32.mrf.mxu2 }
  0xb4   :  { %v334_v41 = vpop.f32.mrf.mxu3  ;;  %v6757_v43 = vpop.f32.mrf.mxu0 }
  0xb5   :  { %v6755_v42 = vadd.f32 %v334_v41, %v6750_v37  ;;  %v6759_v44 = vpop.f32.mrf.mxu1  ;;  %v5907_v41 = vld [vmem:[#allocation5 + $0xa4] sm:$0xf] }
  0xba   :  { %v6761_v45 = vpop.f32.mrf.mxu2 }
  0xbc   :  { %v6763_v46 = vpop.f32.mrf.mxu3  ;;  %v252_v47 = vpop.f32.mrf.mxu0 }
  0xbd   :  { %v6766_v48 = vadd.f32 %v252_v47, %v6727_v25  ;;  %v281_v49 = vpop.f32.mrf.mxu1 }
  0xbe   :  { %v6769_v50 = vadd.f32 %v281_v49, %v6742_v32 }
  0xc2   :  { %v305_v39 = vpop.f32.mrf.mxu2 }
  0xc3   :  { %v6774_v52 = vadd.f32 %v305_v39, %v6771_v51  ;;  %v4605_v39 = vor.u32 %v5909_v35, %v4604_v33  ;;  %v4573_v33 = vor.u32 %v5901_v22, %v4572_v20  ;;  %v5899_v35 = vld [vmem:[#allocation5 + $0x64] sm:$0xf]  ;;  %v243_v22 = vadd.f32 %v6723_v23, %v6727_v25  ;;  %v5889_v23 = vld [vmem:[#allocation5 + $0xc] sm:$0xf0] }
  0xc4   :  { %v339_v53 = vpop.f32.mrf.mxu3  ;;  %v6779_v55 = vpop.f32.mrf.mxu0  ;;  %v5891_v20 = vld [vmem:[#allocation5 + $0x24] sm:$0xf] }
  0xc5   :  { %v6777_v54 = vadd.f32 %v339_v53, %v6750_v37  ;;  %v6781_v56 = vpop.f32.mrf.mxu1  ;;  %v4606_v53 = vld [vmem:[#allocation5 + $0xb0] sm:$0xf0]  ;;  %857 = vmatpush.bf16.msra.mxu0 %v4605_v39 }
  0xc6   :  { %v4609_v63 = vor.u32 %v5907_v41, %v4606_v53  ;;  %v4574_v41 = vld [vmem:[#allocation5 + $0x70] sm:$0xf0]  ;;  %v5902_v53 = vld [vmem:[#allocation5 + $0x74] sm:$0xf0] }
  0xc7   :  { %v4577_v39 = vor.u32 %v5899_v35, %v4574_v41  ;;  %v4541_v41 = vor.u32 %v5893_v18, %v4540_v17 }
  0xc8   :  { %870 = vmatpush.bf16.msra.mxu1 %v4609_v63 }
  0xca   :  { %v6783_v57 = vpop.f32.mrf.mxu2 }
  0xcc   :  { %v6785_v61 = vpop.f32.mrf.mxu3  ;;  %v6787_v2 = vpop.f32.mrf.mxu0  ;;  %871 = vmatpush.bf16.msra.mxu1 %v4593_v14  ;;  %v5896_v14 = vld [vmem:[#allocation5 + $0x4c] sm:$0xf] }
  0xcd   :  { %v286_v7 = vpop.f32.mrf.mxu1  ;;  %v4569_v16 = vor.u32 %v5896_v14, %v4566_v15  ;;  %v5888_v14 = vld [vmem:[#allocation5 + $0xc] sm:$0xf]  ;;  %v4534_v15 = vld [vmem:[#allocation5 + $0x18] sm:$0xf0] }
  0xce   :  { %v6790_v9 = vadd.f32 %v286_v7, %v6742_v32  ;;  %v5905_v7 = vld [vmem:[#allocation5 + $0x8c] sm:$0xf0]  ;;  %v4537_v18 = vor.u32 %v5888_v14, %v4534_v15  ;;  %v4764_v14 = vld [vmem:[#allocation5 + $0xe0] sm:$0xf]  ;;  %v5947_v15 = vld [vmem:[#allocation5 + $0xe4] sm:$0xf] }
  0xcf   :  { %v4589_v10 = vor.u32 %v5905_v7, %v4588_v6  ;;  %v4557_v6 = vor.u32 %v5897_v3, %v4556_v1  ;;  %v4558_v7 = vld [vmem:[#allocation5 + $0x50] sm:$0xf0]  ;;  %899 = vmatpush.bf16.msra.mxu3 %v4569_v16  ;;  %v4550_v1 = vld [vmem:[#allocation5 + $0x38] sm:$0xf0]  ;;  %v4524_v3 = vld [vmem:[#allocation5] sm:$0xf] }
  0xd0   :  { %872 = vmatpush.bf16.msra.mxu1 %v4577_v39  ;;  %v4561_v12 = vor.u32 %v5895_v5, %v4558_v7  ;;  %v4548_v39 = vld [vmem:[#allocation5 + $0x28] sm:$0xf]  ;;  %v4553_v5 = vor.u32 %v5892_v0, %v4550_v1  ;;  %v632_v7 = vadd.f32 %v6787_v2, %v243_v22  ;;  %v330_v22 = vadd.f32 %v6732_v40, %v6750_v37 }
  0xd1   :  { %858 = vmatpush.bf16.msra.mxu0 %v4589_v10  ;;  %v5898_v10 = vld [vmem:[#allocation5 + $0x54] sm:$0xf0] }
  0xd2   :  { %v310_v26 = vpop.f32.mrf.mxu2  ;;  %v4565_v13 = vor.u32 %v5898_v10, %v4564_v8  ;;  %v4525_v10 = vor.u32 %v5889_v23, %v4524_v3 }
  0xd3   :  { %v6793_v47 = vadd.f32 %v310_v26, %v6771_v51  ;;  %900 = vmatpush.bf16.msra.mxu3 %v4553_v5 }
  0xd4   :  { %v344_v49 = vpop.f32.mrf.mxu3  ;;  %v591_v62 = vpop.f32.mrf.mxu0  ;;  %873 = vmatpush.bf16.msra.mxu1 %v4561_v12  ;;  %v5890_v12 = vld [vmem:[#allocation5 + $0x14] sm:$0xf0] }
  0xd5   :  { %v6796_v60 = vadd.f32 %v344_v49, %v6750_v37  ;;  %v6798_v4 = vpop.f32.mrf.mxu1  ;;  %v4580_v49 = vld [vmem:[#allocation5 + $0x68] sm:$0xf]  ;;  %859 = vmatpush.bf16.msra.mxu0 %v4573_v33 }
  0xd6   :  { %v4581_v63 = vor.u32 %v5902_v53, %v4580_v49  ;;  %v4542_v49 = vld [vmem:[#allocation5 + $0x30] sm:$0xf0]  ;;  %v5894_v53 = vld [vmem:[#allocation5 + $0x34] sm:$0xf0] }
  0xd7   :  { %v4545_v59 = vor.u32 %v5891_v20, %v4542_v49  ;;  %v636_v20 = vmul.f32 0.5, %v632_v7  ;;  %901 = vmatpush.bf16.msra.mxu3 %v4537_v18  ;;  %v4772_v18 = vld [vmem:[#allocation5 + $0xe8] sm:$0xf] }
  0xd8   :  { %885 = vmatpush.bf16.msrb.mxu2 %v4581_v63  ;;  %v4549_v63 = vor.u32 %v5894_v53, %v4548_v39 }
  0xd9   :  { %860 = vmatpush.bf16.msra.mxu0 %v4557_v6  ;;  %v4526_v6 = vld [vmem:[#allocation5 + $0x10] sm:$0xf0]  ;;  %874 = vmatpush.bf16.msra.mxu1 %v4545_v59 }
  0xda   :  { %v6800_v19 = vpop.f32.mrf.mxu2 }
  0xdc   :  { %v6802_v26 = vpop.f32.mrf.mxu3  ;;  %886 = vmatpush.bf16.msrb.mxu2 %v4565_v13 }
  0xdd   :  { %v602_v62 = vpop.f32.mrf.mxu1  ;;  %861 = vmatpush.bf16.msra.mxu0 %v4541_v41 }
  0xde   :  { %v633_v33 = vadd.f32 %v602_v62, %v272_v11  ;;  %v5887_v62 = vld [vmem:[#allocation5 + $0x4] sm:$0xf]  ;;  %v4532_v11 = vld [vmem:[#allocation5 + $0x8] sm:$0xf] }
  0xdf   :  { %v4529_v13 = vor.u32 %v5887_v62, %v4526_v6  ;;  %v4533_v17 = vor.u32 %v5890_v12, %v4532_v11 }
  0xe0   :  { %v640_v16 = vmul.f32 0.5, %v633_v33  ;;  %887 = vmatpush.bf16.msrb.mxu2 %v4549_v63  ;;  %v301_v33 = vadd.f32 %v6752_v38, %v6771_v51 }
  0xe1   :  { %862 = vmatpush.bf16.msra.mxu0 %v4525_v10  ;;  %875 = vmatpush.bf16.msra.mxu1 %v4529_v13  ;;  %v5949_v13 = vld [vmem:[#allocation5 + $0xec] sm:$0xf0] }
  0xe2   :  { %v315_v35 = vpop.f32.mrf.mxu2  ;;  %6266 = vtanh.f32 %v640_v16  ;;  %v4765_v16 = vor.u32 %v5949_v13, %v4764_v14  ;;  %v4740_v14 = vld [vmem:[#allocation5 + $0xa8] sm:$0xf]  ;;  %v5942_v13 = vld [vmem:[#allocation5 + $0xb4] sm:$0xf0] }
  0xe3   :  { %v6809_v24 = vadd.f32 %v315_v35, %v6771_v51  ;;  %6268 = vtanh.f32 %v636_v20  ;;  %v5950_v20 = vld [vmem:[#allocation5 + $0xf4] sm:$0xf0] }
  0xe4   :  { %v628_v58 = vpop.f32.mrf.mxu3  ;;  %888 = vmatpush.bf16.msrb.mxu2 %v4533_v17  ;;  %v4766_v17 = vld [vmem:[#allocation5 + $0xf0] sm:$0xf0] }
  0xe5   :  { %v604_v8 = vpop.f32.mrf.mxu1  ;;  %v635_v41 = vadd.f32 %v628_v58, %v330_v22  ;;  %v4773_v22 = vor.u32 %v5950_v20, %v4772_v18  ;;  %1131 = vmatpush.bf16.msrb.mxu0 %v4765_v16  ;;  %v4741_v16 = vor.u32 %v5942_v13, %v4740_v14  ;;  %v4742_v18 = vld [vmem:[#allocation5 + $0xb8] sm:$0xf0] }
  0xe6   :  { %v4710_v14 = vld [vmem:[#allocation5 + $0x78] sm:$0xf0] }
  0xe7   :  { %v645_v0 = vmul.f32 0.5, %v635_v41  ;;  %v5948_v41 = vld [vmem:[#allocation5 + $0xec] sm:$0xf] }
  0xe8   :  { %v6267_v49 = vpop.eup %6266  ;;  %1157 = vmatpush.bf16.msra.mxu2 %v4773_v22  ;;  %v5937_v22 = vld [vmem:[#allocation5 + $0x8c] sm:$0xf0] }
  0xe9   :  { %v6269_v53 = vpop.eup %6268  ;;  %v642_v63 = vmul.f32 0.5, %v6267_v49  ;;  %v4774_v49 = vld [vmem:[#allocation5 + $0xf8] sm:$0xf0] }
  0xea   :  { %v6812_v35 = vpop.f32.mrf.mxu2  ;;  %v638_v1 = vmul.f32 0.5, %v6269_v53  ;;  %v5945_v53 = vld [vmem:[#allocation5 + $0xcc] sm:$0xf0] }
  0xeb   :  { %v643_v3 = vadd.f32 0.5, %v642_v63 }
  0xec   :  { %v630_v2 = vpop.f32.mrf.mxu3  ;;  %v639_v5 = vadd.f32 0.5, %v638_v1  ;;  %v4756_v1 = vld [vmem:[#allocation5 + $0xc8] sm:$0xf] }
  0xed   :  { %v649_v6 = vmul.f32 0.0, %v643_v3  ;;  %v4769_v2 = vor.u32 %v5947_v15, %v4766_v17  ;;  %v5946_v3 = vld [vmem:[#allocation5 + $0xd4] sm:$0xf0]  ;;  %v5940_v17 = vld [vmem:[#allocation5 + $0xac] sm:$0xf] }
  0xee   :  { %v4745_v20 = vor.u32 %v5940_v17, %v4742_v18  ;;  %v5927_v17 = vld [vmem:[#allocation5 + $0x44] sm:$0xf] }
  0xef   :  { %1144 = vmatpush.bf16.msrb.mxu1 %v4769_v2  ;;  %v4716_v2 = vld [vmem:[#allocation5 + $0x80] sm:$0xf] }
  0xf2   :  { %v615_v39 = vpop.f32.mrf.mxu2 }
  0xf3   :  { %v634_v59 = vadd.f32 %v615_v39, %v301_v33  ;;  %v4777_v33 = vor.u32 %v5948_v41, %v4774_v49  ;;  %v4748_v39 = vld [vmem:[#allocation5 + $0xc0] sm:$0xf]  ;;  %v5935_v41 = vld [vmem:[#allocation5 + $0x84] sm:$0xf]  ;;  %v4717_v49 = vor.u32 %v5937_v22, %v4716_v2  ;;  %v4692_v2 = vld [vmem:[#allocation5 + $0x48] sm:$0xf] }
  0xf4   :  { %v4749_v63 = vor.u32 %v5945_v53, %v4748_v39  ;;  %v4724_v39 = vld [vmem:[#allocation5 + $0x88] sm:$0xf]  ;;  %v5938_v53 = vld [vmem:[#allocation5 + $0x94] sm:$0xf0] }
  0xf5   :  { %6270 = vtanh.f32 %v634_v59  ;;  %v5943_v59 = vld [vmem:[#allocation5 + $0xc4] sm:$0xf]  ;;  %1170 = vmatpush.bf16.msrb.mxu3 %v4777_v33  ;;  %v4718_v33 = vld [vmem:[#allocation5 + $0x90] sm:$0xf0]  ;;  %v5930_v22 = vld [vmem:[#allocation5 + $0x54] sm:$0xf0] }
  0xf6   :  { %6272 = vtanh.f32 %v645_v0  ;;  %v4750_v0 = vld [vmem:[#allocation5 + $0xd0] sm:$0xf0]  ;;  %1132 = vmatpush.bf16.msrb.mxu0 %v4749_v63  ;;  %v4725_v63 = vor.u32 %v5938_v53, %v4724_v39  ;;  %v4694_v39 = vld [vmem:[#allocation5 + $0x58] sm:$0xf0] }
  0xfa   :  { %v617_v23 = vpop.f32.mrf.mxu2 }
  0xfb   :  { %v6271_v62 = vpop.eup %6270  ;;  %v4757_v23 = vor.u32 %v5946_v3, %v4756_v1  ;;  %v4726_v1 = vld [vmem:[#allocation5 + $0x98] sm:$0xf0] }
  0xfc   :  { %v650_v7 = vmul.f32 %v6271_v62, %v639_v5  ;;  %v6273_v40 = vpop.eup %6272  ;;  %v4753_v5 = vor.u32 %v5943_v59, %v4750_v0  ;;  %v5944_v62 = vld [vmem:[#allocation5 + $0xcc] sm:$0xf]  ;;  %v4721_v59 = vor.u32 %v5935_v41, %v4718_v33 }
  0xfd   :  { %v647_v38 = vmul.f32 0.5, %v6273_v40  ;;  %1158 = vmatpush.bf16.msra.mxu2 %v4757_v23  ;;  %v4732_v40 = vld [vmem:[#allocation5 + $0xa0] sm:$0xf]  ;;  %v5936_v0 = vld [vmem:[#allocation5 + $0x8c] sm:$0xf] }
  0xfe   :  { %v6818_v58 = vadd.f32 %v650_v7, %v649_v6  ;;  %v4758_v6 = vld [vmem:[#allocation5 + $0xd8] sm:$0xf0]  ;;  %1145 = vmatpush.bf16.msrb.mxu1 %v4753_v5  ;;  %v4729_v3 = vor.u32 %v5936_v0, %v4726_v1  ;;  %v4700_v5 = vld [vmem:[#allocation5 + $0x60] sm:$0xf]  ;;  %v5933_v23 = vld [vmem:[#allocation5 + $0x6c] sm:$0xf0] }
  0xff   :  { %v648_v8 = vadd.f32 0.5, %v647_v38  ;;  %v4761_v7 = vor.u32 %v5944_v62, %v4758_v6  ;;  %v5941_v38 = vld [vmem:[#allocation5 + $0xac] sm:$0xf0]  ;;  %v5931_v62 = vld [vmem:[#allocation5 + $0x64] sm:$0xf]  ;;  %v4701_v6 = vor.u32 %v5933_v23, %v4700_v5 }
 0x100   :  { %6274 = vtanh.f32 %v6818_v58  ;;  %v5928_v33 = vld [vmem:[#allocation5 + $0x4c] sm:$0xf]  ;;  %v5923_v0 = vld [vmem:[#allocation5 + $0x24] sm:$0xf]  ;;  %v4676_v5 = vld [vmem:[#allocation5 + $0x28] sm:$0xf] }
 0x101   :  { %1171 = vmatpush.bf16.msrb.mxu3 %v4761_v7  ;;  %1159 = vmatpush.bf16.msra.mxu2 %v4741_v16  ;;  %v4702_v7 = vld [vmem:[#allocation5 + $0x70] sm:$0xf0]  ;;  %v5929_v16 = vld [vmem:[#allocation5 + $0x4c] sm:$0xf0]  ;;  %v4697_v53 = vor.u32 %v5928_v33, %v4694_v39  ;;  %v5926_v23 = vld [vmem:[#allocation5 + $0x34] sm:$0xf0] }
 0x105   :  { %1172 = vmatpush.bf16.msrb.mxu3 %v4745_v20  ;;  %1160 = vmatpush.bf16.msra.mxu2 %v4725_v63  ;;  %v4686_v20 = vld [vmem:[#allocation5 + $0x50] sm:$0xf0]  ;;  %v5925_v63 = vld [vmem:[#allocation5 + $0x2c] sm:$0xf0] }
 0x106   :  { %v6275_v10 = vpop.eup %6274  ;;  %v4689_v41 = vor.u32 %v5927_v17, %v4686_v20  ;;  %v5920_v20 = vld [vmem:[#allocation5 + $0xc] sm:$0xf] }
 0x107   :  { %v6821_v11 = vmul.f32 %v6275_v10, %v648_v8  ;;  %v5939_v8 = vld [vmem:[#allocation5 + $0xa4] sm:$0xf]  ;;  %v4733_v10 = vor.u32 %v5941_v38, %v4732_v40  ;;  %v4708_v40 = vld [vmem:[#allocation5 + $0x68] sm:$0xf]  ;;  %v5934_v38 = vld [vmem:[#allocation5 + $0x74] sm:$0xf0] }
 0x109   :  { %v662_v12 = vpack.c.bf16 %v6821_v11, %v6821_v11  ;;  %1133 = vmatpush.bf16.msrb.mxu0 %v4733_v10  ;;  %1173 = vmatpush.bf16.msrb.mxu3 %v4729_v3  ;;  %v4709_v10 = vor.u32 %v5934_v38, %v4708_v40  ;;  %v4670_v3 = vld [vmem:[#allocation5 + $0x30] sm:$0xf0]  ;;  %v4678_v40 = vld [vmem:[#allocation5 + $0x38] sm:$0xf0] }
 0x10b   :  { %863 = vmatmul.bf16.vlgmr.msra.gmra.mxu0 %v662_v12  ;;  %876 = vmatmul.bf16.vlgmr.msra.gmra.mxu1 %v662_v12 }
 0x10c   :  { %889 = vmatmul.bf16.vlgmr.msrb.gmra.mxu2 %v662_v12  ;;  %902 = vmatmul.bf16.vlgmr.msra.gmra.mxu3 %v662_v12  ;;  %v4734_v12 = vld [vmem:[#allocation5 + $0xb0] sm:$0xf0] }
 0x10d   :  { %v4737_v15 = vor.u32 %v5939_v8, %v4734_v12  ;;  %1134 = vmatpush.bf16.msrb.mxu0 %v4717_v49  ;;  %v4705_v8 = vor.u32 %v5931_v62, %v4702_v7  ;;  %v5932_v12 = vld [vmem:[#allocation5 + $0x6c] sm:$0xf]  ;;  %1161 = vmatpush.bf16.msra.mxu2 %v4709_v10  ;;  %v4693_v49 = vor.u32 %v5930_v22, %v4692_v2  ;;  %v5921_v10 = vld [vmem:[#allocation5 + $0xc] sm:$0xf0]  ;;  %v4662_v2 = vld [vmem:[#allocation5 + $0x18] sm:$0xf0] }
 0x10e   :  { %v4713_v13 = vor.u32 %v5932_v12, %v4710_v14  ;;  %v4673_v62 = vor.u32 %v5923_v0, %v4670_v3  ;;  %v5924_v7 = vld [vmem:[#allocation5 + $0x2c] sm:$0xf]  ;;  %v5919_v12 = vld [vmem:[#allocation5 + $0x4] sm:$0xf]  ;;  %v4665_v22 = vor.u32 %v5920_v20, %v4662_v2  ;;  %v303_v3 = vadd.f32 %v6761_v45, %v6771_v51 }
 0x10f   :  { %1146 = vmatpush.bf16.msrb.mxu1 %v4737_v15  ;;  %v4684_v15 = vld [vmem:[#allocation5 + $0x40] sm:$0xf]  ;;  %v4681_v38 = vor.u32 %v5924_v7, %v4678_v40 }
 0x110   :  { %1174 = vmatpush.bf16.msrb.mxu3 %v4713_v13  ;;  %v4685_v18 = vor.u32 %v5929_v16, %v4684_v15  ;;  %v4654_v13 = vld [vmem:[#allocation5 + $0x10] sm:$0xf0]  ;;  %v4660_v15 = vld [vmem:[#allocation5 + $0x8] sm:$0xf]  ;;  %v5922_v16 = vld [vmem:[#allocation5 + $0x14] sm:$0xf0] }
 0x111   :  { %1135 = vmatpush.bf16.msrb.mxu0 %v4701_v6  ;;  %1162 = vmatpush.bf16.msra.mxu2 %v4693_v49  ;;  %v4677_v6 = vor.u32 %v5926_v23, %v4676_v5  ;;  %v4657_v17 = vor.u32 %v5919_v12, %v4654_v13  ;;  %v274_v49 = vadd.f32 %v6736_v29, %v6742_v32 }
 0x113   :  { %1147 = vmatpush.bf16.msrb.mxu1 %v4721_v59  ;;  %v4668_v59 = vld [vmem:[#allocation5 + $0x20] sm:$0xf] }
 0x114   :  { %1175 = vmatpush.bf16.msrb.mxu3 %v4697_v53  ;;  %v4669_v1 = vor.u32 %v5925_v63, %v4668_v59 }
 0x115   :  { %1136 = vmatpush.bf16.msrb.mxu0 %v4685_v18  ;;  %1163 = vmatpush.bf16.msra.mxu2 %v4677_v6  ;;  %v4661_v18 = vor.u32 %v5922_v16, %v4660_v15 }
 0x117   :  { %1148 = vmatpush.bf16.msrb.mxu1 %v4705_v8  ;;  %v4652_v8 = vld [vmem:[#allocation5] sm:$0xf] }
 0x118   :  { %1176 = vmatpush.bf16.msrb.mxu3 %v4681_v38  ;;  %v4653_v14 = vor.u32 %v5921_v10, %v4652_v8 }
 0x119   :  { %1137 = vmatpush.bf16.msrb.mxu0 %v4669_v1  ;;  %1164 = vmatpush.bf16.msra.mxu2 %v4661_v18  ;;  %v332_v1 = vadd.f32 %v6740_v31, %v6750_v37 }
 0x11b   :  { %1149 = vmatpush.bf16.msrb.mxu1 %v4689_v41  ;;  %v245_v41 = vadd.f32 %v6734_v28, %v6727_v25 }
 0x11c   :  { %1177 = vmatpush.bf16.msrb.mxu3 %v4665_v22 }
 0x11d   :  { %1138 = vmatpush.bf16.msrb.mxu0 %v4653_v14 }
 0x11f   :  { %1150 = vmatpush.bf16.msrb.mxu1 %v4673_v62 }
 0x123   :  { %1151 = vmatpush.bf16.msrb.mxu1 %v4657_v17 }
 0x188   :  { %v864_v33 = vpop.f32.mrf.mxu0  ;;  %v877_v39 = vpop.f32.mrf.mxu1 }
 0x189   :  { %v907_v53 = vadd.f32 %v864_v33, %v245_v41  ;;  %v908_v59 = vadd.f32 %v877_v39, %v274_v49  ;;  %v4892_v33 = vld [vmem:[#allocation5 + $0xe0] sm:$0xf]  ;;  %v5979_v39 = vld [vmem:[#allocation5 + $0xe4] sm:$0xf] }
 0x18b   :  { %v911_v63 = vmul.f32 0.5, %v907_v53  ;;  %v915_v0 = vmul.f32 0.5, %v908_v59  ;;  %v4894_v59 = vld [vmem:[#allocation5 + $0xf0] sm:$0xf0] }
 0x18d   :  { %6276 = vtanh.f32 %v911_v63  ;;  %v4900_v63 = vld [vmem:[#allocation5 + $0xe8] sm:$0xf] }
 0x18e   :  { %6278 = vtanh.f32 %v915_v0  ;;  %v5982_v0 = vld [vmem:[#allocation5 + $0xf4] sm:$0xf0] }
 0x18f   :  { %v890_v5 = vpop.f32.mrf.mxu2  ;;  %v903_v28 = vpop.f32.mrf.mxu3 }
 0x190   :  { %v909_v23 = vadd.f32 %v890_v5, %v303_v3  ;;  %v910_v62 = vadd.f32 %v903_v28, %v332_v1  ;;  %v866_v29 = vpop.f32.mrf.mxu0  ;;  %v879_v6 = vpop.f32.mrf.mxu1  ;;  %v4897_v1 = vor.u32 %v5979_v39, %v4894_v59  ;;  %v4901_v3 = vor.u32 %v5982_v0, %v4900_v63  ;;  %v5980_v5 = vld [vmem:[#allocation5 + $0xec] sm:$0xf]  ;;  %v4902_v28 = vld [vmem:[#allocation5 + $0xf8] sm:$0xf0]  ;;  %v4844_v59 = vld [vmem:[#allocation5 + $0x80] sm:$0xf] }
 0x191   :  { %v5977_v29 = vld [vmem:[#allocation5 + $0xcc] sm:$0xf0]  ;;  %v5975_v6 = vld [vmem:[#allocation5 + $0xc4] sm:$0xf]  ;;  %v4870_v39 = vld [vmem:[#allocation5 + $0xb8] sm:$0xf0] }
 0x192   :  { %6280 = vtanh.f32 %v909_v23  ;;  %v920_v7 = vmul.f32 0.5, %v910_v62  ;;  %v4905_v23 = vor.u32 %v5980_v5, %v4902_v28  ;;  %1420 = vmatpush.bf16.msra.mxu1 %v4897_v1  ;;  %1433 = vmatpush.bf16.msrb.mxu2 %v4901_v3  ;;  %v4876_v62 = vld [vmem:[#allocation5 + $0xc0] sm:$0xf]  ;;  %v5969_v63 = vld [vmem:[#allocation5 + $0x8c] sm:$0xf0] }
 0x193   :  { %v6277_v40 = vpop.eup %6276  ;;  %v5967_v0 = vld [vmem:[#allocation5 + $0x84] sm:$0xf]  ;;  %v4845_v1 = vor.u32 %v5969_v63, %v4844_v59  ;;  %v4846_v3 = vld [vmem:[#allocation5 + $0x90] sm:$0xf0]  ;;  %v4852_v5 = vld [vmem:[#allocation5 + $0x88] sm:$0xf] }
 0x194   :  { %v6279_v38 = vpop.eup %6278  ;;  %v913_v8 = vmul.f32 0.5, %v6277_v40  ;;  %6282 = vtanh.f32 %v920_v7  ;;  %1446 = vmatpush.bf16.msra.mxu3 %v4905_v23  ;;  %v4877_v7 = vor.u32 %v5977_v29, %v4876_v62  ;;  %v4878_v40 = vld [vmem:[#allocation5 + $0xd0] sm:$0xf0]  ;;  %v5970_v28 = vld [vmem:[#allocation5 + $0x94] sm:$0xf0]  ;;  %v4849_v23 = vor.u32 %v5967_v0, %v4846_v3 }
 0x195   :  { %v917_v10 = vmul.f32 0.5, %v6279_v38  ;;  %v4884_v38 = vld [vmem:[#allocation5 + $0xc8] sm:$0xf]  ;;  %v4853_v62 = vor.u32 %v5970_v28, %v4852_v5  ;;  %v5968_v29 = vld [vmem:[#allocation5 + $0x8c] sm:$0xf] }
 0x196   :  { %v914_v12 = vadd.f32 0.5, %v913_v8  ;;  %v5978_v8 = vld [vmem:[#allocation5 + $0xd4] sm:$0xf0]  ;;  %v5960_v63 = vld [vmem:[#allocation5 + $0x4c] sm:$0xf] }
 0x197   :  { %v918_v14 = vadd.f32 0.5, %v917_v10  ;;  %v892_v31 = vpop.f32.mrf.mxu2  ;;  %v905_v13 = vpop.f32.mrf.mxu3  ;;  %v4881_v10 = vor.u32 %v5975_v6, %v4878_v40  ;;  %v4854_v6 = vld [vmem:[#allocation5 + $0x98] sm:$0xf0]  ;;  %v4828_v40 = vld [vmem:[#allocation5 + $0x60] sm:$0xf] }
 0x198   :  { %v6281_v15 = vpop.eup %6280  ;;  %v4886_v31 = vld [vmem:[#allocation5 + $0xd8] sm:$0xf0]  ;;  %v4796_v3 = vld [vmem:[#allocation5 + $0x20] sm:$0xf]  ;;  %v5957_v5 = vld [vmem:[#allocation5 + $0x2c] sm:$0xf0] }
 0x199   :  { %v924_v45 = vmul.f32 %v918_v14, %v6818_v58  ;;  %v925_v16 = vmul.f32 %v6281_v15, %v914_v12  ;;  %v5981_v58 = vld [vmem:[#allocation5 + $0xec] sm:$0xf0]  ;;  %v4885_v12 = vor.u32 %v5978_v8, %v4884_v38  ;;  %v5976_v14 = vld [vmem:[#allocation5 + $0xcc] sm:$0xf]  ;;  %1421 = vmatpush.bf16.msra.mxu1 %v4881_v10  ;;  %v4860_v15 = vld [vmem:[#allocation5 + $0xa0] sm:$0xf] }
 0x19a   :  { %v6283_v17 = vpop.eup %6282  ;;  %v4893_v53 = vor.u32 %v5981_v58, %v4892_v33  ;;  %v4889_v13 = vor.u32 %v5976_v14, %v4886_v31  ;;  %v5972_v58 = vld [vmem:[#allocation5 + $0xac] sm:$0xf]  ;;  %v5965_v38 = vld [vmem:[#allocation5 + $0x6c] sm:$0xf0]  ;;  %v5963_v8 = vld [vmem:[#allocation5 + $0x64] sm:$0xf] }
 0x19b   :  { %v6834_v18 = vadd.f32 %v925_v16, %v924_v45  ;;  %v922_v20 = vmul.f32 0.5, %v6283_v17  ;;  %1434 = vmatpush.bf16.msrb.mxu2 %v4885_v12  ;;  %v5973_v45 = vld [vmem:[#allocation5 + $0xac] sm:$0xf0]  ;;  %v5971_v16 = vld [vmem:[#allocation5 + $0xa4] sm:$0xf]  ;;  %v4829_v10 = vor.u32 %v5965_v38, %v4828_v40 }
 0x19c   :  { %1407 = vmatpush.bf16.msra.mxu0 %v4893_v53  ;;  %1447 = vmatpush.bf16.msra.mxu3 %v4889_v13  ;;  %v4861_v17 = vor.u32 %v5973_v45, %v4860_v15  ;;  %v4873_v53 = vor.u32 %v5972_v58, %v4870_v39  ;;  %v4830_v12 = vld [vmem:[#allocation5 + $0x70] sm:$0xf0]  ;;  %v4836_v14 = vld [vmem:[#allocation5 + $0x68] sm:$0xf]  ;;  %v5966_v31 = vld [vmem:[#allocation5 + $0x74] sm:$0xf0] }
 0x19d   :  { %6284 = vtanh.f32 %v6834_v18  ;;  %v923_v2 = vadd.f32 0.5, %v922_v20  ;;  %v4862_v20 = vld [vmem:[#allocation5 + $0xb0] sm:$0xf0]  ;;  %v4833_v13 = vor.u32 %v5963_v8, %v4830_v12  ;;  %v4837_v15 = vor.u32 %v5966_v31, %v4836_v14  ;;  %v5964_v45 = vld [vmem:[#allocation5 + $0x6c] sm:$0xf] }
 0x19e   :  { %v4820_v58 = vld [vmem:[#allocation5 + $0x48] sm:$0xf]  ;;  %v5962_v39 = vld [vmem:[#allocation5 + $0x54] sm:$0xf0]  ;;  %v4822_v0 = vld [vmem:[#allocation5 + $0x58] sm:$0xf0] }
 0x19f   :  { %v4821_v59 = vor.u32 %v5962_v39, %v4820_v58  ;;  %v5955_v28 = vld [vmem:[#allocation5 + $0x24] sm:$0xf]  ;;  %v5956_v38 = vld [vmem:[#allocation5 + $0x2c] sm:$0xf]  ;;  %v4806_v8 = vld [vmem:[#allocation5 + $0x38] sm:$0xf0] }
 0x1a0   :  { %1408 = vmatpush.bf16.msra.mxu0 %v4877_v7  ;;  %1448 = vmatpush.bf16.msra.mxu3 %v4873_v53  ;;  %v4857_v7 = vor.u32 %v5968_v29, %v4854_v6  ;;  %v4804_v29 = vld [vmem:[#allocation5 + $0x28] sm:$0xf]  ;;  %v5958_v6 = vld [vmem:[#allocation5 + $0x34] sm:$0xf0]  ;;  %v4780_v12 = vld [vmem:[#allocation5] sm:$0xf] }
 0x1a1   :  { %v4805_v40 = vor.u32 %v5958_v6, %v4804_v29  ;;  %v5953_v14 = vld [vmem:[#allocation5 + $0xc] sm:$0xf0]  ;;  %v5951_v31 = vld [vmem:[#allocation5 + $0x4] sm:$0xf] }
 0x1a3   :  { %v6285_v22 = vpop.eup %6284 }
 0x1a4   :  { %v6837_v41 = vmul.f32 %v6285_v22, %v923_v2  ;;  %v4868_v2 = vld [vmem:[#allocation5 + $0xa8] sm:$0xf]  ;;  %v5974_v22 = vld [vmem:[#allocation5 + $0xb4] sm:$0xf0]  ;;  %1409 = vmatpush.bf16.msra.mxu0 %v4861_v17  ;;  %1449 = vmatpush.bf16.msra.mxu3 %v4857_v7 }
 0x1a5   :  { %v4869_v33 = vor.u32 %v5974_v22, %v4868_v2  ;;  %v5961_v2 = vld [vmem:[#allocation5 + $0x4c] sm:$0xf0]  ;;  %v5959_v22 = vld [vmem:[#allocation5 + $0x44] sm:$0xf] }
 0x1a6   :  { %v938_v49 = vpack.c.bf16 %v6837_v41, %v6837_v41 }
 0x1a7   :  { %1435 = vmatpush.bf16.msrb.mxu2 %v4869_v33  ;;  %v4814_v33 = vld [vmem:[#allocation5 + $0x50] sm:$0xf0] }
 0x1a8   :  { %1139 = vmatmul.bf16.vlgmr.msrb.gmra.mxu0 %v938_v49  ;;  %1152 = vmatmul.bf16.vlgmr.msrb.gmra.mxu1 %v938_v49  ;;  %v4817_v53 = vor.u32 %v5959_v22, %v4814_v33  ;;  %v4790_v22 = vld [vmem:[#allocation5 + $0x18] sm:$0xf0] }
 0x1a9   :  { %1165 = vmatmul.bf16.vlgmr.msra.gmra.mxu2 %v938_v49  ;;  %1178 = vmatmul.bf16.vlgmr.msrb.gmra.mxu3 %v938_v49  ;;  %v4865_v49 = vor.u32 %v5971_v16, %v4862_v20  ;;  %v4838_v16 = vld [vmem:[#allocation5 + $0x78] sm:$0xf0]  ;;  %v4812_v20 = vld [vmem:[#allocation5 + $0x40] sm:$0xf] }
 0x1aa   :  { %1410 = vmatpush.bf16.msra.mxu0 %v4845_v1  ;;  %v4841_v17 = vor.u32 %v5964_v45, %v4838_v16  ;;  %v4825_v1 = vor.u32 %v5960_v63, %v4822_v0  ;;  %v4788_v45 = vld [vmem:[#allocation5 + $0x8] sm:$0xf]  ;;  %v5954_v16 = vld [vmem:[#allocation5 + $0x14] sm:$0xf0] }
 0x1ab   :  { %1422 = vmatpush.bf16.msra.mxu1 %v4865_v49  ;;  %1436 = vmatpush.bf16.msrb.mxu2 %v4853_v62  ;;  %v4813_v49 = vor.u32 %v5961_v2, %v4812_v20  ;;  %v4798_v62 = vld [vmem:[#allocation5 + $0x30] sm:$0xf0]  ;;  %v4789_v20 = vor.u32 %v5954_v16, %v4788_v45  ;;  %v5952_v2 = vld [vmem:[#allocation5 + $0xc] sm:$0xf] }
 0x1ac   :  { %1450 = vmatpush.bf16.msra.mxu3 %v4841_v17  ;;  %v4801_v7 = vor.u32 %v5955_v28, %v4798_v62 }
 0x1ae   :  { %1411 = vmatpush.bf16.msra.mxu0 %v4829_v10  ;;  %v4809_v10 = vor.u32 %v5956_v38, %v4806_v8 }
 0x1af   :  { %1423 = vmatpush.bf16.msra.mxu1 %v4849_v23  ;;  %1437 = vmatpush.bf16.msrb.mxu2 %v4837_v15  ;;  %v4797_v23 = vor.u32 %v5957_v5, %v4796_v3  ;;  %v4782_v15 = vld [vmem:[#allocation5 + $0x10] sm:$0xf0] }
 0x1b0   :  { %1451 = vmatpush.bf16.msra.mxu3 %v4825_v1  ;;  %v4785_v17 = vor.u32 %v5951_v31, %v4782_v15 }
 0x1b2   :  { %1412 = vmatpush.bf16.msra.mxu0 %v4813_v49  ;;  %v4793_v49 = vor.u32 %v5952_v2, %v4790_v22  ;;  %v5022_v22 = vld [vmem:[#allocation5 + $0xf0] sm:$0xf0] }
 0x1b3   :  { %1424 = vmatpush.bf16.msra.mxu1 %v4833_v13  ;;  %1438 = vmatpush.bf16.msrb.mxu2 %v4821_v59  ;;  %v4781_v13 = vor.u32 %v5953_v14, %v4780_v12 }
 0x1b4   :  { %1452 = vmatpush.bf16.msra.mxu3 %v4809_v10 }
 0x1b6   :  { %1413 = vmatpush.bf16.msra.mxu0 %v4797_v23 }
 0x1b7   :  { %1425 = vmatpush.bf16.msra.mxu1 %v4817_v53  ;;  %1439 = vmatpush.bf16.msrb.mxu2 %v4805_v40 }
 0x1b8   :  { %1453 = vmatpush.bf16.msra.mxu3 %v4793_v49  ;;  %v5028_v49 = vld [vmem:[#allocation5 + $0xe8] sm:$0xf] }
 0x1ba   :  { %1414 = vmatpush.bf16.msra.mxu0 %v4781_v13 }
 0x1bb   :  { %1426 = vmatpush.bf16.msra.mxu1 %v4801_v7  ;;  %1440 = vmatpush.bf16.msrb.mxu2 %v4789_v20  ;;  %v6011_v20 = vld [vmem:[#allocation5 + $0xe4] sm:$0xf] }
 0x1bf   :  { %1427 = vmatpush.bf16.msra.mxu1 %v4785_v17  ;;  %v5020_v17 = vld [vmem:[#allocation5 + $0xe0] sm:$0xf] }
 0x225   :  { %v1140_v33 = vpop.f32.mrf.mxu0  ;;  %v1153_v58 = vpop.f32.mrf.mxu1 }
 0x226   :  { %v1183_v39 = vadd.f32 %v1140_v33, %v6745_v34  ;;  %v1184_v53 = vadd.f32 %v1153_v58, %v6748_v36  ;;  %v6014_v33 = vld [vmem:[#allocation5 + $0xf4] sm:$0xf0]  ;;  %v5025_v58 = vor.u32 %v6011_v20, %v5022_v22  ;;  %v6001_v20 = vld [vmem:[#allocation5 + $0x8c] sm:$0xf0] }
 0x228   :  { %v1187_v59 = vmul.f32 0.5, %v1183_v39  ;;  %v1191_v63 = vmul.f32 0.5, %v1184_v53  ;;  %v5029_v39 = vor.u32 %v6014_v33, %v5028_v49  ;;  %v6012_v53 = vld [vmem:[#allocation5 + $0xec] sm:$0xf]  ;;  %1696 = vmatpush.bf16.msrb.mxu1 %v5025_v58  ;;  %v4974_v49 = vld [vmem:[#allocation5 + $0x90] sm:$0xf0] }
 0x229   :  { %v4980_v33 = vld [vmem:[#allocation5 + $0x88] sm:$0xf]  ;;  %v6002_v58 = vld [vmem:[#allocation5 + $0x94] sm:$0xf0] }
 0x22a   :  { %6286 = vtanh.f32 %v1187_v59  ;;  %v5030_v59 = vld [vmem:[#allocation5 + $0xf8] sm:$0xf0]  ;;  %1709 = vmatpush.bf16.msra.mxu2 %v5029_v39 }
 0x22b   :  { %6288 = vtanh.f32 %v1191_v63  ;;  %v5033_v63 = vor.u32 %v6012_v53, %v5030_v59  ;;  %v4981_v53 = vor.u32 %v6002_v58, %v4980_v33  ;;  %v6000_v59 = vld [vmem:[#allocation5 + $0x8c] sm:$0xf]  ;;  %v4926_v33 = vld [vmem:[#allocation5 + $0x30] sm:$0xf0]  ;;  %v4932_v58 = vld [vmem:[#allocation5 + $0x28] sm:$0xf] }
 0x22c   :  { %v1166_v0 = vpop.f32.mrf.mxu2  ;;  %v1179_v1 = vpop.f32.mrf.mxu3 }
 0x22d   :  { %v1185_v3 = vadd.f32 %v1166_v0, %v6774_v52  ;;  %v1186_v5 = vadd.f32 %v1179_v1, %v6755_v42  ;;  %v1142_v28 = vpop.f32.mrf.mxu0  ;;  %v1155_v23 = vpop.f32.mrf.mxu1  ;;  %v5004_v0 = vld [vmem:[#allocation5 + $0xc0] sm:$0xf]  ;;  %v6009_v1 = vld [vmem:[#allocation5 + $0xcc] sm:$0xf0]  ;;  %1722 = vmatpush.bf16.msrb.mxu3 %v5033_v63  ;;  %v4982_v63 = vld [vmem:[#allocation5 + $0x98] sm:$0xf0] }
 0x22e   :  { %v5006_v28 = vld [vmem:[#allocation5 + $0xd0] sm:$0xf0]  ;;  %v5012_v23 = vld [vmem:[#allocation5 + $0xc8] sm:$0xf] }
 0x22f   :  { %6290 = vtanh.f32 %v1185_v3  ;;  %v1196_v62 = vmul.f32 0.5, %v1186_v5  ;;  %v6007_v3 = vld [vmem:[#allocation5 + $0xc4] sm:$0xf]  ;;  %v5005_v5 = vor.u32 %v6009_v1, %v5004_v0  ;;  %v4985_v0 = vor.u32 %v6000_v59, %v4982_v63  ;;  %v4956_v1 = vld [vmem:[#allocation5 + $0x60] sm:$0xf] }
 0x230   :  { %v6287_v29 = vpop.eup %6286  ;;  %v5988_v63 = vld [vmem:[#allocation5 + $0x2c] sm:$0xf] }
 0x231   :  { %v6289_v6 = vpop.eup %6288  ;;  %v1189_v7 = vmul.f32 0.5, %v6287_v29  ;;  %6292 = vtanh.f32 %v1196_v62  ;;  %v6010_v62 = vld [vmem:[#allocation5 + $0xd4] sm:$0xf0]  ;;  %v5009_v29 = vor.u32 %v6007_v3, %v5006_v28  ;;  %v5997_v3 = vld [vmem:[#allocation5 + $0x6c] sm:$0xf0] }
 0x232   :  { %v1193_v34 = vmul.f32 0.5, %v6289_v6  ;;  %v5013_v6 = vor.u32 %v6010_v62, %v5012_v23  ;;  %v4957_v28 = vor.u32 %v5997_v3, %v4956_v1  ;;  %v4958_v23 = vld [vmem:[#allocation5 + $0x70] sm:$0xf0]  ;;  %v4964_v62 = vld [vmem:[#allocation5 + $0x68] sm:$0xf] }
 0x233   :  { %v1190_v36 = vadd.f32 0.5, %v1189_v7  ;;  %v6008_v7 = vld [vmem:[#allocation5 + $0xcc] sm:$0xf]  ;;  %1697 = vmatpush.bf16.msrb.mxu1 %v5009_v29  ;;  %v5998_v29 = vld [vmem:[#allocation5 + $0x74] sm:$0xf0] }
 0x234   :  { %v1194_v40 = vadd.f32 0.5, %v1193_v34  ;;  %v1168_v38 = vpop.f32.mrf.mxu2  ;;  %v1181_v8 = vpop.f32.mrf.mxu3  ;;  %v5014_v34 = vld [vmem:[#allocation5 + $0xd8] sm:$0xf0]  ;;  %1710 = vmatpush.bf16.msra.mxu2 %v5013_v6  ;;  %v4908_v3 = vld [vmem:[#allocation5] sm:$0xf] }
 0x235   :  { %v6291_v10 = vpop.eup %6290  ;;  %v6005_v38 = vld [vmem:[#allocation5 + $0xac] sm:$0xf0]  ;;  %v6003_v8 = vld [vmem:[#allocation5 + $0xa4] sm:$0xf] }
 0x236   :  { %v1200_v12 = vmul.f32 %v1194_v40, %v6834_v18  ;;  %v1201_v14 = vmul.f32 %v6291_v10, %v1190_v36  ;;  %v6013_v18 = vld [vmem:[#allocation5 + $0xec] sm:$0xf0]  ;;  %v5017_v36 = vor.u32 %v6008_v7, %v5014_v34  ;;  %v4988_v40 = vld [vmem:[#allocation5 + $0xa0] sm:$0xf]  ;;  %v4965_v7 = vor.u32 %v5998_v29, %v4964_v62  ;;  %v5996_v34 = vld [vmem:[#allocation5 + $0x6c] sm:$0xf] }
 0x237   :  { %v6293_v52 = vpop.eup %6292  ;;  %v5021_v2 = vor.u32 %v6013_v18, %v5020_v17  ;;  %v4989_v10 = vor.u32 %v6005_v38, %v4988_v40  ;;  %v4972_v18 = vld [vmem:[#allocation5 + $0x80] sm:$0xf]  ;;  %v4910_v62 = vld [vmem:[#allocation5 + $0x10] sm:$0xf0]  ;;  %v4916_v29 = vld [vmem:[#allocation5 + $0x8] sm:$0xf] }
 0x238   :  { %v6846_v31 = vadd.f32 %v1201_v14, %v1200_v12  ;;  %v1198_v42 = vmul.f32 0.5, %v6293_v52  ;;  %1723 = vmatpush.bf16.msrb.mxu3 %v5017_v36  ;;  %v4990_v12 = vld [vmem:[#allocation5 + $0xb0] sm:$0xf0]  ;;  %v4996_v14 = vld [vmem:[#allocation5 + $0xa8] sm:$0xf]  ;;  %v4973_v22 = vor.u32 %v6001_v20, %v4972_v18 }
 0x239   :  { %1683 = vmatpush.bf16.msrb.mxu0 %v5021_v2  ;;  %v6006_v52 = vld [vmem:[#allocation5 + $0xb4] sm:$0xf0]  ;;  %v5999_v2 = vld [vmem:[#allocation5 + $0x84] sm:$0xf]  ;;  %v4966_v36 = vld [vmem:[#allocation5 + $0x78] sm:$0xf0] }
 0x23a   :  { %6294 = vtanh.f32 %v6846_v31  ;;  %v1199_v13 = vadd.f32 0.5, %v1198_v42  ;;  %v4993_v42 = vor.u32 %v6003_v8, %v4990_v12  ;;  %v4977_v39 = vor.u32 %v5999_v2, %v4974_v49  ;;  %v4940_v38 = vld [vmem:[#allocation5 + $0x40] sm:$0xf]  ;;  %v5993_v8 = vld [vmem:[#allocation5 + $0x4c] sm:$0xf0] }
 0x23b   :  { %v4969_v40 = vor.u32 %v5996_v34, %v4966_v36  ;;  %v4941_v12 = vor.u32 %v5993_v8, %v4940_v38  ;;  %v4924_v20 = vld [vmem:[#allocation5 + $0x20] sm:$0xf]  ;;  %v5989_v2 = vld [vmem:[#allocation5 + $0x2c] sm:$0xf0]  ;;  %v5984_v36 = vld [vmem:[#allocation5 + $0xc] sm:$0xf]  ;;  %v250_v8 = vadd.f32 %v6757_v43, %v6727_v25 }
 0x23c   :  { %1698 = vmatpush.bf16.msrb.mxu1 %v4993_v42  ;;  %v5994_v42 = vld [vmem:[#allocation5 + $0x54] sm:$0xf0]  ;;  %v4925_v49 = vor.u32 %v5989_v2, %v4924_v20 }
 0x23d   :  { %1684 = vmatpush.bf16.msrb.mxu0 %v5005_v5  ;;  %v5995_v5 = vld [vmem:[#allocation5 + $0x64] sm:$0xf] }
 0x23e   :  { %v4961_v6 = vor.u32 %v5995_v5, %v4958_v23  ;;  %v5985_v5 = vld [vmem:[#allocation5 + $0xc] sm:$0xf0] }
 0x23f   :  { %v4909_v23 = vor.u32 %v5985_v5, %v4908_v3 }
 0x240   :  { %v6295_v15 = vpop.eup %6294  ;;  %1699 = vmatpush.bf16.msrb.mxu1 %v4977_v39  ;;  %v5990_v39 = vld [vmem:[#allocation5 + $0x34] sm:$0xf0] }
 0x241   :  { %v6849_v45 = vmul.f32 %v6295_v15, %v1199_v13  ;;  %v4997_v13 = vor.u32 %v6006_v52, %v4996_v14  ;;  %v6004_v15 = vld [vmem:[#allocation5 + $0xac] sm:$0xf]  ;;  %1685 = vmatpush.bf16.msrb.mxu0 %v4989_v10  ;;  %v5991_v10 = vld [vmem:[#allocation5 + $0x44] sm:$0xf]  ;;  %v4942_v14 = vld [vmem:[#allocation5 + $0x50] sm:$0xf0]  ;;  %v4933_v59 = vor.u32 %v5990_v39, %v4932_v58 }
 0x242   :  { %v4948_v52 = vld [vmem:[#allocation5 + $0x48] sm:$0xf] }
 0x243   :  { %v1214_v16 = vpack.c.bf16 %v6849_v45, %v6849_v45  ;;  %1711 = vmatpush.bf16.msra.mxu2 %v4997_v13  ;;  %v4945_v13 = vor.u32 %v5991_v10, %v4942_v14  ;;  %v279_v10 = vadd.f32 %v6759_v44, %v6742_v32 }
 0x244   :  { %1700 = vmatpush.bf16.msrb.mxu1 %v4961_v6  ;;  %v5986_v6 = vld [vmem:[#allocation5 + $0x14] sm:$0xf0] }
 0x245   :  { %1415 = vmatmul.bf16.vlgmr.msra.gmra.mxu0 %v1214_v16  ;;  %1428 = vmatmul.bf16.vlgmr.msra.gmra.mxu1 %v1214_v16  ;;  %v4917_v34 = vor.u32 %v5986_v6, %v4916_v29 }
 0x246   :  { %1441 = vmatmul.bf16.vlgmr.msrb.gmra.mxu2 %v1214_v16  ;;  %1454 = vmatmul.bf16.vlgmr.msra.gmra.mxu3 %v1214_v16  ;;  %v4998_v16 = vld [vmem:[#allocation5 + $0xb8] sm:$0xf0] }
 0x247   :  { %v5001_v17 = vor.u32 %v6004_v15, %v4998_v16  ;;  %1686 = vmatpush.bf16.msrb.mxu0 %v4973_v22  ;;  %1712 = vmatpush.bf16.msra.mxu2 %v4981_v53  ;;  %v4949_v15 = vor.u32 %v5994_v42, %v4948_v52  ;;  %v5992_v16 = vld [vmem:[#allocation5 + $0x4c] sm:$0xf]  ;;  %v5987_v22 = vld [vmem:[#allocation5 + $0x24] sm:$0xf] }
 0x248   :  { %1701 = vmatpush.bf16.msrb.mxu1 %v4945_v13  ;;  %v4929_v53 = vor.u32 %v5987_v22, %v4926_v33 }
 0x249   :  { %1724 = vmatpush.bf16.msrb.mxu3 %v5001_v17  ;;  %v4950_v17 = vld [vmem:[#allocation5 + $0x58] sm:$0xf0] }
 0x24a   :  { %v4953_v18 = vor.u32 %v5992_v16, %v4950_v17  ;;  %v337_v16 = vadd.f32 %v6763_v46, %v6750_v37  ;;  %v308_v17 = vadd.f32 %v6783_v57, %v6771_v51 }
 0x24b   :  { %1687 = vmatpush.bf16.msrb.mxu0 %v4957_v28  ;;  %1713 = vmatpush.bf16.msra.mxu2 %v4965_v7  ;;  %v5983_v28 = vld [vmem:[#allocation5 + $0x4] sm:$0xf] }
 0x24c   :  { %1702 = vmatpush.bf16.msrb.mxu1 %v4929_v53  ;;  %v4913_v7 = vor.u32 %v5983_v28, %v4910_v62 }
 0x24d   :  { %1725 = vmatpush.bf16.msrb.mxu3 %v4985_v0  ;;  %v4934_v0 = vld [vmem:[#allocation5 + $0x38] sm:$0xf0] }
 0x24e   :  { %v4937_v1 = vor.u32 %v5988_v63, %v4934_v0 }
 0x24f   :  { %1688 = vmatpush.bf16.msrb.mxu0 %v4941_v12  ;;  %1714 = vmatpush.bf16.msra.mxu2 %v4949_v15 }
 0x250   :  { %1703 = vmatpush.bf16.msrb.mxu1 %v4913_v7 }
 0x251   :  { %1726 = vmatpush.bf16.msrb.mxu3 %v4969_v40  ;;  %v4918_v40 = vld [vmem:[#allocation5 + $0x18] sm:$0xf0] }
 0x252   :  { %v4921_v38 = vor.u32 %v5984_v36, %v4918_v40  ;;  %v6043_v36 = vld [vmem:[#allocation5 + $0xe4] sm:$0xf] }
 0x253   :  { %1689 = vmatpush.bf16.msrb.mxu0 %v4925_v49  ;;  %1715 = vmatpush.bf16.msra.mxu2 %v4933_v59 }
 0x255   :  { %1727 = vmatpush.bf16.msrb.mxu3 %v4953_v18 }
 0x257   :  { %1690 = vmatpush.bf16.msrb.mxu0 %v4909_v23  ;;  %1716 = vmatpush.bf16.msra.mxu2 %v4917_v34  ;;  %v5148_v34 = vld [vmem:[#allocation5 + $0xe0] sm:$0xf] }
 0x259   :  { %1728 = vmatpush.bf16.msrb.mxu3 %v4937_v1 }
 0x25d   :  { %1729 = vmatpush.bf16.msrb.mxu3 %v4921_v38  ;;  %v5150_v38 = vld [vmem:[#allocation5 + $0xf0] sm:$0xf0] }
 0x2c2   :  { %v1416_v12 = vpop.f32.mrf.mxu0  ;;  %v1429_v14 = vpop.f32.mrf.mxu1 }
 0x2c3   :  { %v1459_v52 = vadd.f32 %v1416_v12, %v250_v8  ;;  %v1460_v42 = vadd.f32 %v1429_v14, %v279_v10  ;;  %v5156_v8 = vld [vmem:[#allocation5 + $0xe8] sm:$0xf]  ;;  %v6046_v10 = vld [vmem:[#allocation5 + $0xf4] sm:$0xf0]  ;;  %v5153_v12 = vor.u32 %v6043_v36, %v5150_v38  ;;  %v5102_v36 = vld [vmem:[#allocation5 + $0x90] sm:$0xf0] }
 0x2c4   :  { %v5157_v14 = vor.u32 %v6046_v10, %v5156_v8  ;;  %v6034_v38 = vld [vmem:[#allocation5 + $0x94] sm:$0xf0] }
 0x2c5   :  { %v1463_v13 = vmul.f32 0.5, %v1459_v52  ;;  %v1467_v15 = vmul.f32 0.5, %v1460_v42  ;;  %v6044_v52 = vld [vmem:[#allocation5 + $0xec] sm:$0xf]  ;;  %v5158_v42 = vld [vmem:[#allocation5 + $0xf8] sm:$0xf0]  ;;  %1972 = vmatpush.bf16.msra.mxu1 %v5153_v12 }
 0x2c6   :  { %1985 = vmatpush.bf16.msrb.mxu2 %v5157_v14  ;;  %v6032_v12 = vld [vmem:[#allocation5 + $0x8c] sm:$0xf]  ;;  %v5110_v14 = vld [vmem:[#allocation5 + $0x98] sm:$0xf0] }
 0x2c7   :  { %6296 = vtanh.f32 %v1463_v13  ;;  %v5161_v13 = vor.u32 %v6044_v52, %v5158_v42  ;;  %v5113_v52 = vor.u32 %v6032_v12, %v5110_v14  ;;  %v5084_v42 = vld [vmem:[#allocation5 + $0x60] sm:$0xf] }
 0x2c8   :  { %6298 = vtanh.f32 %v1467_v15  ;;  %v5132_v15 = vld [vmem:[#allocation5 + $0xc0] sm:$0xf] }
 0x2c9   :  { %v1442_v18 = vpop.f32.mrf.mxu2  ;;  %v1455_v43 = vpop.f32.mrf.mxu3  ;;  %1998 = vmatpush.bf16.msra.mxu3 %v5161_v13  ;;  %v6029_v13 = vld [vmem:[#allocation5 + $0x6c] sm:$0xf0]  ;;  %v5036_v14 = vld [vmem:[#allocation5] sm:$0xf] }
 0x2ca   :  { %v1461_v20 = vadd.f32 %v1442_v18, %v308_v17  ;;  %v1462_v2 = vadd.f32 %v1455_v43, %v337_v16  ;;  %v1418_v44 = vpop.f32.mrf.mxu0  ;;  %v1431_v22 = vpop.f32.mrf.mxu1  ;;  %v6041_v16 = vld [vmem:[#allocation5 + $0xcc] sm:$0xf0]  ;;  %v6039_v17 = vld [vmem:[#allocation5 + $0xc4] sm:$0xf]  ;;  %v5134_v43 = vld [vmem:[#allocation5 + $0xd0] sm:$0xf0] }
 0x2cb   :  { %v5133_v18 = vor.u32 %v6041_v16, %v5132_v15  ;;  %v5137_v44 = vor.u32 %v6039_v17, %v5134_v43  ;;  %v6027_v15 = vld [vmem:[#allocation5 + $0x64] sm:$0xf]  ;;  %v5085_v16 = vor.u32 %v6029_v13, %v5084_v42  ;;  %v5086_v17 = vld [vmem:[#allocation5 + $0x70] sm:$0xf0]  ;;  %v6030_v43 = vld [vmem:[#allocation5 + $0x74] sm:$0xf0] }
 0x2cc   :  { %6300 = vtanh.f32 %v1461_v20  ;;  %v1472_v49 = vmul.f32 0.5, %v1462_v2  ;;  %v5140_v20 = vld [vmem:[#allocation5 + $0xc8] sm:$0xf]  ;;  %v6042_v2 = vld [vmem:[#allocation5 + $0xd4] sm:$0xf0] }
 0x2cd   :  { %v6297_v33 = vpop.eup %6296  ;;  %v5141_v22 = vor.u32 %v6042_v2, %v5140_v20  ;;  %1973 = vmatpush.bf16.msra.mxu1 %v5137_v44  ;;  %v5089_v20 = vor.u32 %v6027_v15, %v5086_v17  ;;  %v6028_v44 = vld [vmem:[#allocation5 + $0x6c] sm:$0xf]  ;;  %v6015_v42 = vld [vmem:[#allocation5 + $0x4] sm:$0xf]  ;;  %v5038_v15 = vld [vmem:[#allocation5 + $0x10] sm:$0xf0] }
 0x2ce   :  { %v6299_v58 = vpop.eup %6298  ;;  %v1465_v39 = vmul.f32 0.5, %v6297_v33  ;;  %6302 = vtanh.f32 %v1472_v49  ;;  %v6040_v49 = vld [vmem:[#allocation5 + $0xcc] sm:$0xf]  ;;  %v5142_v33 = vld [vmem:[#allocation5 + $0xd8] sm:$0xf0] }
 0x2cf   :  { %v1469_v53 = vmul.f32 0.5, %v6299_v58  ;;  %v5145_v58 = vor.u32 %v6040_v49, %v5142_v33  ;;  %1986 = vmatpush.bf16.msrb.mxu2 %v5141_v22  ;;  %v5094_v22 = vld [vmem:[#allocation5 + $0x78] sm:$0xf0]  ;;  %v5068_v33 = vld [vmem:[#allocation5 + $0x40] sm:$0xf] }
 0x2d0   :  { %v1466_v59 = vadd.f32 0.5, %v1465_v39  ;;  %v5116_v39 = vld [vmem:[#allocation5 + $0xa0] sm:$0xf]  ;;  %v5097_v49 = vor.u32 %v6028_v44, %v5094_v22  ;;  %v6018_v17 = vld [vmem:[#allocation5 + $0x14] sm:$0xf0] }
 0x2d1   :  { %v1470_v63 = vadd.f32 0.5, %v1469_v53  ;;  %v1444_v46 = vpop.f32.mrf.mxu2  ;;  %v1457_v0 = vpop.f32.mrf.mxu3  ;;  %1999 = vmatpush.bf16.msra.mxu3 %v5145_v58  ;;  %v6037_v53 = vld [vmem:[#allocation5 + $0xac] sm:$0xf0] }
 0x2d2   :  { %v6301_v1 = vpop.eup %6300  ;;  %v5118_v46 = vld [vmem:[#allocation5 + $0xb0] sm:$0xf0]  ;;  %v5124_v0 = vld [vmem:[#allocation5 + $0xa8] sm:$0xf]  ;;  %v6025_v58 = vld [vmem:[#allocation5 + $0x4c] sm:$0xf0] }
 0x2d3   :  { %v1476_v57 = vmul.f32 %v1470_v63, %v6846_v31  ;;  %v1477_v3 = vmul.f32 %v6301_v1, %v1466_v59  ;;  %v6045_v31 = vld [vmem:[#allocation5 + $0xec] sm:$0xf0]  ;;  %v6035_v59 = vld [vmem:[#allocation5 + $0xa4] sm:$0xf]  ;;  %v5117_v63 = vor.u32 %v6037_v53, %v5116_v39  ;;  %v6038_v1 = vld [vmem:[#allocation5 + $0xb4] sm:$0xf0]  ;;  %v5069_v53 = vor.u32 %v6025_v58, %v5068_v33 }
 0x2d4   :  { %v6303_v5 = vpop.eup %6302  ;;  %v5149_v40 = vor.u32 %v6045_v31, %v5148_v34  ;;  %v6031_v34 = vld [vmem:[#allocation5 + $0x84] sm:$0xf] }
 0x2d5   :  { %v6862_v28 = vadd.f32 %v1477_v3, %v1476_v57  ;;  %v1474_v23 = vmul.f32 0.5, %v6303_v5  ;;  %v5121_v57 = vor.u32 %v6035_v59, %v5118_v46  ;;  %v5125_v3 = vor.u32 %v6038_v1, %v5124_v0  ;;  %v6036_v5 = vld [vmem:[#allocation5 + $0xac] sm:$0xf]  ;;  %v6023_v39 = vld [vmem:[#allocation5 + $0x44] sm:$0xf] }
 0x2d6   :  { %1959 = vmatpush.bf16.msra.mxu0 %v5149_v40  ;;  %v5108_v40 = vld [vmem:[#allocation5 + $0x88] sm:$0xf]  ;;  %v5105_v8 = vor.u32 %v6031_v34, %v5102_v36  ;;  %v5070_v59 = vld [vmem:[#allocation5 + $0x50] sm:$0xf0]  ;;  %v6026_v46 = vld [vmem:[#allocation5 + $0x54] sm:$0xf0] }
 0x2d7   :  { %6304 = vtanh.f32 %v6862_v28  ;;  %v1475_v62 = vadd.f32 0.5, %v1474_v23  ;;  %v5126_v23 = vld [vmem:[#allocation5 + $0xb8] sm:$0xf0]  ;;  %1974 = vmatpush.bf16.msra.mxu1 %v5121_v57  ;;  %1987 = vmatpush.bf16.msrb.mxu2 %v5125_v3  ;;  %v5109_v10 = vor.u32 %v6034_v38, %v5108_v40  ;;  %v5073_v0 = vor.u32 %v6023_v39, %v5070_v59  ;;  %v6024_v57 = vld [vmem:[#allocation5 + $0x4c] sm:$0xf] }
 0x2d8   :  { %v5078_v3 = vld [vmem:[#allocation5 + $0x58] sm:$0xf0]  ;;  %v5054_v34 = vld [vmem:[#allocation5 + $0x30] sm:$0xf0]  ;;  %v6022_v40 = vld [vmem:[#allocation5 + $0x34] sm:$0xf0] }
 0x2d9   :  { %v6020_v38 = vld [vmem:[#allocation5 + $0x2c] sm:$0xf] }
 0x2da   :  { %1960 = vmatpush.bf16.msra.mxu0 %v5133_v18  ;;  %v5092_v18 = vld [vmem:[#allocation5 + $0x68] sm:$0xf] }
 0x2db   :  { %1975 = vmatpush.bf16.msra.mxu1 %v5105_v8  ;;  %1988 = vmatpush.bf16.msrb.mxu2 %v5109_v10  ;;  %v5093_v2 = vor.u32 %v6030_v43, %v5092_v18  ;;  %v5062_v10 = vld [vmem:[#allocation5 + $0x38] sm:$0xf0]  ;;  %v5041_v18 = vor.u32 %v6015_v42, %v5038_v15 }
 0x2dc   :  { %v5065_v12 = vor.u32 %v6020_v38, %v5062_v10 }
 0x2dd   :  { %v6305_v29 = vpop.eup %6304 }
 0x2de   :  { %v6865_v6 = vmul.f32 %v6305_v29, %v1475_v62  ;;  %1961 = vmatpush.bf16.msra.mxu0 %v5117_v63  ;;  %v5129_v62 = vor.u32 %v6036_v5, %v5126_v23  ;;  %v5100_v29 = vld [vmem:[#allocation5 + $0x80] sm:$0xf]  ;;  %v5076_v63 = vld [vmem:[#allocation5 + $0x48] sm:$0xf]  ;;  %v5081_v5 = vor.u32 %v6024_v57, %v5078_v3 }
 0x2df   :  { %1976 = vmatpush.bf16.msra.mxu1 %v5089_v20  ;;  %1989 = vmatpush.bf16.msrb.mxu2 %v5093_v2  ;;  %v5077_v1 = vor.u32 %v6026_v46, %v5076_v63  ;;  %v5052_v23 = vld [vmem:[#allocation5 + $0x20] sm:$0xf]  ;;  %v6016_v20 = vld [vmem:[#allocation5 + $0xc] sm:$0xf]  ;;  %v5046_v2 = vld [vmem:[#allocation5 + $0x18] sm:$0xf0] }
 0x2e0   :  { %v1490_v7 = vpack.c.bf16 %v6865_v6, %v6865_v6  ;;  %2000 = vmatpush.bf16.msra.mxu3 %v5129_v62  ;;  %v6021_v62 = vld [vmem:[#allocation5 + $0x2c] sm:$0xf0]  ;;  %v5049_v44 = vor.u32 %v6016_v20, %v5046_v2  ;;  %v5278_v2 = vld [vmem:[#allocation5 + $0xf0] sm:$0xf0] }
 0x2e2   :  { %1691 = vmatmul.bf16.vlgmr.msrb.gmra.mxu0 %v1490_v7  ;;  %1704 = vmatmul.bf16.vlgmr.msrb.gmra.mxu1 %v1490_v7 }
 0x2e3   :  { %1717 = vmatmul.bf16.vlgmr.msra.gmra.mxu2 %v1490_v7  ;;  %1730 = vmatmul.bf16.vlgmr.msrb.gmra.mxu3 %v1490_v7  ;;  %v6033_v7 = vld [vmem:[#allocation5 + $0x8c] sm:$0xf0] }
 0x2e4   :  { %v5101_v31 = vor.u32 %v6033_v7, %v5100_v29  ;;  %2001 = vmatpush.bf16.msra.mxu3 %v5113_v52  ;;  %1977 = vmatpush.bf16.msra.mxu1 %v5073_v0  ;;  %v5053_v29 = vor.u32 %v6021_v62, %v5052_v23  ;;  %v6019_v7 = vld [vmem:[#allocation5 + $0x24] sm:$0xf]  ;;  %v6017_v52 = vld [vmem:[#allocation5 + $0xc] sm:$0xf0] }
 0x2e5   :  { %1990 = vmatpush.bf16.msrb.mxu2 %v5077_v1  ;;  %v5057_v36 = vor.u32 %v6019_v7, %v5054_v34  ;;  %v5037_v13 = vor.u32 %v6017_v52, %v5036_v14 }
 0x2e6   :  { %1962 = vmatpush.bf16.msra.mxu0 %v5101_v31  ;;  %v5060_v31 = vld [vmem:[#allocation5 + $0x28] sm:$0xf] }
 0x2e7   :  { %v5061_v8 = vor.u32 %v6022_v40, %v5060_v31 }
 0x2e8   :  { %2002 = vmatpush.bf16.msra.mxu3 %v5097_v49  ;;  %1978 = vmatpush.bf16.msra.mxu1 %v5057_v36 }
 0x2e9   :  { %1991 = vmatpush.bf16.msrb.mxu2 %v5061_v8 }
 0x2ea   :  { %1963 = vmatpush.bf16.msra.mxu0 %v5085_v16  ;;  %v5044_v16 = vld [vmem:[#allocation5 + $0x8] sm:$0xf] }
 0x2eb   :  { %v5045_v43 = vor.u32 %v6018_v17, %v5044_v16  ;;  %v5276_v17 = vld [vmem:[#allocation5 + $0xe0] sm:$0xf] }
 0x2ec   :  { %2003 = vmatpush.bf16.msra.mxu3 %v5081_v5  ;;  %1979 = vmatpush.bf16.msra.mxu1 %v5041_v18  ;;  %v6077_v18 = vld [vmem:[#allocation5 + $0xec] sm:$0xf0] }
 0x2ed   :  { %1992 = vmatpush.bf16.msrb.mxu2 %v5045_v43  ;;  %v6075_v43 = vld [vmem:[#allocation5 + $0xe4] sm:$0xf]  ;;  %v5277_v20 = vor.u32 %v6077_v18, %v5276_v17  ;;  %v6066_v17 = vld [vmem:[#allocation5 + $0x94] sm:$0xf0] }
 0x2ee   :  { %1964 = vmatpush.bf16.msra.mxu0 %v5069_v53 }
 0x2f0   :  { %2004 = vmatpush.bf16.msra.mxu3 %v5065_v12 }
 0x2f2   :  { %1965 = vmatpush.bf16.msra.mxu0 %v5053_v29 }
 0x2f4   :  { %2005 = vmatpush.bf16.msra.mxu3 %v5049_v44  ;;  %v5284_v44 = vld [vmem:[#allocation5 + $0xe8] sm:$0xf] }
 0x2f6   :  { %1966 = vmatpush.bf16.msra.mxu0 %v5037_v13 }
 0x2fa   :  { %2235 = vmatpush.bf16.msrb.mxu0 %v5277_v20  ;;  %v6064_v20 = vld [vmem:[#allocation5 + $0x8c] sm:$0xf] }
 0x35f   :  { %v1692_v22 = vpop.f32.mrf.mxu0  ;;  %v1705_v49 = vpop.f32.mrf.mxu1 }
 0x360   :  { %v1735_v33 = vadd.f32 %v1692_v22, %v6766_v48  ;;  %v1736_v58 = vadd.f32 %v1705_v49, %v6769_v50  ;;  %v6078_v22 = vld [vmem:[#allocation5 + $0xf4] sm:$0xf0]  ;;  %v5281_v49 = vor.u32 %v6075_v43, %v5278_v2  ;;  %v5238_v2 = vld [vmem:[#allocation5 + $0x98] sm:$0xf0] }
 0x362   :  { %v1739_v39 = vmul.f32 0.5, %v1735_v33  ;;  %v1743_v53 = vmul.f32 0.5, %v1736_v58  ;;  %v5285_v33 = vor.u32 %v6078_v22, %v5284_v44  ;;  %v6076_v58 = vld [vmem:[#allocation5 + $0xec] sm:$0xf]  ;;  %2248 = vmatpush.bf16.msrb.mxu1 %v5281_v49  ;;  %v5241_v44 = vor.u32 %v6064_v20, %v5238_v2  ;;  %v5212_v22 = vld [vmem:[#allocation5 + $0x60] sm:$0xf] }
 0x363   :  { %v6061_v49 = vld [vmem:[#allocation5 + $0x6c] sm:$0xf0]  ;;  %v5166_v2 = vld [vmem:[#allocation5 + $0x10] sm:$0xf0] }
 0x364   :  { %6306 = vtanh.f32 %v1739_v39  ;;  %2261 = vmatpush.bf16.msra.mxu2 %v5285_v33  ;;  %v6059_v33 = vld [vmem:[#allocation5 + $0x64] sm:$0xf] }
 0x365   :  { %6308 = vtanh.f32 %v1743_v53  ;;  %v5260_v53 = vld [vmem:[#allocation5 + $0xc0] sm:$0xf] }
 0x366   :  { %v1718_v59 = vpop.f32.mrf.mxu2  ;;  %v1731_v63 = vpop.f32.mrf.mxu3 }
 0x367   :  { %v1737_v46 = vadd.f32 %v1718_v59, %v6793_v47  ;;  %v1738_v0 = vadd.f32 %v1731_v63, %v6777_v54  ;;  %v1694_v1 = vpop.f32.mrf.mxu0  ;;  %v1707_v57 = vpop.f32.mrf.mxu1  ;;  %v83_v54 = vlaneseq  ;;  %v6073_v59 = vld [vmem:[#allocation5 + $0xcc] sm:$0xf0]  ;;  %v6071_v63 = vld [vmem:[#allocation5 + $0xc4] sm:$0xf] }
 0x368   :  { %v5268_v1 = vld [vmem:[#allocation5 + $0xc8] sm:$0xf]  ;;  %v6074_v57 = vld [vmem:[#allocation5 + $0xd4] sm:$0xf0] }
 0x369   :  { %6310 = vtanh.f32 %v1737_v46  ;;  %v1748_v3 = vmul.f32 0.5, %v1738_v0  ;;  %v6877_v10 = vand.u32 127, %v83_v54  ;;  %v5261_v46 = vor.u32 %v6073_v59, %v5260_v53  ;;  %v5262_v0 = vld [vmem:[#allocation5 + $0xd0] sm:$0xf0]  ;;  %v6062_v53 = vld [vmem:[#allocation5 + $0x74] sm:$0xf0] }
 0x36a   :  { %v6307_v5 = vpop.eup %6306 }
 0x36b   :  { %v6309_v23 = vpop.eup %6308  ;;  %v1741_v48 = vmul.f32 0.5, %v6307_v5  ;;  %6312 = vtanh.f32 %v1748_v3  ;;  %vm85_vm1 = vcmp.lt.s32.totalorder %v6877_v10, 64  ;;  %v5265_v3 = vor.u32 %v6071_v63, %v5262_v0  ;;  %2236 = vmatpush.bf16.msrb.mxu0 %v5261_v46  ;;  %v6060_v46 = vld [vmem:[#allocation5 + $0x6c] sm:$0xf]  ;;  %v5222_v0 = vld [vmem:[#allocation5 + $0x78] sm:$0xf0] }
 0x36c   :  { %v1745_v62 = vmul.f32 0.5, %v6309_v23  ;;  %v5269_v5 = vor.u32 %v6074_v57, %v5268_v1  ;;  %v6072_v23 = vld [vmem:[#allocation5 + $0xcc] sm:$0xf]  ;;  %v5225_v1 = vor.u32 %v6060_v46, %v5222_v0  ;;  %v5196_v57 = vld [vmem:[#allocation5 + $0x40] sm:$0xf] }
 0x36d   :  { %v1742_v50 = vadd.f32 0.5, %v1741_v48  ;;  %v5270_v48 = vld [vmem:[#allocation5 + $0xd8] sm:$0xf0]  ;;  %2249 = vmatpush.bf16.msrb.mxu1 %v5265_v3  ;;  %v6057_v3 = vld [vmem:[#allocation5 + $0x4c] sm:$0xf0] }
 0x36e   :  { %v1746_v29 = vadd.f32 0.5, %v1745_v62  ;;  %v1720_v7 = vpop.f32.mrf.mxu2  ;;  %v1733_v34 = vpop.f32.mrf.mxu3  ;;  %v5273_v62 = vor.u32 %v6072_v23, %v5270_v48  ;;  %2262 = vmatpush.bf16.msra.mxu2 %v5269_v5  ;;  %v6055_v5 = vld [vmem:[#allocation5 + $0x44] sm:$0xf]  ;;  %v5197_v23 = vor.u32 %v6057_v3, %v5196_v57  ;;  %v5198_v48 = vld [vmem:[#allocation5 + $0x50] sm:$0xf0] }
 0x36f   :  { %v6311_v31 = vpop.eup %6310  ;;  %v6067_v7 = vld [vmem:[#allocation5 + $0xa4] sm:$0xf]  ;;  %v6168_v10 = vld [vmem:[#allocation7 + $0x18c] sm:$0xf] }
 0x370   :  { %v1752_v36 = vmul.f32 %v1746_v29, %v6862_v28  ;;  %v1753_v40 = vmul.f32 %v6311_v31, %v1742_v50  ;;  %v5244_v50 = vld [vmem:[#allocation5 + $0xa0] sm:$0xf]  ;;  %v6069_v29 = vld [vmem:[#allocation5 + $0xac] sm:$0xf0]  ;;  %v5246_v31 = vld [vmem:[#allocation5 + $0xb0] sm:$0xf0] }
 0x371   :  { %v6313_v47 = vpop.eup %6312  ;;  %v5245_v34 = vor.u32 %v6069_v29, %v5244_v50  ;;  %v6058_v50 = vld [vmem:[#allocation5 + $0x54] sm:$0xf0]  ;;  %v5201_v29 = vor.u32 %v6055_v5, %v5198_v48  ;;  %v342_v5 = vadd.f32 %v6785_v61, %v6750_v37 }
 0x372   :  { %v6874_v38 = vadd.f32 %v1753_v40, %v1752_v36  ;;  %v1750_v8 = vmul.f32 0.5, %v6313_v47  ;;  %v5252_v36 = vld [vmem:[#allocation5 + $0xa8] sm:$0xf]  ;;  %v6070_v40 = vld [vmem:[#allocation5 + $0xb4] sm:$0xf0]  ;;  %v5249_v47 = vor.u32 %v6067_v7, %v5246_v31 }
 0x373   :  { %v5253_v54 = vor.u32 %v6070_v40, %v5252_v36  ;;  %2237 = vmatpush.bf16.msrb.mxu0 %v5245_v34  ;;  %v6056_v34 = vld [vmem:[#allocation5 + $0x4c] sm:$0xf]  ;;  %v5206_v31 = vld [vmem:[#allocation5 + $0x58] sm:$0xf0]  ;;  %v5180_v40 = vld [vmem:[#allocation5 + $0x20] sm:$0xf] }
 0x374   :  { %6314 = vtanh.f32 %v6874_v38  ;;  %v1751_v12 = vadd.f32 0.5, %v1750_v8  ;;  %v6068_v8 = vld [vmem:[#allocation5 + $0xac] sm:$0xf]  ;;  %2250 = vmatpush.bf16.msrb.mxu1 %v5249_v47  ;;  %v5209_v36 = vor.u32 %v6056_v34, %v5206_v31  ;;  %v6053_v47 = vld [vmem:[#allocation5 + $0x2c] sm:$0xf0] }
 0x375   :  { %2263 = vmatpush.bf16.msra.mxu2 %v5253_v54  ;;  %v6051_v54 = vld [vmem:[#allocation5 + $0x24] sm:$0xf] }
 0x37a   :  { %v6315_v14 = vpop.eup %6314 }
 0x37b   :  { %v1756_v52 = vmul.f32 %v6315_v14, %v1751_v12  ;;  %v5254_v12 = vld [vmem:[#allocation5 + $0xb8] sm:$0xf0] }
 0x37c   :  { %v5257_v14 = vor.u32 %v6068_v8, %v5254_v12  ;;  %v5181_v8 = vor.u32 %v6053_v47, %v5180_v40  ;;  %v5182_v12 = vld [vmem:[#allocation5 + $0x30] sm:$0xf0] }
 0x37d   :  { %v2622_v42 = vsel %vm85_vm1, %v6865_v6, %v1756_v52  ;;  %v2628_v28 = vsel %vm85_vm1, %v1756_v52, %v6865_v6  ;;  %v1766_v13 = vpack.c.bf16 %v1756_v52, %v1756_v52  ;;  %v5286_v6 = vld [vmem:[#allocation5 + $0xf8] sm:$0xf0]  ;;  %v5228_v52 = vld [vmem:[#allocation5 + $0x80] sm:$0xf] }
 0x37e   :  { %v6233_v15 = vpack.c.bf16 %v2628_v28, %v2622_v42  ;;  %v6238_v16 = vpack.c.bf16 %v2622_v42, %v2628_v28  ;;  %v5289_v39 = vor.u32 %v6076_v58, %v5286_v6  ;;  %v6065_v42 = vld [vmem:[#allocation5 + $0x8c] sm:$0xf0]  ;;  %v6063_v28 = vld [vmem:[#allocation5 + $0x84] sm:$0xf]  ;;  %v5213_v58 = vor.u32 %v6061_v49, %v5212_v22  ;;  %v5214_v6 = vld [vmem:[#allocation5 + $0x70] sm:$0xf0] }
 0x37f   :  { %1967 = vmatmul.bf16.vlgmr.msra.gmra.mxu0 %v1766_v13  ;;  %1980 = vmatmul.bf16.vlgmr.msra.gmra.mxu1 %v1766_v13  ;;  %v5217_v59 = vor.u32 %v6059_v33, %v5214_v6  ;;  %v6050_v22 = vld [vmem:[#allocation5 + $0x14] sm:$0xf0]  ;;  %v5174_v6 = vld [vmem:[#allocation5 + $0x18] sm:$0xf0] }
 0x380   :  { %6234 = vst [vmem:[#allocation4 + $0x18] sm:$0xff] %v6233_v15   ;;  %1993 = vmatmul.bf16.vlgmr.msrb.gmra.mxu2 %v1766_v13  ;;  %2006 = vmatmul.bf16.vlgmr.msra.gmra.mxu3 %v1766_v13  ;;  %v5229_v13 = vor.u32 %v6065_v42, %v5228_v52  ;;  %v5230_v15 = vld [vmem:[#allocation5 + $0x90] sm:$0xf0]  ;;  %v6054_v52 = vld [vmem:[#allocation5 + $0x34] sm:$0xf0]  ;;  %v5185_v42 = vor.u32 %v6051_v54, %v5182_v12 }
 0x381   :  { %6239 = vst [vmem:[#allocation4 + $0x20] sm:$0xff] %v6238_v16   ;;  %2274 = vmatpush.bf16.msrb.mxu3 %v5289_v39  ;;  %v5236_v16 = vld [vmem:[#allocation5 + $0x88] sm:$0xf]  ;;  %v5233_v18 = vor.u32 %v6063_v28, %v5230_v15  ;;  %v5190_v15 = vld [vmem:[#allocation5 + $0x38] sm:$0xf0] }
 0x382   :  { %v5237_v43 = vor.u32 %v6066_v17, %v5236_v16  ;;  %2238 = vmatpush.bf16.msrb.mxu0 %v5229_v13  ;;  %v5220_v39 = vld [vmem:[#allocation5 + $0x68] sm:$0xf]  ;;  %v6052_v13 = vld [vmem:[#allocation5 + $0x2c] sm:$0xf]  ;;  %v5164_v17 = vld [vmem:[#allocation5] sm:$0xf] }
 0x383   :  { %2251 = vmatpush.bf16.msrb.mxu1 %v5233_v18  ;;  %v5221_v63 = vor.u32 %v6062_v53, %v5220_v39  ;;  %v5193_v16 = vor.u32 %v6052_v13, %v5190_v15  ;;  %v6049_v18 = vld [vmem:[#allocation5 + $0xc] sm:$0xf0]  ;;  %v255_v53 = vadd.f32 %v6779_v55, %v6727_v25 }
 0x384   :  { %2264 = vmatpush.bf16.msra.mxu2 %v5237_v43  ;;  %v6047_v43 = vld [vmem:[#allocation5 + $0x4] sm:$0xf]  ;;  %v5165_v20 = vor.u32 %v6049_v18, %v5164_v17 }
 0x385   :  { %2275 = vmatpush.bf16.msrb.mxu3 %v5273_v62  ;;  %v5204_v62 = vld [vmem:[#allocation5 + $0x48] sm:$0xf]  ;;  %v5169_v49 = vor.u32 %v6047_v43, %v5166_v2  ;;  %v5404_v2 = vld [vmem:[#allocation5 + $0xe0] sm:$0xf] }
 0x386   :  { %2239 = vmatpush.bf16.msrb.mxu0 %v5213_v58  ;;  %v5205_v7 = vor.u32 %v6058_v50, %v5204_v62  ;;  %v6048_v58 = vld [vmem:[#allocation5 + $0xc] sm:$0xf] }
 0x387   :  { %2252 = vmatpush.bf16.msrb.mxu1 %v5217_v59  ;;  %v5177_v39 = vor.u32 %v6048_v58, %v5174_v6  ;;  %v284_v59 = vadd.f32 %v6781_v56, %v6742_v32  ;;  %v5412_v58 = vld [vmem:[#allocation5 + $0xe8] sm:$0xf]  ;;  %v6110_v6 = vld [vmem:[#allocation5 + $0xf4] sm:$0xf0] }
 0x388   :  { %2265 = vmatpush.bf16.msra.mxu2 %v5221_v63 }
 0x389   :  { %2276 = vmatpush.bf16.msrb.mxu3 %v5257_v14  ;;  %v5188_v14 = vld [vmem:[#allocation5 + $0x28] sm:$0xf] }
 0x38a   :  { %2240 = vmatpush.bf16.msrb.mxu0 %v5197_v23  ;;  %v5189_v28 = vor.u32 %v6054_v52, %v5188_v14  ;;  %v313_v23 = vadd.f32 %v6800_v19, %v6771_v51 }
 0x38b   :  { %2253 = vmatpush.bf16.msrb.mxu1 %v5201_v29 }
 0x38c   :  { %2266 = vmatpush.bf16.msra.mxu2 %v5205_v7 }
 0x38d   :  { %2277 = vmatpush.bf16.msrb.mxu3 %v5241_v44  ;;  %v5172_v44 = vld [vmem:[#allocation5 + $0x8] sm:$0xf] }
 0x38e   :  { %2241 = vmatpush.bf16.msrb.mxu0 %v5181_v8  ;;  %v5173_v33 = vor.u32 %v6050_v22, %v5172_v44  ;;  %v6109_v44 = vld [vmem:[#allocation5 + $0xec] sm:$0xf0]  ;;  %v6107_v22 = vld [vmem:[#allocation5 + $0xe4] sm:$0xf] }
 0x38f   :  { %2254 = vmatpush.bf16.msrb.mxu1 %v5185_v42 }
 0x390   :  { %2267 = vmatpush.bf16.msra.mxu2 %v5189_v28 }
 0x391   :  { %2278 = vmatpush.bf16.msrb.mxu3 %v5225_v1 }
 0x392   :  { %2242 = vmatpush.bf16.msrb.mxu0 %v5165_v20 }
 0x393   :  { %2255 = vmatpush.bf16.msrb.mxu1 %v5169_v49  ;;  %v5405_v49 = vor.u32 %v6109_v44, %v5404_v2  ;;  %v5340_v44 = vld [vmem:[#allocation5 + $0x60] sm:$0xf] }
 0x394   :  { %2268 = vmatpush.bf16.msra.mxu2 %v5173_v33  ;;  %v5406_v33 = vld [vmem:[#allocation5 + $0xf0] sm:$0xf0] }
 0x395   :  { %2279 = vmatpush.bf16.msrb.mxu3 %v5209_v36 }
 0x396   :  { %2511 = vmatpush.bf16.msra.mxu0 %v5405_v49  ;;  %v6091_v49 = vld [vmem:[#allocation5 + $0x64] sm:$0xf] }
 0x399   :  { %2280 = vmatpush.bf16.msrb.mxu3 %v5193_v16 }
 0x39d   :  { %2281 = vmatpush.bf16.msrb.mxu3 %v5177_v39  ;;  %v5409_v39 = vor.u32 %v6107_v22, %v5406_v33  ;;  %v6093_v22 = vld [vmem:[#allocation5 + $0x6c] sm:$0xf0] }
 0x39e   :  { %v5341_v33 = vor.u32 %v6093_v22, %v5340_v44 }
 0x39f   :  { %2524 = vmatpush.bf16.msra.mxu1 %v5409_v39  ;;  %v6094_v39 = vld [vmem:[#allocation5 + $0x74] sm:$0xf0] }
 0x3fc   :  { %v1968_v63 = vpop.f32.mrf.mxu0  ;;  %v1981_v46 = vpop.f32.mrf.mxu1 }
 0x3fd   :  { %v2011_v0 = vadd.f32 %v1968_v63, %v255_v53  ;;  %v2012_v1 = vadd.f32 %v1981_v46, %v284_v59  ;;  %v5413_v53 = vor.u32 %v6110_v6, %v5412_v58  ;;  %v6108_v59 = vld [vmem:[#allocation5 + $0xec] sm:$0xf]  ;;  %v5388_v46 = vld [vmem:[#allocation5 + $0xc0] sm:$0xf]  ;;  %v5342_v58 = vld [vmem:[#allocation5 + $0x70] sm:$0xf0] }
 0x3fe   :  { %v5348_v6 = vld [vmem:[#allocation5 + $0x68] sm:$0xf] }
 0x3ff   :  { %v2015_v57 = vmul.f32 0.5, %v2011_v0  ;;  %v2019_v3 = vmul.f32 0.5, %v2012_v1  ;;  %2537 = vmatpush.bf16.msrb.mxu2 %v5413_v53  ;;  %v6105_v0 = vld [vmem:[#allocation5 + $0xcc] sm:$0xf0]  ;;  %v6103_v1 = vld [vmem:[#allocation5 + $0xc4] sm:$0xf]  ;;  %v5345_v53 = vor.u32 %v6091_v49, %v5342_v58 }
 0x401   :  { %6316 = vtanh.f32 %v2015_v57  ;;  %v5389_v57 = vor.u32 %v6105_v0, %v5388_v46  ;;  %v5324_v0 = vld [vmem:[#allocation5 + $0x40] sm:$0xf] }
 0x402   :  { %6318 = vtanh.f32 %v2019_v3  ;;  %v5390_v3 = vld [vmem:[#allocation5 + $0xd0] sm:$0xf0] }
 0x403   :  { %v1994_v55 = vpop.f32.mrf.mxu2  ;;  %v2007_v48 = vpop.f32.mrf.mxu3  ;;  %2512 = vmatpush.bf16.msra.mxu0 %v5389_v57  ;;  %v6087_v57 = vld [vmem:[#allocation5 + $0x44] sm:$0xf] }
 0x404   :  { %v2013_v56 = vadd.f32 %v1994_v55, %v313_v23  ;;  %v2014_v62 = vadd.f32 %v2007_v48, %v342_v5  ;;  %v1970_v50 = vpop.f32.mrf.mxu0  ;;  %v1983_v29 = vpop.f32.mrf.mxu1  ;;  %v5396_v5 = vld [vmem:[#allocation5 + $0xc8] sm:$0xf]  ;;  %v6106_v23 = vld [vmem:[#allocation5 + $0xd4] sm:$0xf0]  ;;  %v5393_v55 = vor.u32 %v6103_v1, %v5390_v3  ;;  %v6089_v1 = vld [vmem:[#allocation5 + $0x4c] sm:$0xf0] }
 0x405   :  { %v5397_v48 = vor.u32 %v6106_v23, %v5396_v5  ;;  %v5372_v29 = vld [vmem:[#allocation5 + $0xa0] sm:$0xf]  ;;  %v5325_v3 = vor.u32 %v6089_v1, %v5324_v0  ;;  %v5326_v5 = vld [vmem:[#allocation5 + $0x50] sm:$0xf0]  ;;  %v5332_v23 = vld [vmem:[#allocation5 + $0x48] sm:$0xf] }
 0x406   :  { %6320 = vtanh.f32 %v2013_v56  ;;  %v2024_v7 = vmul.f32 0.5, %v2014_v62  ;;  %v6104_v56 = vld [vmem:[#allocation5 + $0xcc] sm:$0xf]  ;;  %v5398_v62 = vld [vmem:[#allocation5 + $0xd8] sm:$0xf0]  ;;  %2525 = vmatpush.bf16.msra.mxu1 %v5393_v55 }
 0x407   :  { %v6317_v34 = vpop.eup %6316  ;;  %v5401_v50 = vor.u32 %v6104_v56, %v5398_v62  ;;  %2538 = vmatpush.bf16.msrb.mxu2 %v5397_v48  ;;  %v6090_v55 = vld [vmem:[#allocation5 + $0x54] sm:$0xf0]  ;;  %v5329_v48 = vor.u32 %v6087_v57, %v5326_v5  ;;  %v6088_v62 = vld [vmem:[#allocation5 + $0x4c] sm:$0xf] }
 0x408   :  { %v6319_v31 = vpop.eup %6318  ;;  %v2017_v36 = vmul.f32 0.5, %v6317_v34  ;;  %6322 = vtanh.f32 %v2024_v7  ;;  %v6101_v7 = vld [vmem:[#allocation5 + $0xac] sm:$0xf0]  ;;  %v6099_v34 = vld [vmem:[#allocation5 + $0xa4] sm:$0xf]  ;;  %v5333_v56 = vor.u32 %v6090_v55, %v5332_v23 }
 0x409   :  { %v2021_v40 = vmul.f32 0.5, %v6319_v31  ;;  %v5373_v31 = vor.u32 %v6101_v7, %v5372_v29  ;;  %v5308_v7 = vld [vmem:[#allocation5 + $0x20] sm:$0xf] }
 0x40a   :  { %v2018_v47 = vadd.f32 0.5, %v2017_v36  ;;  %v5374_v36 = vld [vmem:[#allocation5 + $0xb0] sm:$0xf0] }
 0x40b   :  { %v2022_v54 = vadd.f32 0.5, %v2021_v40  ;;  %v1996_v61 = vpop.f32.mrf.mxu2  ;;  %v2009_v8 = vpop.f32.mrf.mxu3  ;;  %v5380_v40 = vld [vmem:[#allocation5 + $0xa8] sm:$0xf]  ;;  %2513 = vmatpush.bf16.msra.mxu0 %v5373_v31  ;;  %v6083_v31 = vld [vmem:[#allocation5 + $0x24] sm:$0xf] }
 0x40c   :  { %v6321_v12 = vpop.eup %6320  ;;  %v6100_v8 = vld [vmem:[#allocation5 + $0xac] sm:$0xf] }
 0x40d   :  { %v2028_v19 = vmul.f32 %v2022_v54, %v6874_v38  ;;  %v2029_v14 = vmul.f32 %v6321_v12, %v2018_v47  ;;  %v6102_v47 = vld [vmem:[#allocation5 + $0xb4] sm:$0xf0]  ;;  %v5377_v54 = vor.u32 %v6099_v34, %v5374_v36  ;;  %v5382_v12 = vld [vmem:[#allocation5 + $0xb8] sm:$0xf0]  ;;  %v6085_v34 = vld [vmem:[#allocation5 + $0x2c] sm:$0xf0] }
 0x40e   :  { %v6323_v52 = vpop.eup %6322  ;;  %v5381_v61 = vor.u32 %v6102_v47, %v5380_v40  ;;  %v5309_v36 = vor.u32 %v6085_v34, %v5308_v7  ;;  %v5310_v40 = vld [vmem:[#allocation5 + $0x30] sm:$0xf0]  ;;  %v5316_v47 = vld [vmem:[#allocation5 + $0x28] sm:$0xf] }
 0x40f   :  { %v6895_v42 = vadd.f32 %v2029_v14, %v2028_v19  ;;  %v2026_v28 = vmul.f32 0.5, %v6323_v52  ;;  %v5385_v19 = vor.u32 %v6100_v8, %v5382_v12  ;;  %2526 = vmatpush.bf16.msra.mxu1 %v5377_v54  ;;  %v5356_v14 = vld [vmem:[#allocation5 + $0x80] sm:$0xf]  ;;  %v6097_v52 = vld [vmem:[#allocation5 + $0x8c] sm:$0xf0] }
 0x410   :  { %2539 = vmatpush.bf16.msrb.mxu2 %v5381_v61  ;;  %v6086_v54 = vld [vmem:[#allocation5 + $0x34] sm:$0xf0]  ;;  %v5313_v61 = vor.u32 %v6083_v31, %v5310_v40  ;;  %v6084_v12 = vld [vmem:[#allocation5 + $0x2c] sm:$0xf] }
 0x411   :  { %6324 = vtanh.f32 %v6895_v42  ;;  %v2027_v13 = vadd.f32 0.5, %v2026_v28  ;;  %v6095_v28 = vld [vmem:[#allocation5 + $0x84] sm:$0xf]  ;;  %v5317_v8 = vor.u32 %v6086_v54, %v5316_v47 }
 0x417   :  { %v6325_v15 = vpop.eup %6324 }
 0x418   :  { %v2032_v16 = vmul.f32 %v6325_v15, %v2027_v13  ;;  %v5357_v13 = vor.u32 %v6097_v52, %v5356_v14  ;;  %v5358_v15 = vld [vmem:[#allocation5 + $0x90] sm:$0xf0]  ;;  %v5292_v52 = vld [vmem:[#allocation5] sm:$0xf] }
 0x41a   :  { %v2611_v17 = vsel %vm85_vm1, %v6849_v45, %v2032_v16  ;;  %v2617_v18 = vsel %vm85_vm1, %v2032_v16, %v6849_v45  ;;  %v2042_v43 = vpack.c.bf16 %v2032_v16, %v2032_v16  ;;  %v5414_v45 = vld [vmem:[#allocation5 + $0xf8] sm:$0xf0]  ;;  %v5364_v16 = vld [vmem:[#allocation5 + $0x88] sm:$0xf]  ;;  %2514 = vmatpush.bf16.msra.mxu0 %v5357_v13  ;;  %v6079_v13 = vld [vmem:[#allocation5 + $0x4] sm:$0xf] }
 0x41b   :  { %v6228_v38 = vpack.c.bf16 %v2617_v18, %v2611_v17  ;;  %v6243_v20 = vpack.c.bf16 %v2611_v17, %v2617_v18  ;;  %v5417_v63 = vor.u32 %v6108_v59, %v5414_v45  ;;  %v6098_v17 = vld [vmem:[#allocation5 + $0x94] sm:$0xf0]  ;;  %v5361_v18 = vor.u32 %v6095_v28, %v5358_v15  ;;  %v6092_v45 = vld [vmem:[#allocation5 + $0x6c] sm:$0xf]  ;;  %v6081_v28 = vld [vmem:[#allocation5 + $0xc] sm:$0xf0] }
 0x41c   :  { %2243 = vmatmul.bf16.vlgmr.msrb.gmra.mxu0 %v2042_v43  ;;  %2256 = vmatmul.bf16.vlgmr.msrb.gmra.mxu1 %v2042_v43  ;;  %v5349_v59 = vor.u32 %v6094_v39, %v5348_v6  ;;  %v5293_v15 = vor.u32 %v6081_v28, %v5292_v52  ;;  %v6147_v52 = vld [vmem:[#allocation7 + $0xe4] sm:$0xf]  ;;  %v5566_v28 = vld [vmem:[#allocation7 + $0xf0] sm:$0xf0] }
 0x41d   :  { %6229 = vst [vmem:[#allocation4 + $0x10] sm:$0xff] %v6228_v38   ;;  %2269 = vmatmul.bf16.vlgmr.msra.gmra.mxu2 %v2042_v43  ;;  %2282 = vmatmul.bf16.vlgmr.msrb.gmra.mxu3 %v2042_v43  ;;  %v5365_v43 = vor.u32 %v6098_v17, %v5364_v16  ;;  %v6096_v38 = vld [vmem:[#allocation5 + $0x8c] sm:$0xf]  ;;  %v5294_v16 = vld [vmem:[#allocation5 + $0x10] sm:$0xf0] }
 0x41e   :  { %6244 = vst [vmem:[#allocation4 + $0x28] sm:$0xff] %v6243_v20   ;;  %2550 = vmatpush.bf16.msra.mxu3 %v5417_v63  ;;  %v5366_v20 = vld [vmem:[#allocation5 + $0x98] sm:$0xf0]  ;;  %2527 = vmatpush.bf16.msra.mxu1 %v5361_v18  ;;  %v5300_v17 = vld [vmem:[#allocation5 + $0x8] sm:$0xf] }
 0x41f   :  { %v5369_v2 = vor.u32 %v6096_v38, %v5366_v20  ;;  %2540 = vmatpush.bf16.msrb.mxu2 %v5365_v43  ;;  %v5350_v63 = vld [vmem:[#allocation5 + $0x78] sm:$0xf0]  ;;  %2515 = vmatpush.bf16.msra.mxu0 %v5341_v33  ;;  %v6082_v18 = vld [vmem:[#allocation5 + $0x14] sm:$0xf0]  ;;  %v5297_v43 = vor.u32 %v6079_v13, %v5294_v16  ;;  %v6080_v20 = vld [vmem:[#allocation5 + $0xc] sm:$0xf] }
 0x420   :  { %v5353_v46 = vor.u32 %v6092_v45, %v5350_v63  ;;  %v5301_v38 = vor.u32 %v6082_v18, %v5300_v17  ;;  %v6179_v16 = vld [vmem:[#allocation7 + $0x1e4] sm:$0xf]  ;;  %v5548_v18 = vld [vmem:[#allocation7 + $0xc0] sm:$0xf] }
 0x422   :  { %2551 = vmatpush.bf16.msra.mxu3 %v5401_v50  ;;  %2528 = vmatpush.bf16.msra.mxu1 %v5345_v53  ;;  %v5334_v50 = vld [vmem:[#allocation5 + $0x58] sm:$0xf0] }
 0x423   :  { %2541 = vmatpush.bf16.msrb.mxu2 %v5349_v59  ;;  %2516 = vmatpush.bf16.msra.mxu0 %v5325_v3  ;;  %v5337_v29 = vor.u32 %v6088_v62, %v5334_v50 }
 0x426   :  { %2552 = vmatpush.bf16.msra.mxu3 %v5385_v19  ;;  %2529 = vmatpush.bf16.msra.mxu1 %v5329_v48  ;;  %v5318_v19 = vld [vmem:[#allocation5 + $0x38] sm:$0xf0] }
 0x427   :  { %2542 = vmatpush.bf16.msrb.mxu2 %v5333_v56  ;;  %2517 = vmatpush.bf16.msra.mxu0 %v5309_v36  ;;  %v5321_v14 = vor.u32 %v6084_v12, %v5318_v19  ;;  %v5692_v12 = vld [vmem:[#allocation7 + $0x1e0] sm:$0xf] }
 0x42a   :  { %2553 = vmatpush.bf16.msra.mxu3 %v5369_v2  ;;  %2530 = vmatpush.bf16.msra.mxu1 %v5313_v61  ;;  %v5302_v2 = vld [vmem:[#allocation5 + $0x18] sm:$0xf0]  ;;  %v5564_v61 = vld [vmem:[#allocation7 + $0xe0] sm:$0xf] }
 0x42b   :  { %2543 = vmatpush.bf16.msrb.mxu2 %v5317_v8  ;;  %2518 = vmatpush.bf16.msra.mxu0 %v5293_v15  ;;  %v5305_v44 = vor.u32 %v6080_v20, %v5302_v2  ;;  %v6149_v8 = vld [vmem:[#allocation7 + $0xec] sm:$0xf0]  ;;  %v5569_v15 = vor.u32 %v6147_v52, %v5566_v28  ;;  %v6163_v52 = vld [vmem:[#allocation7 + $0x164] sm:$0xf]  ;;  %v5630_v28 = vld [vmem:[#allocation7 + $0x170] sm:$0xf0] }
 0x42c   :  { %v5565_v19 = vor.u32 %v6149_v8, %v5564_v61  ;;  %v6177_v2 = vld [vmem:[#allocation7 + $0x1cc] sm:$0xf0]  ;;  %v6131_v8 = vld [vmem:[#allocation7 + $0x64] sm:$0xf] }
 0x42d   :  { %v6165_v61 = vld [vmem:[#allocation7 + $0x16c] sm:$0xf0] }
 0x42e   :  { %2554 = vmatpush.bf16.msra.mxu3 %v5353_v46  ;;  %2531 = vmatpush.bf16.msra.mxu1 %v5297_v43  ;;  %v6145_v43 = vld [vmem:[#allocation7 + $0xcc] sm:$0xf0] }
 0x42f   :  { %2544 = vmatpush.bf16.msrb.mxu2 %v5301_v38  ;;  %3117 = vmatpush.bf16.msrb.mxu0 %v5565_v19  ;;  %v5676_v38 = vld [vmem:[#allocation7 + $0x1c0] sm:$0xf]  ;;  %v5549_v20 = vor.u32 %v6145_v43, %v5548_v18  ;;  %v289_v18 = vadd.f32 %v6798_v4, %v6742_v32 }
 0x430   :  { %v5596_v32 = vld [vmem:[#allocation7 + $0x120] sm:$0xf] }
 0x432   :  { %2555 = vmatpush.bf16.msra.mxu3 %v5337_v29 }
 0x433   :  { %3175 = vmatpush.bf16.msra.mxu2 %v5569_v15  ;;  %3118 = vmatpush.bf16.msrb.mxu0 %v5549_v20  ;;  %v5484_v15 = vld [vmem:[#allocation7 + $0x40] sm:$0xf]  ;;  %v6127_v20 = vld [vmem:[#allocation7 + $0x44] sm:$0xf] }
 0x436   :  { %2556 = vmatpush.bf16.msra.mxu3 %v5321_v14  ;;  %v6181_v14 = vld [vmem:[#allocation7 + $0x1ec] sm:$0xf0] }
 0x437   :  { %v5693_v13 = vor.u32 %v6181_v14, %v5692_v12  ;;  %v5502_v12 = vld [vmem:[#allocation7 + $0x70] sm:$0xf0] }
 0x438   :  { %v5505_v14 = vor.u32 %v6131_v8, %v5502_v12 }
 0x439   :  { %3146 = vmatpush.bf16.msrb.mxu1 %v5693_v13  ;;  %v5633_v13 = vor.u32 %v6163_v52, %v5630_v28  ;;  %v6150_v52 = vld [vmem:[#allocation7 + $0xf4] sm:$0xf0] }
 0x43a   :  { %2557 = vmatpush.bf16.msra.mxu3 %v5305_v44  ;;  %v6143_v44 = vld [vmem:[#allocation7 + $0xc4] sm:$0xf] }
 0x499   :  { %v2244_v22 = vpop.f32.mrf.mxu0  ;;  %v2257_v49 = vpop.f32.mrf.mxu1 }
 0x49a   :  { %v2287_v33 = vadd.f32 %v2244_v22, %v6730_v27  ;;  %v2288_v58 = vadd.f32 %v2257_v49, %v6790_v9  ;;  %v5550_v22 = vld [vmem:[#allocation7 + $0xd0] sm:$0xf0]  ;;  %v5677_v49 = vor.u32 %v6177_v2, %v5676_v38  ;;  %v6161_v38 = vld [vmem:[#allocation7 + $0x14c] sm:$0xf0] }
 0x49b   :  { %v5486_v2 = vld [vmem:[#allocation7 + $0x50] sm:$0xf0] }
 0x49c   :  { %v2291_v6 = vmul.f32 0.5, %v2287_v33  ;;  %v2295_v39 = vmul.f32 0.5, %v2288_v58  ;;  %v5553_v33 = vor.u32 %v6143_v44, %v5550_v22  ;;  %v6175_v58 = vld [vmem:[#allocation7 + $0x1c4] sm:$0xf]  ;;  %3147 = vmatpush.bf16.msrb.mxu1 %v5677_v49 }
 0x49e   :  { %6326 = vtanh.f32 %v2291_v6  ;;  %v5678_v6 = vld [vmem:[#allocation7 + $0x1d0] sm:$0xf0]  ;;  %3176 = vmatpush.bf16.msra.mxu2 %v5553_v33  ;;  %v5489_v33 = vor.u32 %v6127_v20, %v5486_v2 }
 0x49f   :  { %6328 = vtanh.f32 %v2295_v39  ;;  %v5681_v39 = vor.u32 %v6175_v58, %v5678_v6  ;;  %v6159_v58 = vld [vmem:[#allocation7 + $0x144] sm:$0xf]  ;;  %v5614_v6 = vld [vmem:[#allocation7 + $0x150] sm:$0xf0] }
 0x4a0   :  { %v2270_v53 = vpop.f32.mrf.mxu2  ;;  %v2283_v59 = vpop.f32.mrf.mxu3 }
 0x4a1   :  { %v2289_v45 = vadd.f32 %v2270_v53, %v6809_v24  ;;  %v2290_v63 = vadd.f32 %v2283_v59, %v6796_v60  ;;  %v2246_v46 = vpop.f32.mrf.mxu0  ;;  %v2259_v0 = vpop.f32.mrf.mxu1  ;;  %v5532_v53 = vld [vmem:[#allocation7 + $0xa0] sm:$0xf]  ;;  %v6141_v59 = vld [vmem:[#allocation7 + $0xac] sm:$0xf0] }
 0x4a2   :  { %v6173_v46 = vld [vmem:[#allocation7 + $0x1ac] sm:$0xf0]  ;;  %v6139_v0 = vld [vmem:[#allocation7 + $0xa4] sm:$0xf] }
 0x4a3   :  { %6330 = vtanh.f32 %v2289_v45  ;;  %v2300_v1 = vmul.f32 0.5, %v2290_v63  ;;  %v5660_v45 = vld [vmem:[#allocation7 + $0x1a0] sm:$0xf]  ;;  %v5533_v63 = vor.u32 %v6141_v59, %v5532_v53  ;;  %v5617_v59 = vor.u32 %v6159_v58, %v5614_v6  ;;  %v5556_v6 = vld [vmem:[#allocation7 + $0xc8] sm:$0xf] }
 0x4a4   :  { %v6327_v57 = vpop.eup %6326 }
 0x4a5   :  { %v6329_v3 = vpop.eup %6328  ;;  %v2293_v5 = vmul.f32 0.5, %v6327_v57  ;;  %6332 = vtanh.f32 %v2300_v1  ;;  %v5534_v1 = vld [vmem:[#allocation7 + $0xb0] sm:$0xf0]  ;;  %v5661_v57 = vor.u32 %v6173_v46, %v5660_v45  ;;  %3119 = vmatpush.bf16.msrb.mxu0 %v5533_v63  ;;  %v6157_v46 = vld [vmem:[#allocation7 + $0x12c] sm:$0xf0] }
 0x4a6   :  { %v2297_v27 = vmul.f32 0.5, %v6329_v3  ;;  %v5537_v3 = vor.u32 %v6139_v0, %v5534_v1  ;;  %v6123_v0 = vld [vmem:[#allocation7 + $0x24] sm:$0xf]  ;;  %v5597_v1 = vor.u32 %v6157_v46, %v5596_v32  ;;  %v6178_v32 = vld [vmem:[#allocation7 + $0x1d4] sm:$0xf0] }
 0x4a7   :  { %v2294_v9 = vadd.f32 0.5, %v2293_v5  ;;  %v6171_v5 = vld [vmem:[#allocation7 + $0x1a4] sm:$0xf]  ;;  %3148 = vmatpush.bf16.msrb.mxu1 %v5661_v57  ;;  %v5470_v57 = vld [vmem:[#allocation7 + $0x30] sm:$0xf0] }
 0x4a8   :  { %v2298_v23 = vadd.f32 0.5, %v2297_v27  ;;  %v2272_v55 = vpop.f32.mrf.mxu2  ;;  %v2285_v48 = vpop.f32.mrf.mxu3  ;;  %v5662_v27 = vld [vmem:[#allocation7 + $0x1b0] sm:$0xf0]  ;;  %3177 = vmatpush.bf16.msra.mxu2 %v5537_v3  ;;  %v6155_v3 = vld [vmem:[#allocation7 + $0x124] sm:$0xf] }
 0x4a9   :  { %v6331_v56 = vpop.eup %6330  ;;  %v6137_v55 = vld [vmem:[#allocation7 + $0x8c] sm:$0xf0]  ;;  %v5644_v48 = vld [vmem:[#allocation7 + $0x180] sm:$0xf] }
 0x4aa   :  { %v2304_v62 = vmul.f32 %v2298_v23, %v6895_v42  ;;  %v2305_v50 = vmul.f32 %v6331_v56, %v2294_v9  ;;  %v5665_v9 = vor.u32 %v6171_v5, %v5662_v27  ;;  %v5516_v23 = vld [vmem:[#allocation7 + $0x80] sm:$0xf]  ;;  %v5598_v5 = vld [vmem:[#allocation7 + $0x130] sm:$0xf0]  ;;  %v5473_v27 = vor.u32 %v6123_v0, %v5470_v57  ;;  %v6176_v0 = vld [vmem:[#allocation7 + $0x1cc] sm:$0xf] }
 0x4ab   :  { %v6333_v24 = vpop.eup %6332  ;;  %v5517_v56 = vor.u32 %v6137_v55, %v5516_v23  ;;  %v5452_v23 = vld [vmem:[#allocation7] sm:$0xf]  ;;  %v6121_v55 = vld [vmem:[#allocation7 + $0xc] sm:$0xf0] }
 0x4ac   :  { %v6909_v29 = vadd.f32 %v2305_v50, %v2304_v62  ;;  %v2302_v60 = vmul.f32 0.5, %v6333_v24  ;;  %v6169_v62 = vld [vmem:[#allocation7 + $0x18c] sm:$0xf0]  ;;  %v6135_v50 = vld [vmem:[#allocation7 + $0x84] sm:$0xf] }
 0x4ad   :  { %v5518_v24 = vld [vmem:[#allocation7 + $0x90] sm:$0xf0]  ;;  %3120 = vmatpush.bf16.msrb.mxu0 %v5517_v56  ;;  %v347_v56 = vadd.f32 %v6802_v26, %v6750_v37 }
 0x4ae   :  { %6334 = vtanh.f32 %v6909_v29  ;;  %v2303_v7 = vadd.f32 0.5, %v2302_v60  ;;  %v5645_v60 = vor.u32 %v6169_v62, %v5644_v48  ;;  %v5580_v48 = vld [vmem:[#allocation7 + $0x100] sm:$0xf]  ;;  %v318_v62 = vadd.f32 %v6812_v35, %v6771_v51 }
 0x4b0   :  { %3149 = vmatpush.bf16.msrb.mxu1 %v5645_v60  ;;  %v6119_v60 = vld [vmem:[#allocation7 + $0x4] sm:$0xf] }
 0x4b4   :  { %v6335_v34 = vpop.eup %6334 }
 0x4b5   :  { %v2308_v31 = vmul.f32 %v6335_v34, %v2303_v7  ;;  %v5521_v7 = vor.u32 %v6135_v50, %v5518_v24  ;;  %v6167_v34 = vld [vmem:[#allocation7 + $0x184] sm:$0xf]  ;;  %v5453_v50 = vor.u32 %v6121_v55, %v5452_v23  ;;  %v6153_v24 = vld [vmem:[#allocation7 + $0x10c] sm:$0xf0]  ;;  %v5540_v55 = vld [vmem:[#allocation7 + $0xa8] sm:$0xf] }
 0x4b7   :  { %v2600_v36 = vsel %vm85_vm1, %v6837_v41, %v2308_v31  ;;  %v2606_v40 = vsel %vm85_vm1, %v2308_v31, %v6837_v41  ;;  %v2318_v47 = vpack.c.bf16 %v2308_v31, %v2308_v31  ;;  %v5694_v41 = vld [vmem:[#allocation7 + $0x1f0] sm:$0xf0]  ;;  %3178 = vmatpush.bf16.msra.mxu2 %v5521_v7 }
 0x4b8   :  { %v6223_v42 = vpack.c.bf16 %v2606_v40, %v2600_v36  ;;  %v6248_v54 = vpack.c.bf16 %v2600_v36, %v2606_v40  ;;  %v5697_v17 = vor.u32 %v6179_v16, %v5694_v41  ;;  %v5646_v31 = vld [vmem:[#allocation7 + $0x190] sm:$0xf0]  ;;  %v5500_v40 = vld [vmem:[#allocation7 + $0x60] sm:$0xf]  ;;  %v6129_v16 = vld [vmem:[#allocation7 + $0x4c] sm:$0xf0] }
 0x4b9   :  { %2519 = vmatmul.bf16.vlgmr.msra.gmra.mxu0 %v2318_v47  ;;  %2532 = vmatmul.bf16.vlgmr.msra.gmra.mxu1 %v2318_v47  ;;  %v5649_v36 = vor.u32 %v6167_v34, %v5646_v31  ;;  %v5612_v41 = vld [vmem:[#allocation7 + $0x140] sm:$0xf]  ;;  %v5485_v43 = vor.u32 %v6129_v16, %v5484_v15  ;;  %v5454_v7 = vld [vmem:[#allocation7 + $0x10] sm:$0xf0]  ;;  %v5700_v15 = vld [vmem:[#allocation7 + $0x1e8] sm:$0xf] }
 0x4ba   :  { %6224 = vst [vmem:[#allocation4 + $0x8] sm:$0xff] %v6223_v42   ;;  %2545 = vmatmul.bf16.vlgmr.msrb.gmra.mxu2 %v2318_v47  ;;  %2558 = vmatmul.bf16.vlgmr.msra.gmra.mxu3 %v2318_v47  ;;  %v6133_v47 = vld [vmem:[#allocation7 + $0x6c] sm:$0xf0]  ;;  %v5628_v42 = vld [vmem:[#allocation7 + $0x160] sm:$0xf]  ;;  %v5613_v49 = vor.u32 %v6161_v38, %v5612_v41 }
 0x4bb   :  { %6249 = vst [vmem:[#allocation4 + $0x30] sm:$0xff] %v6248_v54   ;;  %3204 = vmatpush.bf16.msrb.mxu3 %v5697_v17  ;;  %v5501_v54 = vor.u32 %v6133_v47, %v5500_v40  ;;  %v5629_v19 = vor.u32 %v6165_v61, %v5628_v42  ;;  %3179 = vmatpush.bf16.msra.mxu2 %v5505_v14  ;;  %v6151_v47 = vld [vmem:[#allocation7 + $0x104] sm:$0xf]  ;;  %v5582_v42 = vld [vmem:[#allocation7 + $0x110] sm:$0xf0] }
 0x4bc   :  { %v260_v17 = vadd.f32 %v6738_v30, %v6727_v25  ;;  %v5468_v25 = vld [vmem:[#allocation7 + $0x20] sm:$0xf]  ;;  %v6125_v30 = vld [vmem:[#allocation7 + $0x2c] sm:$0xf0]  ;;  %v5457_v40 = vor.u32 %v6119_v60, %v5454_v7  ;;  %v5585_v8 = vor.u32 %v6151_v47, %v5582_v42  ;;  %v5572_v14 = vld [vmem:[#allocation7 + $0xe8] sm:$0xf] }
 0x4bd   :  { %3121 = vmatpush.bf16.msrb.mxu0 %v5501_v54  ;;  %3150 = vmatpush.bf16.msrb.mxu1 %v5629_v19  ;;  %v5469_v63 = vor.u32 %v6125_v30, %v5468_v25  ;;  %v6182_v16 = vld [vmem:[#allocation7 + $0x1f4] sm:$0xf0]  ;;  %v5542_v60 = vld [vmem:[#allocation7 + $0xb8] sm:$0xf0]  ;;  %v5524_v42 = vld [vmem:[#allocation7 + $0x88] sm:$0xf] }
 0x4be   :  { %v5670_v47 = vld [vmem:[#allocation7 + $0x1b8] sm:$0xf0] }
 0x4bf   :  { %3205 = vmatpush.bf16.msrb.mxu3 %v5681_v39  ;;  %3180 = vmatpush.bf16.msra.mxu2 %v5489_v33 }
 0x4c1   :  { %3122 = vmatpush.bf16.msrb.mxu0 %v5485_v43  ;;  %3151 = vmatpush.bf16.msrb.mxu1 %v5613_v49  ;;  %v5574_v43 = vld [vmem:[#allocation7 + $0xf8] sm:$0xf0] }
 0x4c2   :  { %v5702_v49 = vld [vmem:[#allocation7 + $0x1f8] sm:$0xf0] }
 0x4c3   :  { %3206 = vmatpush.bf16.msrb.mxu3 %v5665_v9  ;;  %v5601_v9 = vor.u32 %v6155_v3, %v5598_v5  ;;  %3181 = vmatpush.bf16.msra.mxu2 %v5473_v27 }
 0x4c5   :  { %3123 = vmatpush.bf16.msrb.mxu0 %v5469_v63  ;;  %3152 = vmatpush.bf16.msrb.mxu1 %v5597_v1  ;;  %v5686_v1 = vld [vmem:[#allocation7 + $0x1d8] sm:$0xf0] }
 0x4c6   :  { %v5689_v5 = vor.u32 %v6176_v0, %v5686_v1  ;;  %v6160_v0 = vld [vmem:[#allocation7 + $0x14c] sm:$0xf] }
 0x4c7   :  { %3207 = vmatpush.bf16.msrb.mxu3 %v5649_v36  ;;  %v5581_v36 = vor.u32 %v6153_v24, %v5580_v48  ;;  %3182 = vmatpush.bf16.msra.mxu2 %v5457_v40  ;;  %v6142_v48 = vld [vmem:[#allocation7 + $0xb4] sm:$0xf0]  ;;  %v6140_v24 = vld [vmem:[#allocation7 + $0xac] sm:$0xf] }
 0x4c8   :  { %v6172_v40 = vld [vmem:[#allocation7 + $0x1ac] sm:$0xf] }
 0x4c9   :  { %3124 = vmatpush.bf16.msrb.mxu0 %v5453_v50  ;;  %3153 = vmatpush.bf16.msrb.mxu1 %v5581_v36  ;;  %v6174_v50 = vld [vmem:[#allocation7 + $0x1b4] sm:$0xf0]  ;;  %v5545_v36 = vor.u32 %v6140_v24, %v5542_v60  ;;  %v6124_v60 = vld [vmem:[#allocation7 + $0x2c] sm:$0xf] }
 0x4ca   :  { %v6158_v24 = vld [vmem:[#allocation7 + $0x134] sm:$0xf0] }
 0x4cb   :  { %3208 = vmatpush.bf16.msrb.mxu3 %v5633_v13  ;;  %v5573_v13 = vor.u32 %v6150_v52, %v5572_v14  ;;  %v5526_v14 = vld [vmem:[#allocation7 + $0x98] sm:$0xf0] }
 0x4cc   :  { %v5654_v52 = vld [vmem:[#allocation7 + $0x198] sm:$0xf0] }
 0x4cd   :  { %3233 = vmatpush.bf16.msra.mxu0 %v5573_v13  ;;  %v6112_v13 = vld [vmem:[#allocation4 + $0x4] sm:$0xf0] }
 0x4cf   :  { %3209 = vmatpush.bf16.msrb.mxu3 %v5617_v59 }
 0x4d3   :  { %3210 = vmatpush.bf16.msrb.mxu3 %v5601_v9 }
 0x4d7   :  { %3211 = vmatpush.bf16.msrb.mxu3 %v5585_v8  ;;  %v5652_v8 = vld [vmem:[#allocation7 + $0x188] sm:$0xf] }
 0x536   :  { %v2520_v44 = vpop.f32.mrf.mxu0  ;;  %v2533_v22 = vpop.f32.mrf.mxu1 }
 0x537   :  { %v2563_v39 = vadd.f32 %v2520_v44, %v260_v17  ;;  %v2564_v53 = vadd.f32 %v2533_v22, %v289_v18  ;;  %v5701_v17 = vor.u32 %v6182_v16, %v5700_v15  ;;  %v6148_v18 = vld [vmem:[#allocation7 + $0xec] sm:$0xf] }
 0x538   :  { %v5577_v44 = vor.u32 %v6148_v18, %v5574_v43  ;;  %v6180_v22 = vld [vmem:[#allocation7 + $0x1ec] sm:$0xf]  ;;  %v5508_v43 = vld [vmem:[#allocation7 + $0x68] sm:$0xf] }
 0x539   :  { %v2567_v4 = vmul.f32 0.5, %v2563_v39  ;;  %v2571_v45 = vmul.f32 0.5, %v2564_v53  ;;  %3262 = vmatpush.bf16.msra.mxu1 %v5701_v17  ;;  %v5705_v58 = vor.u32 %v6180_v22, %v5702_v49  ;;  %v6146_v39 = vld [vmem:[#allocation7 + $0xd4] sm:$0xf0]  ;;  %v5684_v53 = vld [vmem:[#allocation7 + $0x1c8] sm:$0xf] }
 0x53a   :  { %3291 = vmatpush.bf16.msrb.mxu2 %v5577_v44  ;;  %v5557_v30 = vor.u32 %v6146_v39, %v5556_v6  ;;  %v5685_v63 = vor.u32 %v6178_v32, %v5684_v53  ;;  %v6166_v44 = vld [vmem:[#allocation7 + $0x174] sm:$0xf0]  ;;  %v6132_v22 = vld [vmem:[#allocation7 + $0x6c] sm:$0xf]  ;;  %v5510_v49 = vld [vmem:[#allocation7 + $0x78] sm:$0xf0] }
 0x53b   :  { %6336 = vtanh.f32 %v2567_v4  ;;  %v6144_v4 = vld [vmem:[#allocation7 + $0xcc] sm:$0xf]  ;;  %3320 = vmatpush.bf16.msra.mxu3 %v5705_v58  ;;  %v5513_v58 = vor.u32 %v6132_v22, %v5510_v49  ;;  %v5638_v39 = vld [vmem:[#allocation7 + $0x178] sm:$0xf0]  ;;  %v5492_v53 = vld [vmem:[#allocation7 + $0x48] sm:$0xf] }
 0x53c   :  { %6338 = vtanh.f32 %v2571_v45  ;;  %v5558_v45 = vld [vmem:[#allocation7 + $0xd8] sm:$0xf0]  ;;  %3234 = vmatpush.bf16.msra.mxu0 %v5557_v30  ;;  %v6164_v6 = vld [vmem:[#allocation7 + $0x16c] sm:$0xf]  ;;  %v5620_v30 = vld [vmem:[#allocation7 + $0x148] sm:$0xf] }
 0x53d   :  { %v2546_v34 = vpop.f32.mrf.mxu2  ;;  %v2559_v31 = vpop.f32.mrf.mxu3  ;;  %v5561_v46 = vor.u32 %v6144_v4, %v5558_v45  ;;  %3263 = vmatpush.bf16.msra.mxu1 %v5685_v63  ;;  %v6162_v32 = vld [vmem:[#allocation7 + $0x154] sm:$0xf0]  ;;  %v6128_v63 = vld [vmem:[#allocation7 + $0x4c] sm:$0xf] }
 0x53e   :  { %v2565_v54 = vadd.f32 %v2546_v34, %v318_v62  ;;  %v2566_v61 = vadd.f32 %v2559_v31, %v347_v56  ;;  %v2522_v37 = vpop.f32.mrf.mxu0  ;;  %v2535_v26 = vpop.f32.mrf.mxu1  ;;  %v5668_v56 = vld [vmem:[#allocation7 + $0x1a8] sm:$0xf]  ;;  %v5541_v62 = vor.u32 %v6142_v48, %v5540_v55  ;;  %v5621_v45 = vor.u32 %v6162_v32, %v5620_v30  ;;  %v6214_v22 = vld [vmem:[#allocation9 + $0xf4] sm:$0xf0]  ;;  %v5806_v30 = vld [vmem:[#allocation9 + $0xd0] sm:$0xf0] }
 0x53f   :  { %3292 = vmatpush.bf16.msrb.mxu2 %v5561_v46  ;;  %3321 = vmatpush.bf16.msra.mxu3 %v5689_v5  ;;  %v5669_v31 = vor.u32 %v6174_v50, %v5668_v56  ;;  %v5673_v37 = vor.u32 %v6172_v40, %v5670_v47  ;;  %v6138_v26 = vld [vmem:[#allocation7 + $0x94] sm:$0xf0]  ;;  %v5494_v46 = vld [vmem:[#allocation7 + $0x58] sm:$0xf0]  ;;  %v5428_v5 = vld [vmem:[#allocation4 + $0x10] sm:$0xf] }
 0x540   :  { %6340 = vtanh.f32 %v2565_v54  ;;  %v2576_v51 = vmul.f32 0.5, %v2566_v61  ;;  %3235 = vmatpush.bf16.msra.mxu0 %v5541_v62  ;;  %v5497_v1 = vor.u32 %v6128_v63, %v5494_v46  ;;  %v5476_v48 = vld [vmem:[#allocation7 + $0x28] sm:$0xf]  ;;  %v6126_v56 = vld [vmem:[#allocation7 + $0x34] sm:$0xf0] }
 0x541   :  { %v6337_v35 = vpop.eup %6336  ;;  %3264 = vmatpush.bf16.msra.mxu1 %v5669_v31  ;;  %v5604_v62 = vld [vmem:[#allocation7 + $0x128] sm:$0xf]  ;;  %v5477_v50 = vor.u32 %v6126_v56, %v5476_v48  ;;  %v5606_v40 = vld [vmem:[#allocation7 + $0x138] sm:$0xf0]  ;;  %v6210_v63 = vld [vmem:[#allocation9 + $0xd4] sm:$0xf0] }
 0x542   :  { %v6339_v12 = vpop.eup %6338  ;;  %v2569_v19 = vmul.f32 0.5, %v6337_v35  ;;  %6342 = vtanh.f32 %v2576_v51  ;;  %v6170_v51 = vld [vmem:[#allocation7 + $0x194] sm:$0xf0]  ;;  %v5525_v35 = vor.u32 %v6138_v26, %v5524_v42  ;;  %v5460_v47 = vld [vmem:[#allocation7 + $0x8] sm:$0xf] }
 0x543   :  { %v2573_v28 = vmul.f32 0.5, %v6339_v12  ;;  %3293 = vmatpush.bf16.msrb.mxu2 %v5545_v36  ;;  %v5653_v12 = vor.u32 %v6170_v51, %v5652_v8  ;;  %3322 = vmatpush.bf16.msra.mxu3 %v5673_v37  ;;  %v6156_v36 = vld [vmem:[#allocation7 + $0x12c] sm:$0xf]  ;;  %v6154_v37 = vld [vmem:[#allocation7 + $0x114] sm:$0xf0] }
 0x544   :  { %v2570_v41 = vadd.f32 0.5, %v2569_v19  ;;  %v6136_v19 = vld [vmem:[#allocation7 + $0x8c] sm:$0xf]  ;;  %3236 = vmatpush.bf16.msra.mxu0 %v5525_v35  ;;  %v5609_v42 = vor.u32 %v6156_v36, %v5606_v40  ;;  %v5462_v35 = vld [vmem:[#allocation7 + $0x18] sm:$0xf0] }
 0x545   :  { %v2574_v38 = vadd.f32 0.5, %v2573_v28  ;;  %v2548_v20 = vpop.f32.mrf.mxu2  ;;  %v2561_v2 = vpop.f32.mrf.mxu3  ;;  %v5657_v28 = vor.u32 %v6168_v10, %v5654_v52  ;;  %3265 = vmatpush.bf16.msra.mxu1 %v5653_v12  ;;  %v6120_v51 = vld [vmem:[#allocation7 + $0xc] sm:$0xf]  ;;  %v5788_v56 = vld [vmem:[#allocation9 + $0xa0] sm:$0xf] }
 0x546   :  { %v6341_v33 = vpop.eup %6340  ;;  %v5636_v20 = vld [vmem:[#allocation7 + $0x168] sm:$0xf]  ;;  %v6152_v12 = vld [vmem:[#allocation7 + $0x10c] sm:$0xf] }
 0x547   :  { %v2580_v59 = vmul.f32 %v2574_v38, %v6909_v29  ;;  %v2581_v25 = vmul.f32 %v6341_v33, %v2570_v41  ;;  %3323 = vmatpush.bf16.msra.mxu3 %v5657_v28  ;;  %v5422_v41 = vld [vmem:[#allocation4 + $0x8] sm:$0xf0]  ;;  %v6134_v38 = vld [vmem:[#allocation7 + $0x74] sm:$0xf0]  ;;  %v5637_v33 = vor.u32 %v6166_v44, %v5636_v20  ;;  %v5436_v28 = vld [vmem:[#allocation4 + $0x20] sm:$0xf] }
 0x548   :  { %v6343_v57 = vpop.eup %6342  ;;  %v5509_v2 = vor.u32 %v6134_v38, %v5508_v43  ;;  %v5438_v52 = vld [vmem:[#allocation4 + $0x28] sm:$0xf0]  ;;  %v6213_v43 = vld [vmem:[#allocation9 + $0xec] sm:$0xf0]  ;;  %v6211_v38 = vld [vmem:[#allocation9 + $0xe4] sm:$0xf] }
 0x549   :  { %v2582_v3 = vadd.f32 %v2581_v25, %v2580_v59  ;;  %v2578_v27 = vmul.f32 0.5, %v6343_v57  ;;  %v5641_v59 = vor.u32 %v6164_v6, %v5638_v39  ;;  %v6130_v25 = vld [vmem:[#allocation7 + $0x54] sm:$0xf0]  ;;  %3266 = vmatpush.bf16.msra.mxu1 %v5637_v33  ;;  %v5622_v57 = vld [vmem:[#allocation7 + $0x158] sm:$0xf0] }
 0x54a   :  { %3237 = vmatpush.bf16.msra.mxu0 %v5509_v2  ;;  %v5493_v4 = vor.u32 %v6130_v25, %v5492_v53  ;;  %v5822_v2 = vld [vmem:[#allocation9 + $0xf0] sm:$0xf0]  ;;  %v5828_v44 = vld [vmem:[#allocation9 + $0xe8] sm:$0xf]  ;;  %v5830_v6 = vld [vmem:[#allocation9 + $0xf8] sm:$0xf0] }
 0x54b   :  { %6344 = vtanh.f32 %v2582_v3  ;;  %v2579_v29 = vadd.f32 0.5, %v2578_v27  ;;  %3324 = vmatpush.bf16.msra.mxu3 %v5641_v59  ;;  %v5625_v3 = vor.u32 %v6160_v0, %v5622_v57  ;;  %v6113_v27 = vld [vmem:[#allocation4 + $0x14] sm:$0xf]  ;;  %v6959_v49 = vor.u32 %v6211_v38, %v5822_v2  ;;  %v5804_v39 = vld [vmem:[#allocation9 + $0xc0] sm:$0xf] }
 0x54c   :  { %v6961_v33 = vor.u32 %v6214_v22, %v5828_v44  ;;  %v6209_v59 = vld [vmem:[#allocation9 + $0xcc] sm:$0xf0]  ;;  %v6207_v25 = vld [vmem:[#allocation9 + $0xc4] sm:$0xf]  ;;  %v6208_v46 = vld [vmem:[#allocation9 + $0xcc] sm:$0xf] }
 0x54d   :  { %3267 = vmatpush.bf16.msra.mxu1 %v5621_v45  ;;  %v6968_v32 = vor.u32 %v6209_v59, %v5804_v39  ;;  %v5812_v45 = vld [vmem:[#allocation9 + $0xc8] sm:$0xf]  ;;  %v6204_v40 = vld [vmem:[#allocation9 + $0xac] sm:$0xf]  ;;  %v6198_v2 = vld [vmem:[#allocation9 + $0x74] sm:$0xf0] }
 0x54e   :  { %3238 = vmatpush.bf16.msra.mxu0 %v5493_v4  ;;  %v6970_v4 = vor.u32 %v6207_v25, %v5806_v30  ;;  %v6973_v0 = vor.u32 %v6210_v63, %v5812_v45  ;;  %v5764_v38 = vld [vmem:[#allocation9 + $0x68] sm:$0xf]  ;;  %v5740_v39 = vld [vmem:[#allocation9 + $0x40] sm:$0xf]  ;;  %v6191_v59 = vld [vmem:[#allocation9 + $0x44] sm:$0xf] }
 0x54f   :  { %3325 = vmatpush.bf16.msra.mxu3 %v5625_v3  ;;  %v7021_v22 = vor.u32 %v6198_v2, %v5764_v38  ;;  %v5742_v25 = vld [vmem:[#allocation9 + $0x50] sm:$0xf0]  ;;  %v5748_v63 = vld [vmem:[#allocation9 + $0x48] sm:$0xf] }
 0x550   :  { %v7030_v45 = vor.u32 %v6191_v59, %v5742_v25 }
 0x551   :  { %v6345_v9 = vpop.eup %6344 }
 0x552   :  { %v2584_v23 = vmul.f32 %v6345_v9, %v2579_v29  ;;  %v6114_v29 = vld [vmem:[#allocation4 + $0x14] sm:$0xf0]  ;;  %v5430_v9 = vld [vmem:[#allocation4 + $0x18] sm:$0xf0]  ;;  %3239 = vmatpush.bf16.msra.mxu0 %v5477_v50  ;;  %v6203_v50 = vld [vmem:[#allocation9 + $0xa4] sm:$0xf] }
 0x553   :  { %v6943_v55 = vor.u32 %v6113_v27, %v5430_v9  ;;  %3326 = vmatpush.bf16.msra.mxu3 %v5609_v42  ;;  %v5444_v27 = vld [vmem:[#allocation4 + $0x30] sm:$0xf]  ;;  %v5772_v42 = vld [vmem:[#allocation9 + $0x80] sm:$0xf] }
 0x554   :  { %v2589_v7 = vsel %vm85_vm1, %v6821_v11, %v2584_v23  ;;  %v2595_v34 = vsel %vm85_vm1, %v2584_v23, %v6821_v11  ;;  %v5529_v11 = vor.u32 %v6136_v19, %v5526_v14  ;;  %v6941_v23 = vor.u32 %v6114_v29, %v5428_v5  ;;  %v5590_v14 = vld [vmem:[#allocation7 + $0x118] sm:$0xf0]  ;;  %v6117_v29 = vld [vmem:[#allocation4 + $0x34] sm:$0xf] }
 0x555   :  { %v6218_v54 = vpack.c.bf16 %v2595_v34, %v2589_v7  ;;  %v6253_v61 = vpack.c.bf16 %v2589_v7, %v2595_v34  ;;  %v5478_v7 = vld [vmem:[#allocation7 + $0x38] sm:$0xf0]  ;;  %v5605_v34 = vor.u32 %v6158_v24, %v5604_v62  ;;  %v5465_v19 = vor.u32 %v6120_v51, %v5462_v35  ;;  %v6205_v62 = vld [vmem:[#allocation9 + $0xac] sm:$0xf0]  ;;  %v5780_v35 = vld [vmem:[#allocation9 + $0x88] sm:$0xf] }
 0x556   :  { %3294 = vmatpush.bf16.msrb.mxu2 %v5529_v11  ;;  %v5481_v31 = vor.u32 %v6124_v60, %v5478_v7  ;;  %v5593_v10 = vor.u32 %v6152_v12, %v5590_v14  ;;  %v6116_v11 = vld [vmem:[#allocation4 + $0x24] sm:$0xf0]  ;;  %v6989_v24 = vor.u32 %v6205_v62, %v5788_v56  ;;  %v5790_v60 = vld [vmem:[#allocation9 + $0xb0] sm:$0xf0]  ;;  %v6202_v12 = vld [vmem:[#allocation9 + $0x94] sm:$0xf0] }
 0x557   :  { %6219 = vst [vmem:[#allocation4] sm:$0xff] %v6218_v54   ;;  %v6122_v54 = vld [vmem:[#allocation7 + $0x14] sm:$0xf0]  ;;  %3268 = vmatpush.bf16.msra.mxu1 %v5605_v34  ;;  %v5796_v7 = vld [vmem:[#allocation9 + $0xa8] sm:$0xf]  ;;  %v7005_v14 = vor.u32 %v6202_v12, %v5780_v35 }
 0x558   :  { %6254 = vst [vmem:[#allocation4 + $0x38] sm:$0xff] %v6253_v61   ;;  %v5588_v61 = vld [vmem:[#allocation7 + $0x108] sm:$0xf]  ;;  %v5461_v26 = vor.u32 %v6122_v54, %v5460_v47  ;;  %3327 = vmatpush.bf16.msra.mxu3 %v5593_v10  ;;  %v6206_v34 = vld [vmem:[#allocation9 + $0xb4] sm:$0xf0] }
 0x559   :  { %v5589_v8 = vor.u32 %v6154_v37, %v5588_v61  ;;  %v6993_v36 = vor.u32 %v6206_v34, %v5796_v7  ;;  %v5798_v47 = vld [vmem:[#allocation9 + $0xb8] sm:$0xf0]  ;;  %v6201_v61 = vld [vmem:[#allocation9 + $0x8c] sm:$0xf0]  ;;  %v6199_v37 = vld [vmem:[#allocation9 + $0x84] sm:$0xf] }
 0x55a   :  { %3295 = vmatpush.bf16.msrb.mxu2 %v5513_v58  ;;  %3240 = vmatpush.bf16.msra.mxu0 %v5461_v26  ;;  %v6212_v58 = vld [vmem:[#allocation9 + $0xec] sm:$0xf]  ;;  %v6996_v54 = vor.u32 %v6204_v40, %v5798_v47  ;;  %v5774_v26 = vld [vmem:[#allocation9 + $0x90] sm:$0xf0]  ;;  %v5782_v10 = vld [vmem:[#allocation9 + $0x98] sm:$0xf0] }
 0x55b   :  { %3269 = vmatpush.bf16.msra.mxu1 %v5589_v8  ;;  %v6964_v53 = vor.u32 %v6212_v58, %v5830_v6  ;;  %v7000_v8 = vor.u32 %v6201_v61, %v5772_v42  ;;  %v7002_v51 = vor.u32 %v6199_v37, %v5774_v26  ;;  %v6196_v58 = vld [vmem:[#allocation9 + $0x6c] sm:$0xf]  ;;  %v5766_v6 = vld [vmem:[#allocation9 + $0x78] sm:$0xf0]  ;;  %v6189_v56 = vld [vmem:[#allocation9 + $0x2c] sm:$0xf0] }
 0x55c   :  { %v6187_v62 = vld [vmem:[#allocation9 + $0x24] sm:$0xf]  ;;  %v5732_v7 = vld [vmem:[#allocation9 + $0x28] sm:$0xf]  ;;  %v6190_v34 = vld [vmem:[#allocation9 + $0x34] sm:$0xf0] }
 0x55d   :  { %v7049_v47 = vor.u32 %v6190_v34, %v5732_v7  ;;  %v6188_v42 = vld [vmem:[#allocation9 + $0x2c] sm:$0xf]  ;;  %v5734_v61 = vld [vmem:[#allocation9 + $0x38] sm:$0xf0]  ;;  %v5708_v37 = vld [vmem:[#allocation9] sm:$0xf] }
 0x55e   :  { %v5420_v15 = vld [vmem:[#allocation4] sm:$0xf]  ;;  %v6111_v16 = vld [vmem:[#allocation4 + $0x4] sm:$0xf]  ;;  %3296 = vmatpush.bf16.msrb.mxu2 %v5497_v1  ;;  %v5814_v1 = vld [vmem:[#allocation9 + $0xd8] sm:$0xf0] }
 0x55f   :  { %v6933_v17 = vor.u32 %v6112_v13, %v5420_v15  ;;  %v6935_v18 = vor.u32 %v6111_v16, %v5422_v41  ;;  %v6115_v13 = vld [vmem:[#allocation4 + $0x24] sm:$0xf]  ;;  %v6949_v15 = vor.u32 %v6116_v11, %v5436_v28  ;;  %v5820_v41 = vld [vmem:[#allocation9 + $0xe0] sm:$0xf]  ;;  %v6975_v57 = vor.u32 %v6208_v46, %v5814_v1  ;;  %v6118_v3 = vld [vmem:[#allocation4 + $0x34] sm:$0xf0] }
 0x560   :  { %v6951_v16 = vor.u32 %v6115_v13, %v5438_v52  ;;  %v6957_v20 = vor.u32 %v6213_v43, %v5820_v41  ;;  %v5446_v5 = vld [vmem:[#allocation4 + $0x38] sm:$0xf0]  ;;  %v6981_v9 = vor.u32 %v6118_v3, %v5444_v27  ;;  %v5756_v52 = vld [vmem:[#allocation9 + $0x60] sm:$0xf]  ;;  %v6197_v28 = vld [vmem:[#allocation9 + $0x6c] sm:$0xf0] }
 0x561   :  { %3125 = vmatmul.bf16.vlgmr.msrb.gmra.mxu0 %v6933_v17  ;;  %3154 = vmatmul.bf16.vlgmr.msrb.gmra.mxu1 %v6935_v18  ;;  %v6983_v48 = vor.u32 %v6117_v29, %v5446_v5  ;;  %v6195_v13 = vld [vmem:[#allocation9 + $0x64] sm:$0xf]  ;;  %v7017_v41 = vor.u32 %v6197_v28, %v5756_v52  ;;  %v5758_v43 = vld [vmem:[#allocation9 + $0x70] sm:$0xf0]  ;;  %v6194_v46 = vld [vmem:[#allocation9 + $0x54] sm:$0xf0] }
 0x562   :  { %3183 = vmatmul.bf16.vlgmr.msra.gmra.mxu2 %v6933_v17  ;;  %3212 = vmatmul.bf16.vlgmr.msrb.gmra.mxu3 %v6935_v18  ;;  %v7019_v44 = vor.u32 %v6195_v13, %v5758_v43  ;;  %v6192_v1 = vld [vmem:[#allocation9 + $0x4c] sm:$0xf]  ;;  %v7033_v3 = vor.u32 %v6194_v46, %v5748_v63  ;;  %v5750_v5 = vld [vmem:[#allocation9 + $0x58] sm:$0xf0]  ;;  %v5724_v29 = vld [vmem:[#allocation9 + $0x20] sm:$0xf] }
 0x563   :  { %3297 = vmatpush.bf16.msrb.mxu2 %v5481_v31  ;;  %3577 = vmatpush.bf16.msrb.mxu0 %v6957_v20  ;;  %v6991_v31 = vor.u32 %v6203_v50, %v5790_v60  ;;  %v7035_v27 = vor.u32 %v6192_v1, %v5750_v5  ;;  %v7045_v50 = vor.u32 %v6189_v56, %v5724_v29  ;;  %v5726_v60 = vld [vmem:[#allocation9 + $0x30] sm:$0xf0]  ;;  %v6183_v26 = vld [vmem:[#allocation9 + $0x4] sm:$0xf]  ;;  %v6186_v52 = vld [vmem:[#allocation9 + $0x14] sm:$0xf0] }
 0x564   :  { %3590 = vmatpush.bf16.msrb.mxu1 %v6959_v49  ;;  %3616 = vmatpush.bf16.msrb.mxu3 %v6964_v53  ;;  %v7047_v40 = vor.u32 %v6187_v62, %v5726_v60  ;;  %v5710_v35 = vld [vmem:[#allocation9 + $0x10] sm:$0xf0]  ;;  %v6184_v13 = vld [vmem:[#allocation9 + $0xc] sm:$0xf]  ;;  %v5718_v43 = vld [vmem:[#allocation9 + $0x18] sm:$0xf0] }
 0x565   :  { %v7069_v38 = vor.u32 %v6184_v13, %v5718_v43 }
 0x567   :  { %3298 = vmatpush.bf16.msrb.mxu2 %v5465_v19  ;;  %3578 = vmatpush.bf16.msrb.mxu0 %v6968_v32  ;;  %v6200_v19 = vld [vmem:[#allocation9 + $0x8c] sm:$0xf] }
 0x568   :  { %3591 = vmatpush.bf16.msrb.mxu1 %v6970_v4  ;;  %3617 = vmatpush.bf16.msrb.mxu3 %v6975_v57  ;;  %v7007_v11 = vor.u32 %v6200_v19, %v5782_v10  ;;  %v7058_v19 = vor.u32 %v6183_v26, %v5710_v35  ;;  %v5716_v10 = vld [vmem:[#allocation9 + $0x8] sm:$0xf] }
 0x569   :  { %v7061_v28 = vor.u32 %v6186_v52, %v5716_v10 }
 0x56b   :  { %3603 = vmatpush.bf16.msra.mxu2 %v6961_v33  ;;  %3579 = vmatpush.bf16.msrb.mxu0 %v6989_v24 }
 0x56c   :  { %3592 = vmatpush.bf16.msrb.mxu1 %v6991_v31  ;;  %3618 = vmatpush.bf16.msrb.mxu3 %v6996_v54 }
 0x56f   :  { %3604 = vmatpush.bf16.msra.mxu2 %v6973_v0  ;;  %3580 = vmatpush.bf16.msrb.mxu0 %v7000_v8 }
 0x570   :  { %3593 = vmatpush.bf16.msrb.mxu1 %v7002_v51  ;;  %3619 = vmatpush.bf16.msrb.mxu3 %v7007_v11 }
 0x571   :  { %3130 = vmatmul.bf16.gmra.mxu0 %v6941_v23  ;;  %3159 = vmatmul.bf16.gmra.mxu1 %v6943_v55 }
 0x572   :  { %3188 = vmatmul.bf16.gmra.mxu2 %v6941_v23  ;;  %3217 = vmatmul.bf16.gmra.mxu3 %v6943_v55 }
 0x573   :  { %3605 = vmatpush.bf16.msra.mxu2 %v6993_v36  ;;  %3581 = vmatpush.bf16.msrb.mxu0 %v7017_v41 }
 0x574   :  { %3594 = vmatpush.bf16.msrb.mxu1 %v7019_v44 }
 0x577   :  { %3606 = vmatpush.bf16.msra.mxu2 %v7005_v14 }
 0x578   :  { %3595 = vmatpush.bf16.msrb.mxu1 %v7030_v45 }
 0x57b   :  { %3607 = vmatpush.bf16.msra.mxu2 %v7021_v22 }
 0x57c   :  { %3596 = vmatpush.bf16.msrb.mxu1 %v7047_v40 }
 0x57f   :  { %3608 = vmatpush.bf16.msra.mxu2 %v7033_v3 }
 0x580   :  { %3597 = vmatpush.bf16.msrb.mxu1 %v7058_v19 }
 0x581   :  { %3135 = vmatmul.bf16.gmra.mxu0 %v6949_v15  ;;  %3164 = vmatmul.bf16.gmra.mxu1 %v6951_v16 }
 0x582   :  { %3193 = vmatmul.bf16.gmra.mxu2 %v6949_v15  ;;  %3222 = vmatmul.bf16.gmra.mxu3 %v6951_v16 }
 0x583   :  { %3609 = vmatpush.bf16.msra.mxu2 %v7049_v47 }
 0x587   :  { %3610 = vmatpush.bf16.msra.mxu2 %v7061_v28 }
 0x591   :  { %3140 = vmatmul.bf16.gmra.mxu0 %v6981_v9  ;;  %3169 = vmatmul.bf16.gmra.mxu1 %v6983_v48 }
 0x592   :  { %3198 = vmatmul.bf16.gmra.mxu2 %v6981_v9  ;;  %3227 = vmatmul.bf16.gmra.mxu3 %v6983_v48 }
 0x5a1   :  { %3241 = vmatmul.bf16.vlgmr.msra.gmra.mxu0 %v6933_v17  ;;  %3270 = vmatmul.bf16.vlgmr.msra.gmra.mxu1 %v6935_v18 }
 0x5a2   :  { %3299 = vmatmul.bf16.vlgmr.msrb.gmra.mxu2 %v6933_v17  ;;  %3328 = vmatmul.bf16.vlgmr.msra.gmra.mxu3 %v6935_v18  ;;  %v7024_v17 = vor.u32 %v6196_v58, %v5766_v6  ;;  %v6193_v18 = vld [vmem:[#allocation9 + $0x4c] sm:$0xf0] }
 0x5a3   :  { %v7028_v30 = vor.u32 %v6193_v18, %v5740_v39  ;;  %3669 = vmatpush.bf16.msra.mxu1 %v6959_v49  ;;  %3682 = vmatpush.bf16.msrb.mxu2 %v6961_v33 }
 0x5a4   :  { %3620 = vmatpush.bf16.msrb.mxu3 %v7024_v17 }
 0x5a5   :  { %3582 = vmatpush.bf16.msrb.mxu0 %v7028_v30 }
 0x5a7   :  { %3670 = vmatpush.bf16.msra.mxu1 %v6970_v4  ;;  %3683 = vmatpush.bf16.msrb.mxu2 %v6973_v0 }
 0x5a8   :  { %3621 = vmatpush.bf16.msrb.mxu3 %v7035_v27 }
 0x5a9   :  { %3583 = vmatpush.bf16.msrb.mxu0 %v7045_v50 }
 0x5ab   :  { %3671 = vmatpush.bf16.msra.mxu1 %v6991_v31  ;;  %3684 = vmatpush.bf16.msrb.mxu2 %v6993_v36 }
 0x5af   :  { %3672 = vmatpush.bf16.msra.mxu1 %v7002_v51  ;;  %3685 = vmatpush.bf16.msrb.mxu2 %v7005_v14 }
 0x5b1   :  { %3246 = vmatmul.bf16.gmra.mxu0 %v6941_v23  ;;  %3275 = vmatmul.bf16.gmra.mxu1 %v6943_v55 }
 0x5b2   :  { %3304 = vmatmul.bf16.gmra.mxu2 %v6941_v23  ;;  %3333 = vmatmul.bf16.gmra.mxu3 %v6943_v55  ;;  %v7052_v23 = vor.u32 %v6188_v42, %v5734_v61  ;;  %v6185_v55 = vld [vmem:[#allocation9 + $0xc] sm:$0xf0] }
 0x5b3   :  { %v7056_v12 = vor.u32 %v6185_v55, %v5708_v37  ;;  %3673 = vmatpush.bf16.msra.mxu1 %v7019_v44  ;;  %3686 = vmatpush.bf16.msrb.mxu2 %v7021_v22 }
 0x5b4   :  { %3622 = vmatpush.bf16.msrb.mxu3 %v7052_v23 }
 0x5b5   :  { %3584 = vmatpush.bf16.msrb.mxu0 %v7056_v12 }
 0x5b7   :  { %3674 = vmatpush.bf16.msra.mxu1 %v7030_v45  ;;  %3687 = vmatpush.bf16.msrb.mxu2 %v7033_v3 }
 0x5b8   :  { %3623 = vmatpush.bf16.msrb.mxu3 %v7069_v38 }
 0x5b9   :  { %3656 = vmatpush.bf16.msra.mxu0 %v6957_v20 }
 0x5bb   :  { %3675 = vmatpush.bf16.msra.mxu1 %v7047_v40  ;;  %3688 = vmatpush.bf16.msrb.mxu2 %v7049_v47 }
 0x5bc   :  { %3695 = vmatpush.bf16.msra.mxu3 %v6964_v53 }
 0x5bd   :  { %3657 = vmatpush.bf16.msra.mxu0 %v6968_v32 }
 0x5bf   :  { %3676 = vmatpush.bf16.msra.mxu1 %v7058_v19  ;;  %3689 = vmatpush.bf16.msrb.mxu2 %v7061_v28 }
 0x5c0   :  { %3696 = vmatpush.bf16.msra.mxu3 %v6975_v57 }
 0x5c1   :  { %3251 = vmatmul.bf16.gmra.mxu0 %v6949_v15  ;;  %3280 = vmatmul.bf16.gmra.mxu1 %v6951_v16 }
 0x5c2   :  { %3309 = vmatmul.bf16.gmra.mxu2 %v6949_v15  ;;  %3338 = vmatmul.bf16.gmra.mxu3 %v6951_v16  ;;  %v7108_v15 = vld [vmem:[%s7575_s5] sm:$0xf] }
 0x5c3   :  { %3658 = vmatpush.bf16.msra.mxu0 %v6989_v24  ;;  %v7113_v16 = vperm.slane %v7108_v15, 0  ;;  %v7125_v6 = vperm.slane %v7108_v15, 1 }
 0x5c4   :  { %3697 = vmatpush.bf16.msra.mxu3 %v6996_v54 }
 0x5c7   :  { %3659 = vmatpush.bf16.msra.mxu0 %v7000_v8 }
 0x5c8   :  { %3698 = vmatpush.bf16.msra.mxu3 %v7007_v11 }
 0x5cb   :  { %3660 = vmatpush.bf16.msra.mxu0 %v7017_v41 }
 0x5cc   :  { %3699 = vmatpush.bf16.msra.mxu3 %v7024_v17 }
 0x5cf   :  { %3661 = vmatpush.bf16.msra.mxu0 %v7028_v30 }
 0x5d0   :  { %3700 = vmatpush.bf16.msra.mxu3 %v7035_v27 }
 0x5d1   :  { %3256 = vmatmul.bf16.gmra.mxu0 %v6981_v9  ;;  %3285 = vmatmul.bf16.gmra.mxu1 %v6983_v48 }
 0x5d2   :  { %3314 = vmatmul.bf16.gmra.mxu2 %v6981_v9  ;;  %3343 = vmatmul.bf16.gmra.mxu3 %v6983_v48 }
 0x5d3   :  { %3662 = vmatpush.bf16.msra.mxu0 %v7045_v50 }
 0x5d4   :  { %3701 = vmatpush.bf16.msra.mxu3 %v7052_v23 }
 0x5d7   :  { %3663 = vmatpush.bf16.msra.mxu0 %v7056_v12 }
 0x5d8   :  { %3702 = vmatpush.bf16.msra.mxu3 %v7069_v38 }
 0x5de   :  { %v3126_v9 = vpop.f32.mrf.mxu0  ;;  %v3155_v48 = vpop.f32.mrf.mxu1 }
 0x5df   :  { %v3127_v2 = vadd.f32 %v3126_v9, %v7113_v16 }
 0x5e1   :  { %v7118_v58 = vadd.f32 %v3155_v48, %v3127_v2  ;;  %3585 = vmatmul.bf16.vlgmr.msrb.gmra.mxu0 %v6509_v21  ;;  %3598 = vmatmul.bf16.vlgmr.msrb.gmra.mxu1 %v6509_v21 }
 0x5e2   :  { %3611 = vmatmul.bf16.vlgmr.msra.gmra.mxu2 %v6509_v21  ;;  %3624 = vmatmul.bf16.vlgmr.msrb.gmra.mxu3 %v6509_v21 }
 0x5e3   :  { %3735 = vmatpush.bf16.msrb.mxu0 %v6957_v20  ;;  %3748 = vmatpush.bf16.msrb.mxu1 %v6959_v49 }
 0x5e4   :  { %3761 = vmatpush.bf16.msra.mxu2 %v6961_v33  ;;  %3774 = vmatpush.bf16.msrb.mxu3 %v6964_v53 }
 0x5e5   :  { %v3184_v39 = vpop.f32.mrf.mxu2  ;;  %v3213_v18 = vpop.f32.mrf.mxu3 }
 0x5e6   :  { %v3185_v59 = vadd.f32 %v3184_v39, %v7125_v6  ;;  %v7132_v25 = vpop.f32.mrf.mxu0  ;;  %v7134_v63 = vpop.f32.mrf.mxu1 }
 0x5e7   :  { %3736 = vmatpush.bf16.msrb.mxu0 %v6968_v32  ;;  %3749 = vmatpush.bf16.msrb.mxu1 %v6970_v4 }
 0x5e8   :  { %v7138_v21 = vadd.f32 %v3213_v18, %v3185_v59  ;;  %3762 = vmatpush.bf16.msra.mxu2 %v6973_v0  ;;  %3775 = vmatpush.bf16.msrb.mxu3 %v6975_v57 }
 0x5eb   :  { %3737 = vmatpush.bf16.msrb.mxu0 %v6989_v24  ;;  %3750 = vmatpush.bf16.msrb.mxu1 %v6991_v31 }
 0x5ec   :  { %3763 = vmatpush.bf16.msra.mxu2 %v6993_v36  ;;  %3776 = vmatpush.bf16.msrb.mxu3 %v6996_v54 }
 0x5ed   :  { %v7146_v46 = vpop.f32.mrf.mxu2  ;;  %v7148_v1 = vpop.f32.mrf.mxu3 }
 0x5ee   :  { %v3131_v5 = vpop.f32.mrf.mxu0  ;;  %v3160_v29 = vpop.f32.mrf.mxu1 }
 0x5ef   :  { %v3132_v56 = vadd.f32 %v3131_v5, %v7113_v16  ;;  %3738 = vmatpush.bf16.msrb.mxu0 %v7000_v8  ;;  %3751 = vmatpush.bf16.msrb.mxu1 %v7002_v51 }
 0x5f0   :  { %3764 = vmatpush.bf16.msra.mxu2 %v7005_v14  ;;  %3777 = vmatpush.bf16.msrb.mxu3 %v7007_v11 }
 0x5f1   :  { %v7155_v62 = vadd.f32 %v3160_v29, %v3132_v56 }
 0x5f3   :  { %7581 = vst [vmem:[#allocation12_spill] sm:$0xff] %v7155_v62  ;;  %3739 = vmatpush.bf16.msrb.mxu0 %v7017_v41  ;;  %3752 = vmatpush.bf16.msrb.mxu1 %v7019_v44 }
 0x5f4   :  { %3765 = vmatpush.bf16.msra.mxu2 %v7021_v22  ;;  %3778 = vmatpush.bf16.msrb.mxu3 %v7024_v17 }
 0x5f5   :  { %v3189_v60 = vpop.f32.mrf.mxu2  ;;  %v3218_v7 = vpop.f32.mrf.mxu3 }
 0x5f6   :  { %v3190_v34 = vadd.f32 %v3189_v60, %v7125_v6  ;;  %v7162_v42 = vpop.f32.mrf.mxu0  ;;  %v7164_v61 = vpop.f32.mrf.mxu1 }
 0x5f7   :  { %7582 = vst [vmem:[#allocation13_spill] sm:$0xff] %v7162_v42  ;;  %3740 = vmatpush.bf16.msrb.mxu0 %v7028_v30  ;;  %3753 = vmatpush.bf16.msrb.mxu1 %v7030_v45 }
 0x5f8   :  { %7583 = vst [vmem:[#allocation14_spill] sm:$0xff] %v7164_v61  ;;  %v7168_v37 = vadd.f32 %v3218_v7, %v3190_v34  ;;  %3766 = vmatpush.bf16.msra.mxu2 %v7033_v3  ;;  %3779 = vmatpush.bf16.msrb.mxu3 %v7035_v27 }
 0x5fa   :  { %7584 = vst [vmem:[#allocation15_spill] sm:$0xff] %v7168_v37 }
 0x5fb   :  { %3741 = vmatpush.bf16.msrb.mxu0 %v7045_v50  ;;  %3754 = vmatpush.bf16.msrb.mxu1 %v7047_v40 }
 0x5fc   :  { %3767 = vmatpush.bf16.msra.mxu2 %v7049_v47  ;;  %3780 = vmatpush.bf16.msrb.mxu3 %v7052_v23 }
 0x5fd   :  { %v7176_v55 = vpop.f32.mrf.mxu2  ;;  %v7178_v26 = vpop.f32.mrf.mxu3 }
 0x5fe   :  { %7585 = vst [vmem:[#allocation16_spill] sm:$0xff] %v7176_v55  ;;  %v3136_v35 = vpop.f32.mrf.mxu0  ;;  %v3165_v10 = vpop.f32.mrf.mxu1 }
 0x5ff   :  { %7586 = vst [vmem:[#allocation17_spill] sm:$0xff] %v7178_v26  ;;  %v3137_v52 = vadd.f32 %v3136_v35, %v7113_v16  ;;  %3742 = vmatpush.bf16.msrb.mxu0 %v7056_v12  ;;  %3755 = vmatpush.bf16.msrb.mxu1 %v7058_v19 }
 0x600   :  { %3768 = vmatpush.bf16.msra.mxu2 %v7061_v28  ;;  %3781 = vmatpush.bf16.msrb.mxu3 %v7069_v38 }
 0x601   :  { %v7185_v13 = vadd.f32 %v3165_v10, %v3137_v52 }
 0x603   :  { %7587 = vst [vmem:[#allocation18_spill] sm:$0xff] %v7185_v13 }
 0x605   :  { %v3194_v43 = vpop.f32.mrf.mxu2  ;;  %v3223_v9 = vpop.f32.mrf.mxu3 }
 0x606   :  { %v3195_v48 = vadd.f32 %v3194_v43, %v7125_v6  ;;  %v7188_v2 = vpop.f32.mrf.mxu0  ;;  %v7190_v39 = vpop.f32.mrf.mxu1 }
 0x607   :  { %7588 = vst [vmem:[#allocation19_spill] sm:$0xff] %v7188_v2 }
 0x608   :  { %7589 = vst [vmem:[#allocation20_spill] sm:$0xff] %v7190_v39  ;;  %v7192_v18 = vadd.f32 %v3223_v9, %v3195_v48 }
 0x60a   :  { %7590 = vst [vmem:[#allocation21_spill] sm:$0xff] %v7192_v18 }
 0x60d   :  { %v7194_v59 = vpop.f32.mrf.mxu2  ;;  %v7196_v5 = vpop.f32.mrf.mxu3 }
 0x60e   :  { %7591 = vst [vmem:[#allocation22_spill] sm:$0xff] %v7194_v59  ;;  %v3141_v29 = vpop.f32.mrf.mxu0  ;;  %v3170_v56 = vpop.f32.mrf.mxu1 }
 0x60f   :  { %7592 = vst [vmem:[#allocation23_spill] sm:$0xff] %v7196_v5  ;;  %v3142_v60 = vadd.f32 %v3141_v29, %v7113_v16  ;;  %v2752_v29 = vperm.slane %v7108_v15, 3 }
 0x611   :  { %v7199_v7 = vadd.f32 %v3170_v56, %v3142_v60  ;;  %v7218_v56 = vperm.slane %v7108_v15, 2 }
 0x613   :  { %7593 = vst [vmem:[#allocation24_spill] sm:$0xff] %v7199_v7 }
 0x615   :  { %v3199_v34 = vpop.f32.mrf.mxu2  ;;  %v3228_v35 = vpop.f32.mrf.mxu3 }
 0x616   :  { %v3200_v10 = vadd.f32 %v3199_v34, %v7125_v6  ;;  %v7202_v52 = vpop.f32.mrf.mxu0  ;;  %v7204_v43 = vpop.f32.mrf.mxu1 }
 0x617   :  { %7594 = vst [vmem:[#allocation25_spill] sm:$0xff] %v7202_v52 }
 0x618   :  { %7595 = vst [vmem:[#allocation26_spill] sm:$0xff] %v7204_v43  ;;  %v7206_v9 = vadd.f32 %v3228_v35, %v3200_v10 }
 0x61a   :  { %7596 = vst [vmem:[#allocation27_spill] sm:$0xff] %v7206_v9 }
 0x61d   :  { %v7208_v48 = vpop.f32.mrf.mxu2  ;;  %v7210_v39 = vpop.f32.mrf.mxu3 }
 0x61e   :  { %7597 = vst [vmem:[#allocation28_spill] sm:$0xff] %v7208_v48  ;;  %v7212_v5 = vpop.f32.mrf.mxu0  ;;  %v7214_v59 = vpop.f32.mrf.mxu1 }
 0x61f   :  { %7598 = vst [vmem:[#allocation29_spill] sm:$0xff] %v7210_v39 }
 0x625   :  { %v3300_v60 = vpop.f32.mrf.mxu2  ;;  %v3329_v34 = vpop.f32.mrf.mxu3 }
 0x626   :  { %v3301_v52 = vadd.f32 %v3300_v60, %v2752_v29  ;;  %v3244_v7 = vpop.f32.mrf.mxu0  ;;  %v3273_v43 = vpop.f32.mrf.mxu1 }
 0x627   :  { %v3245_v35 = vadd.f32 %v3244_v7, %v7218_v56 }
 0x628   :  { %v7221_v10 = vadd.f32 %v3329_v34, %v3301_v52 }
 0x629   :  { %v7223_v48 = vadd.f32 %v3273_v43, %v3245_v35 }
 0x62b   :  { %7599 = vst [vmem:[#allocation30_spill] sm:$0xff] %v7223_v48 }
 0x62d   :  { %v3302_v39 = vpop.f32.mrf.mxu2  ;;  %v3331_v9 = vpop.f32.mrf.mxu3 }
 0x62e   :  { %v3303_v2 = vadd.f32 %v3302_v39, %v2752_v29  ;;  %v3247_v18 = vpop.f32.mrf.mxu0  ;;  %v3276_v13 = vpop.f32.mrf.mxu1 }
 0x62f   :  { %v3248_v26 = vadd.f32 %v3247_v18, %v7218_v56 }
 0x630   :  { %v7226_v15 = vadd.f32 %v3331_v9, %v3303_v2 }
 0x631   :  { %v7228_v61 = vadd.f32 %v3276_v13, %v3248_v26 }
 0x632   :  { %7600 = vst [vmem:[#allocation31_spill] sm:$0xff] %v7226_v15 }
 0x633   :  { %7601 = vst [vmem:[#allocation32_spill] sm:$0xff] %v7228_v61 }
 0x635   :  { %v3305_v60 = vpop.f32.mrf.mxu2  ;;  %v3334_v55 = vpop.f32.mrf.mxu3 }
 0x636   :  { %v3306_v42 = vadd.f32 %v3305_v60, %v2752_v29  ;;  %v3249_v37 = vpop.f32.mrf.mxu0  ;;  %v3278_v7 = vpop.f32.mrf.mxu1 }
 0x637   :  { %v3250_v52 = vadd.f32 %v3249_v37, %v7218_v56 }
 0x638   :  { %v7231_v43 = vadd.f32 %v3334_v55, %v3306_v42 }
 0x639   :  { %v7233_v34 = vadd.f32 %v3278_v7, %v3250_v52 }
 0x63a   :  { %7602 = vst [vmem:[#allocation33_spill] sm:$0xff] %v7231_v43 }
 0x63b   :  { %7603 = vst [vmem:[#allocation34_spill] sm:$0xff] %v7233_v34 }
 0x63d   :  { %v3307_v39 = vpop.f32.mrf.mxu2  ;;  %v3336_v35 = vpop.f32.mrf.mxu3 }
 0x63e   :  { %v3308_v62 = vadd.f32 %v3307_v39, %v2752_v29  ;;  %v3252_v48 = vpop.f32.mrf.mxu0  ;;  %v3281_v18 = vpop.f32.mrf.mxu1 }
 0x63f   :  { %v3253_v2 = vadd.f32 %v3252_v48, %v7218_v56 }
 0x640   :  { %v7236_v26 = vadd.f32 %v3336_v35, %v3308_v62 }
 0x641   :  { %v7238_v13 = vadd.f32 %v3281_v18, %v3253_v2 }
 0x642   :  { %7604 = vst [vmem:[#allocation35_spill] sm:$0xff] %v7236_v26 }
 0x643   :  { %7605 = vst [vmem:[#allocation36_spill] sm:$0xff] %v7238_v13 }
 0x645   :  { %v3310_v9 = vpop.f32.mrf.mxu2  ;;  %v3339_v60 = vpop.f32.mrf.mxu3 }
 0x646   :  { %v3311_v61 = vadd.f32 %v3310_v9, %v2752_v29  ;;  %v3254_v15 = vpop.f32.mrf.mxu0  ;;  %v3283_v37 = vpop.f32.mrf.mxu1 }
 0x647   :  { %v3255_v42 = vadd.f32 %v3254_v15, %v7218_v56 }
 0x648   :  { %v7241_v55 = vadd.f32 %v3339_v60, %v3311_v61 }
 0x649   :  { %v7243_v7 = vadd.f32 %v3283_v37, %v3255_v42 }
 0x64a   :  { %7606 = vst [vmem:[#allocation37_spill] sm:$0xff] %v7241_v55 }
 0x64b   :  { %7607 = vst [vmem:[#allocation38_spill] sm:$0xff] %v7243_v7 }
 0x64d   :  { %v3312_v52 = vpop.f32.mrf.mxu2  ;;  %v3341_v39 = vpop.f32.mrf.mxu3 }
 0x64e   :  { %v3313_v34 = vadd.f32 %v3312_v52, %v2752_v29  ;;  %v3257_v43 = vpop.f32.mrf.mxu0  ;;  %v3286_v48 = vpop.f32.mrf.mxu1 }
 0x64f   :  { %v3258_v62 = vadd.f32 %v3257_v43, %v7218_v56 }
 0x650   :  { %v7246_v35 = vadd.f32 %v3341_v39, %v3313_v34 }
 0x651   :  { %v7248_v18 = vadd.f32 %v3286_v48, %v3258_v62  ;;  %v3243_v48 = vadd.f32 %v7212_v5, %v7218_v56 }
 0x655   :  { %v3315_v2 = vpop.f32.mrf.mxu2  ;;  %v3344_v9 = vpop.f32.mrf.mxu3 }
 0x656   :  { %v3316_v13 = vadd.f32 %v3315_v2, %v2752_v29  ;;  %v3259_v26 = vpop.f32.mrf.mxu0  ;;  %v3288_v15 = vpop.f32.mrf.mxu1 }
 0x657   :  { %v3260_v61 = vadd.f32 %v3259_v26, %v7218_v56 }
 0x658   :  { %v7251_v60 = vadd.f32 %v3344_v9, %v3316_v13  ;;  %v3272_v13 = vadd.f32 %v7214_v59, %v3243_v48 }
 0x659   :  { %v7253_v37 = vadd.f32 %v3288_v15, %v3260_v61 }
 0x65d   :  { %v3317_v42 = vpop.f32.mrf.mxu2  ;;  %v3346_v52 = vpop.f32.mrf.mxu3 }
 0x65e   :  { %v3318_v7 = vadd.f32 %v3317_v42, %v2752_v29  ;;  %v3586_v55 = vpop.f32.mrf.mxu0  ;;  %v3599_v43 = vpop.f32.mrf.mxu1 }
 0x65f   :  { %v3629_v34 = vadd.f32 %v3586_v55, %v7118_v58  ;;  %v3630_v39 = vadd.f32 %v3599_v43, %v7138_v21 }
 0x660   :  { %v7259_v62 = vadd.f32 %v3346_v52, %v3318_v7 }
 0x661   :  { %v3633_v2 = vmul.f32 0.5, %v3629_v34  ;;  %v3637_v26 = vmul.f32 0.5, %v3630_v39 }
 0x663   :  { %6346 = vtanh.f32 %v3633_v2 }
 0x664   :  { %6348 = vtanh.f32 %v3637_v26 }
 0x665   :  { %v3612_v9 = vpop.f32.mrf.mxu2  ;;  %v3625_v15 = vpop.f32.mrf.mxu3 }
 0x666   :  { %v3631_v29 = vadd.f32 %v3612_v9, %v3272_v13  ;;  %v3632_v61 = vadd.f32 %v3625_v15, %v7221_v10  ;;  %v3588_v42 = vpop.f32.mrf.mxu0  ;;  %v3601_v58 = vpop.f32.mrf.mxu1 }
 0x667   :  { %v3129_v42 = vadd.f32 %v7132_v25, %v7113_v16  ;;  %v3187_v58 = vadd.f32 %v7146_v46, %v7125_v6  ;;  %v7609_v25 = vld [vmem:[#allocation31_spill] sm:$0xff] }
 0x668   :  { %6350 = vtanh.f32 %v3631_v29  ;;  %v3642_v21 = vmul.f32 0.5, %v3632_v61 }
 0x669   :  { %v6347_v55 = vpop.eup %6346 }
 0x66a   :  { %v6349_v43 = vpop.eup %6348  ;;  %v3635_v5 = vmul.f32 0.5, %v6347_v55  ;;  %6352 = vtanh.f32 %v3642_v21  ;;  %v3158_v21 = vadd.f32 %v7134_v63, %v3129_v42  ;;  %v3216_v55 = vadd.f32 %v7148_v1, %v3187_v58 }
 0x66b   :  { %v3639_v56 = vmul.f32 0.5, %v6349_v43 }
 0x66c   :  { %v3636_v7 = vadd.f32 0.5, %v3635_v5 }
 0x66d   :  { %v3640_v52 = vadd.f32 0.5, %v3639_v56  ;;  %v3614_v34 = vpop.f32.mrf.mxu2  ;;  %v3627_v39 = vpop.f32.mrf.mxu3 }
 0x66e   :  { %v6351_v59 = vpop.eup %6350 }
 0x66f   :  { %v3646_v48 = vmul.f32 0.0, %v3640_v52  ;;  %v3647_v2 = vmul.f32 %v6351_v59, %v3636_v7 }
 0x670   :  { %v6353_v26 = vpop.eup %6352 }
 0x671   :  { %v7263_v13 = vadd.f32 %v3647_v2, %v3646_v48  ;;  %v3644_v10 = vmul.f32 0.5, %v6353_v26  ;;  %v7608_v48 = vld [vmem:[#allocation30_spill] sm:$0xff] }
 0x673   :  { %6354 = vtanh.f32 %v7263_v13  ;;  %v3645_v9 = vadd.f32 0.5, %v3644_v10 }
 0x679   :  { %v6355_v15 = vpop.eup %6354 }
 0x67a   :  { %v3650_v29 = vmul.f32 %v6355_v15, %v3645_v9 }
 0x67c   :  { %v3655_v61 = vpack.c.bf16 %v3650_v29, %v3650_v29 }
 0x67e   :  { %3664 = vmatmul.bf16.vlgmr.msra.gmra.mxu0 %v3655_v61  ;;  %3677 = vmatmul.bf16.vlgmr.msra.gmra.mxu1 %v3655_v61 }
 0x67f   :  { %3690 = vmatmul.bf16.vlgmr.msrb.gmra.mxu2 %v3655_v61  ;;  %3703 = vmatmul.bf16.vlgmr.msra.gmra.mxu3 %v3655_v61 }
 0x680   :  { %3814 = vmatpush.bf16.msra.mxu0 %v6957_v20  ;;  %3827 = vmatpush.bf16.msra.mxu1 %v6959_v49 }
 0x681   :  { %3840 = vmatpush.bf16.msrb.mxu2 %v6961_v33  ;;  %3853 = vmatpush.bf16.msra.mxu3 %v6964_v53 }
 0x684   :  { %3815 = vmatpush.bf16.msra.mxu0 %v6968_v32  ;;  %3828 = vmatpush.bf16.msra.mxu1 %v6970_v4 }
 0x685   :  { %3841 = vmatpush.bf16.msrb.mxu2 %v6973_v0  ;;  %3854 = vmatpush.bf16.msra.mxu3 %v6975_v57 }
 0x688   :  { %3816 = vmatpush.bf16.msra.mxu0 %v6989_v24  ;;  %3829 = vmatpush.bf16.msra.mxu1 %v6991_v31 }
 0x689   :  { %3842 = vmatpush.bf16.msrb.mxu2 %v6993_v36  ;;  %3855 = vmatpush.bf16.msra.mxu3 %v6996_v54 }
 0x68c   :  { %3817 = vmatpush.bf16.msra.mxu0 %v7000_v8  ;;  %3830 = vmatpush.bf16.msra.mxu1 %v7002_v51 }
 0x68d   :  { %3843 = vmatpush.bf16.msrb.mxu2 %v7005_v14  ;;  %3856 = vmatpush.bf16.msra.mxu3 %v7007_v11 }
 0x690   :  { %3818 = vmatpush.bf16.msra.mxu0 %v7017_v41  ;;  %3831 = vmatpush.bf16.msra.mxu1 %v7019_v44 }
 0x691   :  { %3844 = vmatpush.bf16.msrb.mxu2 %v7021_v22  ;;  %3857 = vmatpush.bf16.msra.mxu3 %v7024_v17 }
 0x694   :  { %3819 = vmatpush.bf16.msra.mxu0 %v7028_v30  ;;  %3832 = vmatpush.bf16.msra.mxu1 %v7030_v45 }
 0x695   :  { %3845 = vmatpush.bf16.msrb.mxu2 %v7033_v3  ;;  %3858 = vmatpush.bf16.msra.mxu3 %v7035_v27 }
 0x698   :  { %3820 = vmatpush.bf16.msra.mxu0 %v7045_v50  ;;  %3833 = vmatpush.bf16.msra.mxu1 %v7047_v40 }
 0x699   :  { %3846 = vmatpush.bf16.msrb.mxu2 %v7049_v47  ;;  %3859 = vmatpush.bf16.msra.mxu3 %v7052_v23 }
 0x69c   :  { %3821 = vmatpush.bf16.msra.mxu0 %v7056_v12  ;;  %3834 = vmatpush.bf16.msra.mxu1 %v7058_v19 }
 0x69d   :  { %3847 = vmatpush.bf16.msrb.mxu2 %v7061_v28  ;;  %3860 = vmatpush.bf16.msra.mxu3 %v7069_v38 }
 0x6fb   :  { %v3665_v43 = vpop.f32.mrf.mxu0  ;;  %v3678_v5 = vpop.f32.mrf.mxu1 }
 0x6fc   :  { %v3708_v56 = vadd.f32 %v3665_v43, %v3158_v21  ;;  %v3709_v7 = vadd.f32 %v3678_v5, %v3216_v55 }
 0x6fe   :  { %v3712_v52 = vmul.f32 0.5, %v3708_v56  ;;  %v3716_v34 = vmul.f32 0.5, %v3709_v7 }
 0x700   :  { %6356 = vtanh.f32 %v3712_v52 }
 0x701   :  { %6358 = vtanh.f32 %v3716_v34 }
 0x702   :  { %v3691_v39 = vpop.f32.mrf.mxu2  ;;  %v3704_v59 = vpop.f32.mrf.mxu3 }
 0x703   :  { %v3710_v2 = vadd.f32 %v3691_v39, %v7608_v48  ;;  %v3711_v26 = vadd.f32 %v3704_v59, %v7609_v25  ;;  %v3667_v10 = vpop.f32.mrf.mxu0  ;;  %v3680_v46 = vpop.f32.mrf.mxu1  ;;  %v7610_v25 = vld [vmem:[#allocation12_spill] sm:$0xff] }
 0x704   :  { %v7611_v10 = vld [vmem:[#allocation15_spill] sm:$0xff] }
 0x705   :  { %6360 = vtanh.f32 %v3710_v2  ;;  %v3721_v63 = vmul.f32 0.5, %v3711_v26 }
 0x706   :  { %v6357_v9 = vpop.eup %6356 }
 0x707   :  { %v6359_v1 = vpop.eup %6358  ;;  %v3714_v15 = vmul.f32 0.5, %v6357_v9  ;;  %6362 = vtanh.f32 %v3721_v63 }
 0x708   :  { %v3718_v29 = vmul.f32 0.5, %v6359_v1 }
 0x709   :  { %v3715_v61 = vadd.f32 0.5, %v3714_v15 }
 0x70a   :  { %v3719_v42 = vadd.f32 0.5, %v3718_v29  ;;  %v3693_v58 = vpop.f32.mrf.mxu2  ;;  %v3706_v21 = vpop.f32.mrf.mxu3  ;;  %v7612_v29 = vld [vmem:[#allocation32_spill] sm:$0xff] }
 0x70b   :  { %v6361_v55 = vpop.eup %6360 }
 0x70c   :  { %v3725_v43 = vmul.f32 %v3719_v42, %v7263_v13  ;;  %v3726_v5 = vmul.f32 %v6361_v55, %v3715_v61  ;;  %v7613_v42 = vld [vmem:[#allocation33_spill] sm:$0xff] }
 0x70d   :  { %v6363_v56 = vpop.eup %6362 }
 0x70e   :  { %v7307_v7 = vadd.f32 %v3726_v5, %v3725_v43  ;;  %v3723_v52 = vmul.f32 0.5, %v6363_v56 }
 0x710   :  { %6364 = vtanh.f32 %v7307_v7  ;;  %v3724_v34 = vadd.f32 0.5, %v3723_v52 }
 0x716   :  { %v6365_v39 = vpop.eup %6364 }
 0x717   :  { %v3729_v59 = vmul.f32 %v6365_v39, %v3724_v34 }
 0x719   :  { %v3734_v48 = vpack.c.bf16 %v3729_v59, %v3729_v59 }
 0x71b   :  { %3743 = vmatmul.bf16.vlgmr.msrb.gmra.mxu0 %v3734_v48  ;;  %3756 = vmatmul.bf16.vlgmr.msrb.gmra.mxu1 %v3734_v48 }
 0x71c   :  { %3769 = vmatmul.bf16.vlgmr.msra.gmra.mxu2 %v3734_v48  ;;  %3782 = vmatmul.bf16.vlgmr.msrb.gmra.mxu3 %v3734_v48 }
 0x71d   :  { %3893 = vmatpush.bf16.msrb.mxu0 %v6957_v20  ;;  %3906 = vmatpush.bf16.msrb.mxu1 %v6959_v49 }
 0x71e   :  { %3919 = vmatpush.bf16.msra.mxu2 %v6961_v33  ;;  %3932 = vmatpush.bf16.msrb.mxu3 %v6964_v53 }
 0x721   :  { %3894 = vmatpush.bf16.msrb.mxu0 %v6968_v32  ;;  %3907 = vmatpush.bf16.msrb.mxu1 %v6970_v4 }
 0x722   :  { %3920 = vmatpush.bf16.msra.mxu2 %v6973_v0  ;;  %3933 = vmatpush.bf16.msrb.mxu3 %v6975_v57 }
 0x725   :  { %3895 = vmatpush.bf16.msrb.mxu0 %v6989_v24  ;;  %3908 = vmatpush.bf16.msrb.mxu1 %v6991_v31 }
 0x726   :  { %3921 = vmatpush.bf16.msra.mxu2 %v6993_v36  ;;  %3934 = vmatpush.bf16.msrb.mxu3 %v6996_v54 }
 0x729   :  { %3896 = vmatpush.bf16.msrb.mxu0 %v7000_v8  ;;  %3909 = vmatpush.bf16.msrb.mxu1 %v7002_v51 }
 0x72a   :  { %3922 = vmatpush.bf16.msra.mxu2 %v7005_v14  ;;  %3935 = vmatpush.bf16.msrb.mxu3 %v7007_v11 }
 0x72d   :  { %3897 = vmatpush.bf16.msrb.mxu0 %v7017_v41  ;;  %3910 = vmatpush.bf16.msrb.mxu1 %v7019_v44 }
 0x72e   :  { %3923 = vmatpush.bf16.msra.mxu2 %v7021_v22  ;;  %3936 = vmatpush.bf16.msrb.mxu3 %v7024_v17 }
 0x731   :  { %3898 = vmatpush.bf16.msrb.mxu0 %v7028_v30  ;;  %3911 = vmatpush.bf16.msrb.mxu1 %v7030_v45 }
 0x732   :  { %3924 = vmatpush.bf16.msra.mxu2 %v7033_v3  ;;  %3937 = vmatpush.bf16.msrb.mxu3 %v7035_v27 }
 0x735   :  { %3899 = vmatpush.bf16.msrb.mxu0 %v7045_v50  ;;  %3912 = vmatpush.bf16.msrb.mxu1 %v7047_v40 }
 0x736   :  { %3925 = vmatpush.bf16.msra.mxu2 %v7049_v47  ;;  %3938 = vmatpush.bf16.msrb.mxu3 %v7052_v23 }
 0x739   :  { %3900 = vmatpush.bf16.msrb.mxu0 %v7056_v12  ;;  %3913 = vmatpush.bf16.msrb.mxu1 %v7058_v19 }
 0x73a   :  { %3926 = vmatpush.bf16.msra.mxu2 %v7061_v28  ;;  %3939 = vmatpush.bf16.msrb.mxu3 %v7069_v38 }
 0x798   :  { %v3744_v13 = vpop.f32.mrf.mxu0  ;;  %v3757_v2 = vpop.f32.mrf.mxu1 }
 0x799   :  { %v3787_v26 = vadd.f32 %v3744_v13, %v7610_v25  ;;  %v3788_v46 = vadd.f32 %v3757_v2, %v7611_v10 }
 0x79b   :  { %v3791_v63 = vmul.f32 0.5, %v3787_v26  ;;  %v3795_v9 = vmul.f32 0.5, %v3788_v46 }
 0x79d   :  { %6366 = vtanh.f32 %v3791_v63 }
 0x79e   :  { %6368 = vtanh.f32 %v3795_v9 }
 0x79f   :  { %v3770_v1 = vpop.f32.mrf.mxu2  ;;  %v3783_v15 = vpop.f32.mrf.mxu3 }
 0x7a0   :  { %v3789_v61 = vadd.f32 %v3770_v1, %v7612_v29  ;;  %v3790_v58 = vadd.f32 %v3783_v15, %v7613_v42  ;;  %v3746_v21 = vpop.f32.mrf.mxu0  ;;  %v3759_v55 = vpop.f32.mrf.mxu1  ;;  %v7615_v42 = vld [vmem:[#allocation16_spill] sm:$0xff] }
 0x7a1   :  { %v7616_v21 = vld [vmem:[#allocation14_spill] sm:$0xff] }
 0x7a2   :  { %6370 = vtanh.f32 %v3789_v61  ;;  %v3800_v43 = vmul.f32 0.5, %v3790_v58  ;;  %v3192_v58 = vadd.f32 %v7615_v42, %v7125_v6 }
 0x7a3   :  { %v6367_v5 = vpop.eup %6366 }
 0x7a4   :  { %v6369_v56 = vpop.eup %6368  ;;  %v3793_v52 = vmul.f32 0.5, %v6367_v5  ;;  %6372 = vtanh.f32 %v3800_v43  ;;  %v7617_v43 = vld [vmem:[#allocation17_spill] sm:$0xff] }
 0x7a5   :  { %v3797_v34 = vmul.f32 0.5, %v6369_v56  ;;  %v3221_v5 = vadd.f32 %v7617_v43, %v3192_v58 }
 0x7a6   :  { %v3794_v39 = vadd.f32 0.5, %v3793_v52 }
 0x7a7   :  { %v3798_v59 = vadd.f32 0.5, %v3797_v34  ;;  %v3772_v48 = vpop.f32.mrf.mxu2  ;;  %v3785_v13 = vpop.f32.mrf.mxu3 }
 0x7a8   :  { %v6371_v2 = vpop.eup %6370 }
 0x7a9   :  { %v3804_v25 = vmul.f32 %v3798_v59, %v7307_v7  ;;  %v3805_v26 = vmul.f32 %v6371_v2, %v3794_v39  ;;  %v7614_v7 = vld [vmem:[#allocation13_spill] sm:$0xff] }
 0x7aa   :  { %v6373_v10 = vpop.eup %6372  ;;  %v3134_v61 = vadd.f32 %v7614_v7, %v7113_v16 }
 0x7ab   :  { %v7347_v46 = vadd.f32 %v3805_v26, %v3804_v25  ;;  %v3802_v63 = vmul.f32 0.5, %v6373_v10  ;;  %v7618_v25 = vld [vmem:[#allocation34_spill] sm:$0xff]  ;;  %v7619_v10 = vld [vmem:[#allocation35_spill] sm:$0xff] }
 0x7ac   :  { %v3163_v55 = vadd.f32 %v7616_v21, %v3134_v61 }
 0x7ad   :  { %6374 = vtanh.f32 %v7347_v46  ;;  %v3803_v9 = vadd.f32 0.5, %v3802_v63 }
 0x7b3   :  { %v6375_v1 = vpop.eup %6374 }
 0x7b4   :  { %v3808_v15 = vmul.f32 %v6375_v1, %v3803_v9 }
 0x7b6   :  { %v3813_v29 = vpack.c.bf16 %v3808_v15, %v3808_v15 }
 0x7b8   :  { %3822 = vmatmul.bf16.vlgmr.msra.gmra.mxu0 %v3813_v29  ;;  %3835 = vmatmul.bf16.vlgmr.msra.gmra.mxu1 %v3813_v29 }
 0x7b9   :  { %3848 = vmatmul.bf16.vlgmr.msrb.gmra.mxu2 %v3813_v29  ;;  %3861 = vmatmul.bf16.vlgmr.msra.gmra.mxu3 %v3813_v29 }
 0x7ba   :  { %3972 = vmatpush.bf16.msra.mxu0 %v6957_v20  ;;  %3985 = vmatpush.bf16.msra.mxu1 %v6959_v49 }
 0x7bb   :  { %3998 = vmatpush.bf16.msrb.mxu2 %v6961_v33  ;;  %4011 = vmatpush.bf16.msra.mxu3 %v6964_v53 }
 0x7be   :  { %3973 = vmatpush.bf16.msra.mxu0 %v6968_v32  ;;  %3986 = vmatpush.bf16.msra.mxu1 %v6970_v4 }
 0x7bf   :  { %3999 = vmatpush.bf16.msrb.mxu2 %v6973_v0  ;;  %4012 = vmatpush.bf16.msra.mxu3 %v6975_v57 }
 0x7c2   :  { %3974 = vmatpush.bf16.msra.mxu0 %v6989_v24  ;;  %3987 = vmatpush.bf16.msra.mxu1 %v6991_v31 }
 0x7c3   :  { %4000 = vmatpush.bf16.msrb.mxu2 %v6993_v36  ;;  %4013 = vmatpush.bf16.msra.mxu3 %v6996_v54 }
 0x7c6   :  { %3975 = vmatpush.bf16.msra.mxu0 %v7000_v8  ;;  %3988 = vmatpush.bf16.msra.mxu1 %v7002_v51 }
 0x7c7   :  { %4001 = vmatpush.bf16.msrb.mxu2 %v7005_v14  ;;  %4014 = vmatpush.bf16.msra.mxu3 %v7007_v11 }
 0x7ca   :  { %3976 = vmatpush.bf16.msra.mxu0 %v7017_v41  ;;  %3989 = vmatpush.bf16.msra.mxu1 %v7019_v44 }
 0x7cb   :  { %4002 = vmatpush.bf16.msrb.mxu2 %v7021_v22  ;;  %4015 = vmatpush.bf16.msra.mxu3 %v7024_v17 }
 0x7ce   :  { %3977 = vmatpush.bf16.msra.mxu0 %v7028_v30  ;;  %3990 = vmatpush.bf16.msra.mxu1 %v7030_v45 }
 0x7cf   :  { %4003 = vmatpush.bf16.msrb.mxu2 %v7033_v3  ;;  %4016 = vmatpush.bf16.msra.mxu3 %v7035_v27 }
 0x7d2   :  { %3978 = vmatpush.bf16.msra.mxu0 %v7045_v50  ;;  %3991 = vmatpush.bf16.msra.mxu1 %v7047_v40 }
 0x7d3   :  { %4004 = vmatpush.bf16.msrb.mxu2 %v7049_v47  ;;  %4017 = vmatpush.bf16.msra.mxu3 %v7052_v23 }
 0x7d6   :  { %3979 = vmatpush.bf16.msra.mxu0 %v7056_v12  ;;  %3992 = vmatpush.bf16.msra.mxu1 %v7058_v19 }
 0x7d7   :  { %4005 = vmatpush.bf16.msrb.mxu2 %v7061_v28  ;;  %4018 = vmatpush.bf16.msra.mxu3 %v7069_v38 }
 0x835   :  { %v3823_v56 = vpop.f32.mrf.mxu0  ;;  %v3836_v52 = vpop.f32.mrf.mxu1 }
 0x836   :  { %v3866_v34 = vadd.f32 %v3823_v56, %v3163_v55  ;;  %v3867_v39 = vadd.f32 %v3836_v52, %v3221_v5 }
 0x838   :  { %v3870_v59 = vmul.f32 0.5, %v3866_v34  ;;  %v3874_v48 = vmul.f32 0.5, %v3867_v39 }
 0x83a   :  { %6376 = vtanh.f32 %v3870_v59 }
 0x83b   :  { %6378 = vtanh.f32 %v3874_v48 }
 0x83c   :  { %v3849_v13 = vpop.f32.mrf.mxu2  ;;  %v3862_v2 = vpop.f32.mrf.mxu3 }
 0x83d   :  { %v3868_v26 = vadd.f32 %v3849_v13, %v7618_v25  ;;  %v3869_v63 = vadd.f32 %v3862_v2, %v7619_v10  ;;  %v3825_v9 = vpop.f32.mrf.mxu0  ;;  %v3838_v1 = vpop.f32.mrf.mxu1  ;;  %v7620_v10 = vld [vmem:[#allocation18_spill] sm:$0xff] }
 0x83e   :  { %v7621_v9 = vld [vmem:[#allocation21_spill] sm:$0xff] }
 0x83f   :  { %6380 = vtanh.f32 %v3868_v26  ;;  %v3879_v15 = vmul.f32 0.5, %v3869_v63 }
 0x840   :  { %v6377_v29 = vpop.eup %6376 }
 0x841   :  { %v6379_v7 = vpop.eup %6378  ;;  %v3872_v61 = vmul.f32 0.5, %v6377_v29  ;;  %6382 = vtanh.f32 %v3879_v15 }
 0x842   :  { %v3876_v42 = vmul.f32 0.5, %v6379_v7 }
 0x843   :  { %v3873_v58 = vadd.f32 0.5, %v3872_v61 }
 0x844   :  { %v3877_v21 = vadd.f32 0.5, %v3876_v42  ;;  %v3851_v55 = vpop.f32.mrf.mxu2  ;;  %v3864_v43 = vpop.f32.mrf.mxu3  ;;  %v7622_v42 = vld [vmem:[#allocation36_spill] sm:$0xff] }
 0x845   :  { %v6381_v5 = vpop.eup %6380 }
 0x846   :  { %v3883_v56 = vmul.f32 %v3877_v21, %v7347_v46  ;;  %v3884_v52 = vmul.f32 %v6381_v5, %v3873_v58  ;;  %v7623_v21 = vld [vmem:[#allocation37_spill] sm:$0xff] }
 0x847   :  { %v6383_v34 = vpop.eup %6382 }
 0x848   :  { %v7391_v39 = vadd.f32 %v3884_v52, %v3883_v56  ;;  %v3881_v59 = vmul.f32 0.5, %v6383_v34 }
 0x84a   :  { %6384 = vtanh.f32 %v7391_v39  ;;  %v3882_v48 = vadd.f32 0.5, %v3881_v59 }
 0x850   :  { %v6385_v13 = vpop.eup %6384 }
 0x851   :  { %v3887_v2 = vmul.f32 %v6385_v13, %v3882_v48 }
 0x853   :  { %v3892_v25 = vpack.c.bf16 %v3887_v2, %v3887_v2 }
 0x855   :  { %3901 = vmatmul.bf16.vlgmr.msrb.gmra.mxu0 %v3892_v25  ;;  %3914 = vmatmul.bf16.vlgmr.msrb.gmra.mxu1 %v3892_v25 }
 0x856   :  { %3927 = vmatmul.bf16.vlgmr.msra.gmra.mxu2 %v3892_v25  ;;  %3940 = vmatmul.bf16.vlgmr.msrb.gmra.mxu3 %v3892_v25 }
 0x857   :  { %4051 = vmatpush.bf16.msrb.mxu0 %v6957_v20  ;;  %4064 = vmatpush.bf16.msrb.mxu1 %v6959_v49 }
 0x858   :  { %4077 = vmatpush.bf16.msra.mxu2 %v6961_v33  ;;  %4090 = vmatpush.bf16.msrb.mxu3 %v6964_v53 }
 0x85b   :  { %4052 = vmatpush.bf16.msrb.mxu0 %v6968_v32  ;;  %4065 = vmatpush.bf16.msrb.mxu1 %v6970_v4 }
 0x85c   :  { %4078 = vmatpush.bf16.msra.mxu2 %v6973_v0  ;;  %4091 = vmatpush.bf16.msrb.mxu3 %v6975_v57 }
 0x85f   :  { %4053 = vmatpush.bf16.msrb.mxu0 %v6989_v24  ;;  %4066 = vmatpush.bf16.msrb.mxu1 %v6991_v31 }
 0x860   :  { %4079 = vmatpush.bf16.msra.mxu2 %v6993_v36  ;;  %4092 = vmatpush.bf16.msrb.mxu3 %v6996_v54 }
 0x863   :  { %4054 = vmatpush.bf16.msrb.mxu0 %v7000_v8  ;;  %4067 = vmatpush.bf16.msrb.mxu1 %v7002_v51 }
 0x864   :  { %4080 = vmatpush.bf16.msra.mxu2 %v7005_v14  ;;  %4093 = vmatpush.bf16.msrb.mxu3 %v7007_v11 }
 0x867   :  { %4055 = vmatpush.bf16.msrb.mxu0 %v7017_v41  ;;  %4068 = vmatpush.bf16.msrb.mxu1 %v7019_v44 }
 0x868   :  { %4081 = vmatpush.bf16.msra.mxu2 %v7021_v22  ;;  %4094 = vmatpush.bf16.msrb.mxu3 %v7024_v17 }
 0x86b   :  { %4056 = vmatpush.bf16.msrb.mxu0 %v7028_v30  ;;  %4069 = vmatpush.bf16.msrb.mxu1 %v7030_v45 }
 0x86c   :  { %4082 = vmatpush.bf16.msra.mxu2 %v7033_v3  ;;  %4095 = vmatpush.bf16.msrb.mxu3 %v7035_v27 }
 0x86f   :  { %4057 = vmatpush.bf16.msrb.mxu0 %v7045_v50  ;;  %4070 = vmatpush.bf16.msrb.mxu1 %v7047_v40 }
 0x870   :  { %4083 = vmatpush.bf16.msra.mxu2 %v7049_v47  ;;  %4096 = vmatpush.bf16.msrb.mxu3 %v7052_v23 }
 0x873   :  { %4058 = vmatpush.bf16.msrb.mxu0 %v7056_v12  ;;  %4071 = vmatpush.bf16.msrb.mxu1 %v7058_v19 }
 0x874   :  { %4084 = vmatpush.bf16.msra.mxu2 %v7061_v28  ;;  %4097 = vmatpush.bf16.msrb.mxu3 %v7069_v38 }
 0x8d2   :  { %v3902_v46 = vpop.f32.mrf.mxu0  ;;  %v3915_v26 = vpop.f32.mrf.mxu1 }
 0x8d3   :  { %v3945_v63 = vadd.f32 %v3902_v46, %v7620_v10  ;;  %v3946_v1 = vadd.f32 %v3915_v26, %v7621_v9 }
 0x8d5   :  { %v3949_v15 = vmul.f32 0.5, %v3945_v63  ;;  %v3953_v29 = vmul.f32 0.5, %v3946_v1 }
 0x8d7   :  { %6386 = vtanh.f32 %v3949_v15 }
 0x8d8   :  { %6388 = vtanh.f32 %v3953_v29 }
 0x8d9   :  { %v3928_v7 = vpop.f32.mrf.mxu2  ;;  %v3941_v61 = vpop.f32.mrf.mxu3 }
 0x8da   :  { %v3947_v58 = vadd.f32 %v3928_v7, %v7622_v42  ;;  %v3948_v55 = vadd.f32 %v3941_v61, %v7623_v21  ;;  %v3904_v43 = vpop.f32.mrf.mxu0  ;;  %v3917_v5 = vpop.f32.mrf.mxu1 }
 0x8dc   :  { %6390 = vtanh.f32 %v3947_v58  ;;  %v3958_v56 = vmul.f32 0.5, %v3948_v55 }
 0x8dd   :  { %v6387_v52 = vpop.eup %6386 }
 0x8de   :  { %v6389_v34 = vpop.eup %6388  ;;  %v3951_v59 = vmul.f32 0.5, %v6387_v52  ;;  %6392 = vtanh.f32 %v3958_v56 }
 0x8df   :  { %v3955_v48 = vmul.f32 0.5, %v6389_v34 }
 0x8e0   :  { %v3952_v13 = vadd.f32 0.5, %v3951_v59  ;;  %v7629_v59 = vld [vmem:[#allocation24_spill] sm:$0xff] }
 0x8e1   :  { %v3956_v2 = vadd.f32 0.5, %v3955_v48  ;;  %v3930_v25 = vpop.f32.mrf.mxu2  ;;  %v3943_v46 = vpop.f32.mrf.mxu3 }
 0x8e2   :  { %v6391_v26 = vpop.eup %6390  ;;  %v4219_v25 = vld [vmem:[%s7577_s7 + $0x78] sm:$0xff] }
 0x8e3   :  { %v3962_v10 = vmul.f32 %v3956_v2, %v7391_v39  ;;  %v3963_v63 = vmul.f32 %v6391_v26, %v3952_v13  ;;  %v7630_v13 = vld [vmem:[#allocation27_spill] sm:$0xff] }
 0x8e4   :  { %v6393_v9 = vpop.eup %6392 }
 0x8e5   :  { %v7431_v1 = vadd.f32 %v3963_v63, %v3962_v10  ;;  %v3960_v15 = vmul.f32 0.5, %v6393_v9 }
 0x8e7   :  { %6394 = vtanh.f32 %v7431_v1  ;;  %v3961_v29 = vadd.f32 0.5, %v3960_v15 }
 0x8ed   :  { %v6395_v7 = vpop.eup %6394 }
 0x8ee   :  { %v3966_v61 = vmul.f32 %v6395_v7, %v3961_v29 }
 0x8f0   :  { %v3971_v42 = vpack.c.bf16 %v3966_v61, %v3966_v61 }
 0x8f2   :  { %3980 = vmatmul.bf16.vlgmr.msra.gmra.mxu0 %v3971_v42  ;;  %3993 = vmatmul.bf16.vlgmr.msra.gmra.mxu1 %v3971_v42 }
 0x8f3   :  { %4006 = vmatmul.bf16.vlgmr.msrb.gmra.mxu2 %v3971_v42  ;;  %4019 = vmatmul.bf16.vlgmr.msra.gmra.mxu3 %v3971_v42 }
 0x8f4   :  { %4130 = vmatpush.bf16.msra.mxu0 %v6957_v20  ;;  %4143 = vmatpush.bf16.msra.mxu1 %v6959_v49  ;;  %v7624_v20 = vld [vmem:[#allocation19_spill] sm:$0xff] }
 0x8f5   :  { %4156 = vmatpush.bf16.msrb.mxu2 %v6961_v33  ;;  %4169 = vmatpush.bf16.msra.mxu3 %v6964_v53  ;;  %v3139_v49 = vadd.f32 %v7624_v20, %v7113_v16  ;;  %v7625_v33 = vld [vmem:[#allocation22_spill] sm:$0xff] }
 0x8f6   :  { %v3197_v53 = vadd.f32 %v7625_v33, %v7125_v6 }
 0x8f8   :  { %4131 = vmatpush.bf16.msra.mxu0 %v6968_v32  ;;  %4144 = vmatpush.bf16.msra.mxu1 %v6970_v4  ;;  %v7626_v32 = vld [vmem:[#allocation20_spill] sm:$0xff] }
 0x8f9   :  { %4157 = vmatpush.bf16.msrb.mxu2 %v6973_v0  ;;  %4170 = vmatpush.bf16.msra.mxu3 %v6975_v57  ;;  %v3168_v4 = vadd.f32 %v7626_v32, %v3139_v49  ;;  %v7627_v0 = vld [vmem:[#allocation23_spill] sm:$0xff] }
 0x8fa   :  { %v3226_v57 = vadd.f32 %v7627_v0, %v3197_v53 }
 0x8fc   :  { %4132 = vmatpush.bf16.msra.mxu0 %v6989_v24  ;;  %4145 = vmatpush.bf16.msra.mxu1 %v6991_v31 }
 0x8fd   :  { %4158 = vmatpush.bf16.msrb.mxu2 %v6993_v36  ;;  %4171 = vmatpush.bf16.msra.mxu3 %v6996_v54 }
 0x900   :  { %4133 = vmatpush.bf16.msra.mxu0 %v7000_v8  ;;  %4146 = vmatpush.bf16.msra.mxu1 %v7002_v51 }
 0x901   :  { %4159 = vmatpush.bf16.msrb.mxu2 %v7005_v14  ;;  %4172 = vmatpush.bf16.msra.mxu3 %v7007_v11 }
 0x904   :  { %4134 = vmatpush.bf16.msra.mxu0 %v7017_v41  ;;  %4147 = vmatpush.bf16.msra.mxu1 %v7019_v44  ;;  %v7628_v41 = vld [vmem:[#allocation38_spill] sm:$0xff] }
 0x905   :  { %4160 = vmatpush.bf16.msrb.mxu2 %v7021_v22  ;;  %4173 = vmatpush.bf16.msra.mxu3 %v7024_v17 }
 0x908   :  { %4135 = vmatpush.bf16.msra.mxu0 %v7028_v30  ;;  %4148 = vmatpush.bf16.msra.mxu1 %v7030_v45 }
 0x909   :  { %4161 = vmatpush.bf16.msrb.mxu2 %v7033_v3  ;;  %4174 = vmatpush.bf16.msra.mxu3 %v7035_v27 }
 0x90c   :  { %4136 = vmatpush.bf16.msra.mxu0 %v7045_v50  ;;  %4149 = vmatpush.bf16.msra.mxu1 %v7047_v40 }
 0x90d   :  { %4162 = vmatpush.bf16.msrb.mxu2 %v7049_v47  ;;  %4175 = vmatpush.bf16.msra.mxu3 %v7052_v23 }
 0x910   :  { %4137 = vmatpush.bf16.msra.mxu0 %v7056_v12  ;;  %4150 = vmatpush.bf16.msra.mxu1 %v7058_v19 }
 0x911   :  { %4163 = vmatpush.bf16.msrb.mxu2 %v7061_v28  ;;  %4176 = vmatpush.bf16.msra.mxu3 %v7069_v38 }
 0x96f   :  { %v3981_v24 = vpop.f32.mrf.mxu0  ;;  %v3994_v31 = vpop.f32.mrf.mxu1 }
 0x970   :  { %v4024_v36 = vadd.f32 %v3981_v24, %v3168_v4  ;;  %v4025_v54 = vadd.f32 %v3994_v31, %v3226_v57 }
 0x972   :  { %v4028_v8 = vmul.f32 0.5, %v4024_v36  ;;  %v4032_v51 = vmul.f32 0.5, %v4025_v54 }
 0x974   :  { %6396 = vtanh.f32 %v4028_v8 }
 0x975   :  { %6398 = vtanh.f32 %v4032_v51 }
 0x976   :  { %v4007_v14 = vpop.f32.mrf.mxu2  ;;  %v4020_v11 = vpop.f32.mrf.mxu3 }
 0x977   :  { %v4026_v44 = vadd.f32 %v4007_v14, %v7628_v41  ;;  %v4027_v22 = vadd.f32 %v4020_v11, %v7246_v35  ;;  %v3983_v17 = vpop.f32.mrf.mxu0  ;;  %v3996_v30 = vpop.f32.mrf.mxu1  ;;  %v4218_v14 = vld [vmem:[%s7577_s7 + $0x70] sm:$0xff]  ;;  %v4217_v11 = vld [vmem:[%s7577_s7 + $0x68] sm:$0xff]  ;;  %v4216_v41 = vld [vmem:[%s7577_s7 + $0x60] sm:$0xff] }
 0x978   :  { %v4213_v17 = vld [vmem:[%s7577_s7 + $0x48] sm:$0xff]  ;;  %v4212_v30 = vld [vmem:[%s7577_s7 + $0x40] sm:$0xff] }
 0x979   :  { %6400 = vtanh.f32 %v4026_v44  ;;  %v4037_v45 = vmul.f32 0.5, %v4027_v22  ;;  %v4215_v44 = vld [vmem:[%s7577_s7 + $0x58] sm:$0xff]  ;;  %v4214_v22 = vld [vmem:[%s7577_s7 + $0x50] sm:$0xff] }
 0x97a   :  { %v6397_v3 = vpop.eup %6396 }
 0x97b   :  { %v6399_v27 = vpop.eup %6398  ;;  %v4030_v50 = vmul.f32 0.5, %v6397_v3  ;;  %6402 = vtanh.f32 %v4037_v45  ;;  %v4211_v45 = vld [vmem:[%s7577_s7 + $0x38] sm:$0xff]  ;;  %v4210_v3 = vld [vmem:[%s7577_s7 + $0x30] sm:$0xff] }
 0x97c   :  { %v4034_v40 = vmul.f32 0.5, %v6399_v27  ;;  %v4209_v27 = vld [vmem:[%s7577_s7 + $0x28] sm:$0xff] }
 0x97d   :  { %v4031_v47 = vadd.f32 0.5, %v4030_v50  ;;  %v4208_v50 = vld [vmem:[%s7577_s7 + $0x20] sm:$0xff] }
 0x97e   :  { %v4035_v23 = vadd.f32 0.5, %v4034_v40  ;;  %v4009_v12 = vpop.f32.mrf.mxu2  ;;  %v4022_v19 = vpop.f32.mrf.mxu3  ;;  %v4207_v40 = vld [vmem:[%s7577_s7 + $0x18] sm:$0xff] }
 0x97f   :  { %v6401_v28 = vpop.eup %6400  ;;  %v7631_v12 = vld [vmem:[#allocation25_spill] sm:$0xff] }
 0x980   :  { %v4041_v38 = vmul.f32 %v4035_v23, %v7431_v1  ;;  %v4042_v39 = vmul.f32 %v6401_v28, %v4031_v47  ;;  %v4206_v47 = vld [vmem:[%s7577_s7 + $0x10] sm:$0xff]  ;;  %v4205_v23 = vld [vmem:[%s7577_s7 + $0x8] sm:$0xff]  ;;  %v3144_v19 = vadd.f32 %v7631_v12, %v7113_v16  ;;  %v7632_v28 = vld [vmem:[#allocation28_spill] sm:$0xff] }
 0x981   :  { %v6403_v58 = vpop.eup %6402  ;;  %v7634_v16 = vld [vmem:[#allocation29_spill] sm:$0xff] }
 0x982   :  { %v4043_v21 = vadd.f32 %v4042_v39, %v4041_v38  ;;  %v4039_v35 = vmul.f32 0.5, %v6403_v58  ;;  %v3202_v38 = vadd.f32 %v7632_v28, %v7125_v6  ;;  %v4204_v39 = vld [vmem:[%s7577_s7] sm:$0xff]  ;;  %v4248_v58 = vld [vmem:[%s7578_s8 + $0x38] sm:$0xff] }
 0x984   :  { %6404 = vtanh.f32 %v4043_v21  ;;  %v4040_v55 = vadd.f32 0.5, %v4039_v35  ;;  %v7633_v35 = vld [vmem:[#allocation26_spill] sm:$0xff] }
 0x98a   :  { %v6405_v43 = vpop.eup %6404 }
 0x98b   :  { %v4045_v5 = vmul.f32 %v6405_v43, %v4040_v55  ;;  %v3173_v55 = vadd.f32 %v7633_v35, %v3144_v19  ;;  %v3231_v43 = vadd.f32 %v7634_v16, %v3202_v38 }
 0x98d   :  { %v4050_v56 = vpack.c.bf16 %v4045_v5, %v4045_v5 }
 0x98f   :  { %4059 = vmatmul.bf16.vlgmr.msrb.gmra.mxu0 %v4050_v56  ;;  %4072 = vmatmul.bf16.vlgmr.msrb.gmra.mxu1 %v4050_v56 }
 0x990   :  { %4085 = vmatmul.bf16.vlgmr.msra.gmra.mxu2 %v4050_v56  ;;  %4098 = vmatmul.bf16.vlgmr.msrb.gmra.mxu3 %v4050_v56  ;;  %v4246_v56 = vld [vmem:[%s7578_s8 + $0x28] sm:$0xff] }
 0x991   :  { %4220 = vmatpush.msrb.mxu0 %v4219_v25  ;;  %4264 = vmatpush.msrb.mxu1 %v4248_v58 }
 0x993   :  { %4221 = vmatpush.msrb.mxu0 %v4218_v14 }
 0x995   :  { %4222 = vmatpush.msrb.mxu0 %v4217_v11 }
 0x997   :  { %4223 = vmatpush.msrb.mxu0 %v4216_v41 }
 0x999   :  { %4224 = vmatpush.msrb.mxu0 %v4215_v44 }
 0x99b   :  { %4225 = vmatpush.msrb.mxu0 %v4214_v22 }
 0x99d   :  { %4226 = vmatpush.msrb.mxu0 %v4213_v17 }
 0x99f   :  { %4227 = vmatpush.msrb.mxu0 %v4212_v30 }
 0x9a1   :  { %4228 = vmatpush.msrb.mxu0 %v4211_v45 }
 0x9a3   :  { %4229 = vmatpush.msrb.mxu0 %v4210_v3 }
 0x9a5   :  { %4230 = vmatpush.msrb.mxu0 %v4209_v27 }
 0x9a7   :  { %4231 = vmatpush.msrb.mxu0 %v4208_v50 }
 0x9a9   :  { %4232 = vmatpush.msrb.mxu0 %v4207_v40 }
 0x9ab   :  { %4233 = vmatpush.msrb.mxu0 %v4206_v47 }
 0x9ad   :  { %4234 = vmatpush.msrb.mxu0 %v4205_v23 }
 0x9af   :  { %4235 = vmatpush.msrb.mxu0 %v4204_v39 }
 0xa0c   :  { %v4060_v52 = vpop.f32.mrf.mxu0  ;;  %v4073_v34 = vpop.f32.mrf.mxu1 }
 0xa0d   :  { %v4103_v48 = vadd.f32 %v4060_v52, %v7629_v59  ;;  %v4104_v2 = vadd.f32 %v4073_v34, %v7630_v13  ;;  %v4245_v59 = vld [vmem:[%s7578_s8 + $0x20] sm:$0xff] }
 0xa0f   :  { %v4107_v46 = vmul.f32 0.5, %v4103_v48  ;;  %v4111_v26 = vmul.f32 0.5, %v4104_v2 }
 0xa11   :  { %6406 = vtanh.f32 %v4107_v46 }
 0xa12   :  { %6408 = vtanh.f32 %v4111_v26 }
 0xa13   :  { %v4086_v10 = vpop.f32.mrf.mxu2  ;;  %v4099_v63 = vpop.f32.mrf.mxu3 }
 0xa14   :  { %v4105_v9 = vadd.f32 %v4086_v10, %v7248_v18  ;;  %v4106_v1 = vadd.f32 %v4099_v63, %v7251_v60  ;;  %v4062_v15 = vpop.f32.mrf.mxu0  ;;  %v4075_v29 = vpop.f32.mrf.mxu1 }
 0xa16   :  { %6410 = vtanh.f32 %v4105_v9  ;;  %v4116_v7 = vmul.f32 0.5, %v4106_v1 }
 0xa17   :  { %v6407_v61 = vpop.eup %6406 }
 0xa18   :  { %v6409_v42 = vpop.eup %6408  ;;  %v4109_v20 = vmul.f32 0.5, %v6407_v61  ;;  %6412 = vtanh.f32 %v4116_v7 }
 0xa19   :  { %v4113_v49 = vmul.f32 0.5, %v6409_v42 }
 0xa1a   :  { %v4110_v33 = vadd.f32 0.5, %v4109_v20 }
 0xa1b   :  { %v4114_v53 = vadd.f32 0.5, %v4113_v49  ;;  %v4088_v32 = vpop.f32.mrf.mxu2  ;;  %v4101_v4 = vpop.f32.mrf.mxu3 }
 0xa1c   :  { %v6411_v0 = vpop.eup %6410 }
 0xa1d   :  { %v4120_v57 = vmul.f32 %v4114_v53, %v4043_v21  ;;  %v4121_v24 = vmul.f32 %v6411_v0, %v4110_v33  ;;  %v4247_v21 = vld [vmem:[%s7578_s8 + $0x30] sm:$0xff] }
 0xa1e   :  { %v6413_v31 = vpop.eup %6412  ;;  %4265 = vmatpush.msrb.mxu1 %v4247_v21 }
 0xa1f   :  { %v7482_v18 = vadd.f32 %v4121_v24, %v4120_v57  ;;  %v4118_v60 = vmul.f32 0.5, %v6413_v31  ;;  %v4244_v31 = vld [vmem:[%s7578_s8 + $0x18] sm:$0xff] }
 0xa20   :  { %4266 = vmatpush.msrb.mxu1 %v4246_v56 }
 0xa21   :  { %6414 = vtanh.f32 %v7482_v18  ;;  %v4119_v36 = vadd.f32 0.5, %v4118_v60  ;;  %v4243_v60 = vld [vmem:[%s7578_s8 + $0x10] sm:$0xff] }
 0xa22   :  { %4267 = vmatpush.msrb.mxu1 %v4245_v59 }
 0xa24   :  { %4268 = vmatpush.msrb.mxu1 %v4244_v31 }
 0xa26   :  { %4269 = vmatpush.msrb.mxu1 %v4243_v60 }
 0xa27   :  { %v6415_v54 = vpop.eup %6414 }
 0xa28   :  { %v4124_v8 = vmul.f32 %v6415_v54, %v4119_v36  ;;  %v4241_v36 = vld [vmem:[%s7578_s8] sm:$0xff] }
 0xa2a   :  { %v4129_v51 = vpack.c.bf16 %v4124_v8, %v4124_v8 }
 0xa2c   :  { %4138 = vmatmul.bf16.vlgmr.msra.gmra.mxu0 %v4129_v51  ;;  %4151 = vmatmul.bf16.vlgmr.msra.gmra.mxu1 %v4129_v51 }
 0xa2d   :  { %4164 = vmatmul.bf16.vlgmr.msrb.gmra.mxu2 %v4129_v51  ;;  %4177 = vmatmul.bf16.vlgmr.msra.gmra.mxu3 %v4129_v51  ;;  %v6265_v51 = vld [vmem:[%s7579_s9] ss:$0 sm:$0xff] }
 0xaa9   :  { %v4139_v6 = vpop.f32.mrf.mxu0  ;;  %v4152_v5 = vpop.f32.mrf.mxu1 }
 0xaaa   :  { %v4182_v52 = vadd.f32 %v4139_v6, %v3173_v55  ;;  %v4183_v34 = vadd.f32 %v4152_v5, %v3231_v43 }
 0xaac   :  { %v4186_v48 = vmul.f32 0.5, %v4182_v52  ;;  %v4190_v13 = vmul.f32 0.5, %v4183_v34 }
 0xaae   :  { %6416 = vtanh.f32 %v4186_v48 }
 0xaaf   :  { %6418 = vtanh.f32 %v4190_v13 }
 0xab0   :  { %v4165_v2 = vpop.f32.mrf.mxu2  ;;  %v4178_v25 = vpop.f32.mrf.mxu3 }
 0xab1   :  { %v4184_v46 = vadd.f32 %v4165_v2, %v7253_v37  ;;  %v4185_v26 = vadd.f32 %v4178_v25, %v7259_v62  ;;  %v4141_v10 = vpop.f32.mrf.mxu0  ;;  %v4154_v63 = vpop.f32.mrf.mxu1 }
 0xab3   :  { %6420 = vtanh.f32 %v4184_v46  ;;  %v4195_v9 = vmul.f32 0.5, %v4185_v26 }
 0xab4   :  { %v6417_v1 = vpop.eup %6416 }
 0xab5   :  { %v6419_v15 = vpop.eup %6418  ;;  %v4188_v29 = vmul.f32 0.5, %v6417_v1  ;;  %6422 = vtanh.f32 %v4195_v9 }
 0xab6   :  { %v4192_v7 = vmul.f32 0.5, %v6419_v15 }
 0xab7   :  { %v4189_v61 = vadd.f32 0.5, %v4188_v29 }
 0xab8   :  { %v4193_v42 = vadd.f32 0.5, %v4192_v7  ;;  %v4167_v20 = vpop.f32.mrf.mxu2  ;;  %v4180_v49 = vpop.f32.mrf.mxu3 }
 0xab9   :  { %v6421_v33 = vpop.eup %6420 }
 0xaba   :  { %v4199_v53 = vmul.f32 %v4193_v42, %v7482_v18  ;;  %v4200_v32 = vmul.f32 %v6421_v33, %v4189_v61  ;;  %v4242_v18 = vld [vmem:[%s7578_s8 + $0x8] sm:$0xff] }
 0xabb   :  { %v6423_v37 = vpop.eup %6422  ;;  %4270 = vmatpush.msrb.mxu1 %v4242_v18 }
 0xabc   :  { %v4201_v4 = vadd.f32 %v4200_v32, %v4199_v53  ;;  %v4197_v62 = vmul.f32 0.5, %v6423_v37 }
 0xabd   :  { %4271 = vmatpush.msrb.mxu1 %v4241_v36 }
 0xabe   :  { %6424 = vtanh.f32 %v4201_v4  ;;  %v4198_v0 = vadd.f32 0.5, %v4197_v62 }
 0xac4   :  { %v6425_v57 = vpop.eup %6424 }
 0xac5   :  { %v4203_v24 = vmul.f32 %v6425_v57, %v4198_v0 }
 0xac7   :  { %4236 = vmatmul.f32.vlgmr.msrb.gmra.mxu0 %v4203_v24 }
 0xb44   :  { %v4237_v54 = vpop.f32.mrf.mxu0 }
 0xb45   :  { %6426 = vtanh.f32 %v4237_v54 }
 0xb4b   :  { %v6427_v8 = vpop.eup %6426 }
 0xb4c   :  { %5834 = vmatmul.msk.f32.vlgmr.msrb.gmra.mxu1 %vm220_vm0, %v6427_v8 }
 0xbc9   :  { %v4273_v14 = vpop.f32.mrf.mxu1 }
 0xbca   :  { %v4274_v11 = vadd.f32 %v6265_v51, %v4273_v14 }
 0xbcc   :  { %4277 = vst.msk [vmem:[%s7580_s10] sm:$0xff] %vm4276_vm2, %v4274_v11 }
 0xbcd   :  { %4282 = vsyncpa [#allocation6], 1 }
 0xbce   :  { %4283 = vsyncpa [#allocation8], 1 }

</bundles_post_ra>
